<compile_context>
chip_gen: v7x
topology: tpu7x:2x2x1
jax: 0.10.0
libtpu: 0.0.40
codegen_flags: <defaults>
</compile_context>

<pallas_src>
import functools

import jax
import jax.numpy as jnp
from jax.experimental import pallas as pl
from jax.experimental.pallas import tpu as pltpu


NUM_BASIS = 5
HIDDEN = 16


# ---------------------------------------------------------------------------
# In-kernel helpers (operate on one batch element)
# ---------------------------------------------------------------------------

def _im2col(pad_ref, H, W):
    """Build (Npos, 9*Cin) conv patches from a zero-padded flat VMEM ref.

    pad_ref: ((H+2)*(W+2), Cin) bf16, row = y*Wp + x on the padded grid.
    Row r = y*Wp + x of the result holds the 3x3*Cin neighbourhood of output
    position (y, x); rows with x >= W are garbage and are never selected later.
    """
    Wp = W + 2
    Npos = (H - 1) * Wp + W
    taps = [pad_ref[dy * Wp + dx: dy * Wp + dx + Npos, :]
            for dy in range(3) for dx in range(3)]
    return jnp.concatenate(taps, axis=-1)


def _conv_pool_stage(patches, w_ref, b_ref, hm_ref, H, W):
    """3x3 SAME conv + bias + 2x2/2 maxpool via one K-merged matmul.

    patches: (Npos, 9*Cin) bf16 (padded-flat-grid row order, Wp = W+2)
    w_ref  : (9*Cin, Cout) bf16,  b_ref: (1, Cout) f32
    hm_ref : VMEM f32 scratch with >= (H-2)*Wp + W - 1 rows (pool staging)
    Returns H//2 chunks, each (W//2, Cout) f32; chunk[i][j] = pooled (y=i,x=j).
    """
    Wp = W + 2
    Npos = (H - 1) * Wp + W
    conv = jnp.dot(patches, w_ref[...], preferred_element_type=jnp.float32)
    # vertical pair max, then horizontal pair max on the flat padded grid
    nv = Npos - Wp
    vmax = jnp.maximum(conv[0:nv, :], conv[Wp:Wp + nv, :])
    nh = nv - 1
    hm_ref[0:nh, :] = jnp.maximum(vmax[0:nh, :], vmax[1:1 + nh, :])
    # select rows r = 2i*Wp + 2j (even y < H, even x < W); bias after max is
    # exact since max(a+c, b+c) == max(a, b) + c.
    bias = b_ref[...]
    wo = W // 2
    return [hm_ref[pl.ds(2 * i * Wp, wo, stride=2), :] + bias
            for i in range(H // 2)]


def _write_padded(pad_ref, chunks):
    """Scatter pooled rows into the next stage's zero-padded flat scratch."""
    pad_ref[...] = jnp.zeros(pad_ref.shape, pad_ref.dtype)
    wn = chunks[0].shape[0]
    wp = wn + 2
    for i, c in enumerate(chunks):
        start = (i + 1) * wp + 1
        pad_ref[start:start + wn, :] = c.astype(pad_ref.dtype)


def _kan_layer(x, w1_ref, b1_ref, w2_ref, b2_ref, ws_ref):
    """x: (1, I) f32 -> (1, O) f32.  phi math in f32, matmul operands bf16.

    phi_i(t) = w2_i . silu(w1_i * t + b1_i) + b2_i  (per-feature basis MLP),
    y[o]     = sum_i phi_i(x_i) * sum_k weights[o, i, k].
    """
    pre = x * w1_ref[...] + b1_ref[...]                       # (HIDDEN, I)
    act = pre * jax.nn.sigmoid(pre)                           # SiLU
    z = jnp.sum(act * w2_ref[...], axis=0, keepdims=True) + b2_ref[...]
    return jnp.dot(z.astype(jnp.bfloat16), ws_ref[...],
                   preferred_element_type=jnp.float32)


# ---------------------------------------------------------------------------
# Fused whole-network kernel (one grid step == one batch element)
# ---------------------------------------------------------------------------

def _kan_net_kernel(x_ref,
                    cw1, cb1, cw2, cb2, cw3, cb3,
                    k1w1, k1b1, k1w2, k1b2, k1ws,
                    k2w1, k2b1, k2w2, k2b2, k2ws,
                    k3w1, k3b1, k3w2, k3b2, k3ws,
                    wc_ref, bc_ref,
                    o_ref,
                    hm1, hm2, hm3, pad2, pad3,
                    *, H, W):
    # ---- conv stage 1 (Cin=3 -> 32); patches prebuilt by the wrapper -------
    chunks = _conv_pool_stage(x_ref[...], cw1, cb1, hm1, H, W)
    _write_padded(pad2, chunks)

    # ---- conv stage 2 (32 -> 64) -------------------------------------------
    H2, W2 = H // 2, W // 2
    chunks = _conv_pool_stage(_im2col(pad2, H2, W2), cw2, cb2, hm2, H2, W2)
    _write_padded(pad3, chunks)

    # ---- conv stage 3 (64 -> 128) ------------------------------------------
    H3, W3 = H2 // 2, W2 // 2
    chunks = _conv_pool_stage(_im2col(pad3, H3, W3), cw3, cb3, hm3, H3, W3)

    # ---- flatten (lane-concat, NHWC order; KAN params permuted to match) ---
    rows = [c[j:j + 1, :] for c in chunks for j in range(c.shape[0])]
    feats = jnp.concatenate(rows, axis=-1)                    # (1, P*C3)

    # ---- KAN head: kan1 -> SiLU -> kan2 -> SiLU -> kan3 -> classifier ------
    h = _kan_layer(feats, k1w1, k1b1, k1w2, k1b2, k1ws)
    h = h * jax.nn.sigmoid(h)
    h = _kan_layer(h, k2w1, k2b1, k2w2, k2b2, k2ws)
    h = h * jax.nn.sigmoid(h)
    h = _kan_layer(h, k3w1, k3b1, k3w2, k3b2, k3ws)
    o_ref[...] = (jnp.dot(h.astype(jnp.bfloat16), wc_ref[...],
                          preferred_element_type=jnp.float32) + bc_ref[...])


# ---------------------------------------------------------------------------
# Wrapper
# ---------------------------------------------------------------------------

def kan_forward(x_nchw, params):
    B, Cin, H, W = x_nchw.shape
    Hp, Wp = H + 2, W + 2
    Npos = (H - 1) * Wp + W

    # stage-1 im2col in the wrapper (tiny), bf16
    x = jnp.transpose(x_nchw, (0, 2, 3, 1)).astype(jnp.float32)   # NHWC
    xflat = jnp.pad(x, ((0, 0), (1, 1), (1, 1), (0, 0))).reshape(B, Hp * Wp, Cin)
    patches1 = jnp.concatenate(
        [xflat[:, dy * Wp + dx: dy * Wp + dx + Npos, :]
         for dy in range(3) for dx in range(3)],
        axis=-1).astype(jnp.bfloat16)                             # (B, Npos, 9*Cin)

    (cw1, cb1), (cw2, cb2), (cw3, cb3) = params["convs"]
    args = (patches1, cw1, cb1, cw2, cb2, cw3, cb3,
            *params["kan1"], *params["kan2"], *params["kan3"],
            params["wc"], params["bc"])

    nc = params["wc"].shape[-1]
    c1, c2, c3 = cw1.shape[-1], cw2.shape[-1], cw3.shape[-1]

    in_specs = [pl.BlockSpec((None, Npos, 9 * Cin), lambda b: (b, 0, 0))]
    in_specs += [pl.BlockSpec(a.shape, lambda b, n=a.ndim: (0,) * n)
                 for a in args[1:]]

    def rnd8(n):
        return ((n + 7) // 8) * 8

    def nh(h, w):                    # pooling-staging scratch rows per stage
        return rnd8((h - 2) * (w + 2) + w - 1)

    scratch_shapes = [
        pltpu.VMEM((nh(H, W), c1), jnp.float32),
        pltpu.VMEM((nh(H // 2, W // 2), c2), jnp.float32),
        pltpu.VMEM((nh(H // 4, W // 4), c3), jnp.float32),
        pltpu.VMEM(((H // 2 + 2) * (W // 2 + 2), c1), jnp.bfloat16),
        pltpu.VMEM(((H // 4 + 2) * (W // 4 + 2), c2), jnp.bfloat16),
    ]

    out = pl.pallas_call(
        functools.partial(_kan_net_kernel, H=H, W=W),
        out_shape=jax.ShapeDtypeStruct((B, 1, nc), jnp.float32),
        grid=(B,),
        in_specs=in_specs,
        out_specs=pl.BlockSpec((None, 1, nc), lambda b: (b, 0, 0)),
        scratch_shapes=scratch_shapes,
        compiler_params=pltpu.CompilerParams(
            dimension_semantics=("parallel",)),
    )(*args)
    return out.reshape(B, nc)


# ---------------------------------------------------------------------------
# Parameter setup (deterministic, synthetic)
# ---------------------------------------------------------------------------

def prep_kan_params(weights, W1, B1, W2, B2, perm=None):
    """Expand per-basis MLP params to per-feature params (basis = i % 5)."""
    O, I, nb = weights.shape
    groups = jnp.arange(I) % nb                       # NCHW feature index % 5
    w1t = W1[groups].T.astype(jnp.float32)            # (HIDDEN, I)
    b1t = B1[groups].T.astype(jnp.float32)
    w2t = W2[groups].T.astype(jnp.float32)
    b2f = B2[groups].reshape(1, I).astype(jnp.float32)
    ws = weights.sum(-1).T.astype(jnp.float32)        # (I, O)
    if perm is not None:                              # reorder NCHW -> NHWC
        w1t, b1t, w2t = w1t[:, perm], b1t[:, perm], w2t[:, perm]
        b2f, ws = b2f[:, perm], ws[perm, :]
    return (w1t, b1t, w2t, b2f, ws.astype(jnp.bfloat16))


def prep_params(raw, H, W):
    convs = [(w.reshape(-1, w.shape[-1]).astype(jnp.bfloat16),   # (9*Cin, Cout)
              b.reshape(1, -1).astype(jnp.float32))
             for (w, b) in raw["convs"]]
    # The kernel flattens features in NHWC (pos-major) order; the torch
    # reference flattens NCHW, so permute kan1's per-feature params to match.
    P = (H // 8) * (W // 8)
    C = raw["convs"][-1][0].shape[-1]
    perm = (jnp.arange(C)[None, :] * P + jnp.arange(P)[:, None]).reshape(-1)
    nc = raw["wc"].shape[0]
    return dict(
        convs=convs,
        kan1=prep_kan_params(*raw["kan1"], perm=perm),
        kan2=prep_kan_params(*raw["kan2"]),
        kan3=prep_kan_params(*raw["kan3"]),
        wc=raw["wc"].T.astype(jnp.bfloat16),
        bc=raw["bc"].reshape(1, nc).astype(jnp.float32),
    )


def init_raw_params(key, feat_dim, num_classes=2):
    ks = iter(jax.random.split(key, 32))

    def nrm(shape, scale):
        return scale * jax.random.normal(next(ks), shape, jnp.float32)

    convs = []
    for cin, cout, s in zip((3, 32, 64), (32, 64, 128), (0.2, 0.06, 0.04)):
        convs.append((nrm((3, 3, cin, cout), s), nrm((cout,), 0.05)))

    def kan_raw(I, O, s):
        return (nrm((O, I, NUM_BASIS), s),            # weights
                nrm((NUM_BASIS, HIDDEN), 1.0),        # Linear(1,16).weight[:,0]
                nrm((NUM_BASIS, HIDDEN), 0.5),        # Linear(1,16).bias
                nrm((NUM_BASIS, HIDDEN), 0.25),       # Linear(16,1).weight[0,:]
                nrm((NUM_BASIS,), 0.1))               # Linear(16,1).bias

    return dict(
        convs=convs,
        kan1=kan_raw(feat_dim, 256, 0.02),
        kan2=kan_raw(256, 64, 0.03),
        kan3=kan_raw(64, 16, 0.05),
        wc=nrm((num_classes, 16), 0.25),
        bc=nrm((num_classes,), 0.1),
    )


# ---------------------------------------------------------------------------
# Pure-JAX f32 reference (numerical sanity check)
# ---------------------------------------------------------------------------

def _kan_ref(h, weights, W1, B1, W2, B2):
    O, I, nb = weights.shape
    g = jnp.arange(I) % nb
    pre = h[:, :, None] * W1[g][None] + B1[g][None]
    act = pre * jax.nn.sigmoid(pre)
    z = (act * W2[g][None]).sum(-1) + B2[g][None]
    return z @ weights.sum(-1).T


def ref_forward(x_nchw, raw):
    x = jnp.transpose(x_nchw, (0, 2, 3, 1)).astype(jnp.float32)
    for (w, b) in raw["convs"]:
        x = jax.lax.conv_general_dilated(
            x, w, (1, 1), "SAME",
            dimension_numbers=("NHWC", "HWIO", "NHWC")) + b
        x = jax.lax.reduce_window(x, -jnp.inf, jax.lax.max,
                                  (1, 2, 2, 1), (1, 2, 2, 1), "VALID")
    B = x.shape[0]
    feats = jnp.transpose(x, (0, 3, 1, 2)).reshape(B, -1)   # NCHW flatten
    h = _kan_ref(feats, *raw["kan1"]); h = h * jax.nn.sigmoid(h)
    h = _kan_ref(h, *raw["kan2"]); h = h * jax.nn.sigmoid(h)
    h = _kan_ref(h, *raw["kan3"])
    return h @ raw["wc"].T + raw["bc"]


# ---------------------------------------------------------------------------

if __name__ == "__main__":
    key = jax.random.PRNGKey(0)
    k_params, k_x = jax.random.split(key)

    B, C_IN, H, W = 2, 3, 16, 16          # feature dim = 128 * 2 * 2 = 512
    feat_dim = 128 * (H // 8) * (W // 8)

    raw = init_raw_params(k_params, feat_dim, num_classes=2)
    params = prep_params(raw, H, W)

    x = jax.random.normal(k_x, (B, C_IN, H, W), jnp.float32)

    logits = jax.block_until_ready(jax.jit(kan_forward)(x, params))

    ref = jax.block_until_ready(ref_forward(x, raw))
    assert logits.shape == (B, 2), logits.shape
    # Tolerance accommodates bf16 MXU operands (f32 accum) across the three
    # conv stages and the KAN-head matmuls.
    assert jnp.allclose(logits, ref, atol=1.5e-1, rtol=1.5e-1), (logits, ref)

    print("KERNEL_OK")
</pallas_src>

<mosaic_0001>
module attributes {stable_mosaic.version = 11 : i64} {
  func.func @_kan_net_kernel(%arg0: i32, %arg1: memref<1x286x27xbf16, #tpu.memory_space<vmem>>, %arg2: memref<27x32xbf16, #tpu.memory_space<vmem>>, %arg3: memref<1x32xf32, #tpu.memory_space<vmem>>, %arg4: memref<288x64xbf16, #tpu.memory_space<vmem>>, %arg5: memref<1x64xf32, #tpu.memory_space<vmem>>, %arg6: memref<576x128xbf16, #tpu.memory_space<vmem>>, %arg7: memref<1x128xf32, #tpu.memory_space<vmem>>, %arg8: memref<16x512xf32, #tpu.memory_space<vmem>>, %arg9: memref<16x512xf32, #tpu.memory_space<vmem>>, %arg10: memref<16x512xf32, #tpu.memory_space<vmem>>, %arg11: memref<1x512xf32, #tpu.memory_space<vmem>>, %arg12: memref<512x256xbf16, #tpu.memory_space<vmem>>, %arg13: memref<16x256xf32, #tpu.memory_space<vmem>>, %arg14: memref<16x256xf32, #tpu.memory_space<vmem>>, %arg15: memref<16x256xf32, #tpu.memory_space<vmem>>, %arg16: memref<1x256xf32, #tpu.memory_space<vmem>>, %arg17: memref<256x64xbf16, #tpu.memory_space<vmem>>, %arg18: memref<16x64xf32, #tpu.memory_space<vmem>>, %arg19: memref<16x64xf32, #tpu.memory_space<vmem>>, %arg20: memref<16x64xf32, #tpu.memory_space<vmem>>, %arg21: memref<1x64xf32, #tpu.memory_space<vmem>>, %arg22: memref<64x16xbf16, #tpu.memory_space<vmem>>, %arg23: memref<16x2xbf16, #tpu.memory_space<vmem>>, %arg24: memref<1x2xf32, #tpu.memory_space<vmem>>, %arg25: memref<1x1x2xf32, #tpu.memory_space<vmem>>, %arg26: memref<272x32xf32, #tpu.memory_space<vmem>>, %arg27: memref<72x64xf32, #tpu.memory_space<vmem>>, %arg28: memref<16x128xf32, #tpu.memory_space<vmem>>, %arg29: memref<100x32xbf16, #tpu.memory_space<vmem>>, %arg30: memref<36x64xbf16, #tpu.memory_space<vmem>>) attributes {dimension_semantics = [#tpu.dimension_semantics<parallel>], iteration_bounds = array<i64: 2>, scalar_prefetch = 0 : i64, scratch_operands = 5 : i64, tpu.core_type = #tpu.core_type<tc>, window_params = [{transform_indices = @transform_0, window_bounds = array<i64: 1, 286, 27>}, {pipeline_mode = #tpu.pipeline_mode<synchronous>, transform_indices = @transform_1, window_bounds = array<i64: 27, 32>}, {pipeline_mode = #tpu.pipeline_mode<synchronous>, transform_indices = @transform_2, window_bounds = array<i64: 1, 32>}, {pipeline_mode = #tpu.pipeline_mode<synchronous>, transform_indices = @transform_3, window_bounds = array<i64: 288, 64>}, {pipeline_mode = #tpu.pipeline_mode<synchronous>, transform_indices = @transform_4, window_bounds = array<i64: 1, 64>}, {pipeline_mode = #tpu.pipeline_mode<synchronous>, transform_indices = @transform_5, window_bounds = array<i64: 576, 128>}, {pipeline_mode = #tpu.pipeline_mode<synchronous>, transform_indices = @transform_6, window_bounds = array<i64: 1, 128>}, {pipeline_mode = #tpu.pipeline_mode<synchronous>, transform_indices = @transform_7, window_bounds = array<i64: 16, 512>}, {pipeline_mode = #tpu.pipeline_mode<synchronous>, transform_indices = @transform_8, window_bounds = array<i64: 16, 512>}, {pipeline_mode = #tpu.pipeline_mode<synchronous>, transform_indices = @transform_9, window_bounds = array<i64: 16, 512>}, {pipeline_mode = #tpu.pipeline_mode<synchronous>, transform_indices = @transform_10, window_bounds = array<i64: 1, 512>}, {pipeline_mode = #tpu.pipeline_mode<synchronous>, transform_indices = @transform_11, window_bounds = array<i64: 512, 256>}, {pipeline_mode = #tpu.pipeline_mode<synchronous>, transform_indices = @transform_12, window_bounds = array<i64: 16, 256>}, {pipeline_mode = #tpu.pipeline_mode<synchronous>, transform_indices = @transform_13, window_bounds = array<i64: 16, 256>}, {pipeline_mode = #tpu.pipeline_mode<synchronous>, transform_indices = @transform_14, window_bounds = array<i64: 16, 256>}, {pipeline_mode = #tpu.pipeline_mode<synchronous>, transform_indices = @transform_15, window_bounds = array<i64: 1, 256>}, {pipeline_mode = #tpu.pipeline_mode<synchronous>, transform_indices = @transform_16, window_bounds = array<i64: 256, 64>}, {pipeline_mode = #tpu.pipeline_mode<synchronous>, transform_indices = @transform_17, window_bounds = array<i64: 16, 64>}, {pipeline_mode = #tpu.pipeline_mode<synchronous>, transform_indices = @transform_18, window_bounds = array<i64: 16, 64>}, {pipeline_mode = #tpu.pipeline_mode<synchronous>, transform_indices = @transform_19, window_bounds = array<i64: 16, 64>}, {pipeline_mode = #tpu.pipeline_mode<synchronous>, transform_indices = @transform_20, window_bounds = array<i64: 1, 64>}, {pipeline_mode = #tpu.pipeline_mode<synchronous>, transform_indices = @transform_21, window_bounds = array<i64: 64, 16>}, {pipeline_mode = #tpu.pipeline_mode<synchronous>, transform_indices = @transform_22, window_bounds = array<i64: 16, 2>}, {pipeline_mode = #tpu.pipeline_mode<synchronous>, transform_indices = @transform_23, window_bounds = array<i64: 1, 2>}, {transform_indices = @transform_24, window_bounds = array<i64: 1, 1, 2>}]} {
    %c0 = arith.constant 0 : index
    %c0_0 = arith.constant 0 : index
    %c0_1 = arith.constant 0 : index
    %0 = vector.load %arg1[%c0, %c0_0, %c0_1] : memref<1x286x27xbf16, #tpu.memory_space<vmem>>, vector<1x286x27xbf16>
    %1 = vector.shape_cast %0 : vector<1x286x27xbf16> to vector<286x27xbf16>
    %c0_2 = arith.constant 0 : index
    %c0_3 = arith.constant 0 : index
    %2 = vector.load %arg2[%c0_2, %c0_3] : memref<27x32xbf16, #tpu.memory_space<vmem>>, vector<27x32xbf16>
    %cst = arith.constant dense<0.000000e+00> : vector<286x32xf32>
    %3 = tpu.matmul %1, %2, %cst {dimension_numbers = #tpu.dot_dimension_numbers<[1], [0], [0], [1], [0, 0, 1, 1], [], []>} : vector<286x27xbf16>, vector<27x32xbf16>, vector<286x32xf32> -> vector<286x32xf32>
    %4 = vector.extract_strided_slice %3 {offsets = [0, 0], sizes = [268, 32], strides = [1, 1]} : vector<286x32xf32> to vector<268x32xf32>
    %5 = vector.extract_strided_slice %3 {offsets = [18, 0], sizes = [268, 32], strides = [1, 1]} : vector<286x32xf32> to vector<268x32xf32>
    %6 = arith.maximumf %4, %5 : vector<268x32xf32>
    %7 = vector.extract_strided_slice %6 {offsets = [0, 0], sizes = [267, 32], strides = [1, 1]} : vector<268x32xf32> to vector<267x32xf32>
    %8 = vector.extract_strided_slice %6 {offsets = [1, 0], sizes = [267, 32], strides = [1, 1]} : vector<268x32xf32> to vector<267x32xf32>
    %9 = arith.maximumf %7, %8 : vector<267x32xf32>
    %c0_4 = arith.constant 0 : index
    %c0_5 = arith.constant 0 : index
    %10 = vector.load %arg26[%c0_4, %c0_5] : memref<272x32xf32, #tpu.memory_space<vmem>>, vector<267x32xf32>
    tpu.vector_store %arg26[%c0_4, %c0_5], %9 {strides = array<i32>} : memref<272x32xf32, #tpu.memory_space<vmem>>, vector<267x32xf32>,
    %c0_6 = arith.constant 0 : index
    %c0_7 = arith.constant 0 : index
    %11 = vector.load %arg3[%c0_6, %c0_7] : memref<1x32xf32, #tpu.memory_space<vmem>>, vector<1x32xf32>
    %c0_8 = arith.constant 0 : index
    %c0_9 = arith.constant 0 : index
    %12 = tpu.strided_load %arg26[%c0_8, %c0_9] {strides = array<i32: 2, 1>} : memref<272x32xf32, #tpu.memory_space<vmem>>, vector<8x32xf32>
    %13 = vector.broadcast %11 : vector<1x32xf32> to vector<8x32xf32>
    %14 = arith.addf %12, %13 : vector<8x32xf32>
    %c36 = arith.constant 36 : index
    %c0_10 = arith.constant 0 : index
    %15 = tpu.strided_load %arg26[%c36, %c0_10] {strides = array<i32: 2, 1>} : memref<272x32xf32, #tpu.memory_space<vmem>>, vector<8x32xf32>
    %16 = vector.broadcast %11 : vector<1x32xf32> to vector<8x32xf32>
    %17 = arith.addf %15, %16 : vector<8x32xf32>
    %c72 = arith.constant 72 : index
    %c0_11 = arith.constant 0 : index
    %18 = tpu.strided_load %arg26[%c72, %c0_11] {strides = array<i32: 2, 1>} : memref<272x32xf32, #tpu.memory_space<vmem>>, vector<8x32xf32>
    %19 = vector.broadcast %11 : vector<1x32xf32> to vector<8x32xf32>
    %20 = arith.addf %18, %19 : vector<8x32xf32>
    %c108 = arith.constant 108 : index
    %c0_12 = arith.constant 0 : index
    %21 = tpu.strided_load %arg26[%c108, %c0_12] {strides = array<i32: 2, 1>} : memref<272x32xf32, #tpu.memory_space<vmem>>, vector<8x32xf32>
    %22 = vector.broadcast %11 : vector<1x32xf32> to vector<8x32xf32>
    %23 = arith.addf %21, %22 : vector<8x32xf32>
    %c144 = arith.constant 144 : index
    %c0_13 = arith.constant 0 : index
    %24 = tpu.strided_load %arg26[%c144, %c0_13] {strides = array<i32: 2, 1>} : memref<272x32xf32, #tpu.memory_space<vmem>>, vector<8x32xf32>
    %25 = vector.broadcast %11 : vector<1x32xf32> to vector<8x32xf32>
    %26 = arith.addf %24, %25 : vector<8x32xf32>
    %c180 = arith.constant 180 : index
    %c0_14 = arith.constant 0 : index
    %27 = tpu.strided_load %arg26[%c180, %c0_14] {strides = array<i32: 2, 1>} : memref<272x32xf32, #tpu.memory_space<vmem>>, vector<8x32xf32>
    %28 = vector.broadcast %11 : vector<1x32xf32> to vector<8x32xf32>
    %29 = arith.addf %27, %28 : vector<8x32xf32>
    %c216 = arith.constant 216 : index
    %c0_15 = arith.constant 0 : index
    %30 = tpu.strided_load %arg26[%c216, %c0_15] {strides = array<i32: 2, 1>} : memref<272x32xf32, #tpu.memory_space<vmem>>, vector<8x32xf32>
    %31 = vector.broadcast %11 : vector<1x32xf32> to vector<8x32xf32>
    %32 = arith.addf %30, %31 : vector<8x32xf32>
    %c252 = arith.constant 252 : index
    %c0_16 = arith.constant 0 : index
    %33 = tpu.strided_load %arg26[%c252, %c0_16] {strides = array<i32: 2, 1>} : memref<272x32xf32, #tpu.memory_space<vmem>>, vector<8x32xf32>
    %34 = vector.broadcast %11 : vector<1x32xf32> to vector<8x32xf32>
    %35 = arith.addf %33, %34 : vector<8x32xf32>
    %cst_17 = arith.constant 0.000000e+00 : bf16
    %36 = vector.broadcast %cst_17 : bf16 to vector<100x32xbf16>
    %c0_18 = arith.constant 0 : index
    %c0_19 = arith.constant 0 : index
    %37 = vector.load %arg29[%c0_18, %c0_19] : memref<100x32xbf16, #tpu.memory_space<vmem>>, vector<100x32xbf16>
    tpu.vector_store %arg29[%c0_18, %c0_19], %36 {strides = array<i32>} : memref<100x32xbf16, #tpu.memory_space<vmem>>, vector<100x32xbf16>,
    %38 = arith.truncf %14 : vector<8x32xf32> to vector<8x32xbf16>
    %c11 = arith.constant 11 : index
    %c0_20 = arith.constant 0 : index
    %39 = vector.load %arg29[%c11, %c0_20] : memref<100x32xbf16, #tpu.memory_space<vmem>>, vector<8x32xbf16>
    tpu.vector_store %arg29[%c11, %c0_20], %38 {strides = array<i32>} : memref<100x32xbf16, #tpu.memory_space<vmem>>, vector<8x32xbf16>,
    %40 = arith.truncf %17 : vector<8x32xf32> to vector<8x32xbf16>
    %c21 = arith.constant 21 : index
    %c0_21 = arith.constant 0 : index
    %41 = vector.load %arg29[%c21, %c0_21] : memref<100x32xbf16, #tpu.memory_space<vmem>>, vector<8x32xbf16>
    tpu.vector_store %arg29[%c21, %c0_21], %40 {strides = array<i32>} : memref<100x32xbf16, #tpu.memory_space<vmem>>, vector<8x32xbf16>,
    %42 = arith.truncf %20 : vector<8x32xf32> to vector<8x32xbf16>
    %c31 = arith.constant 31 : index
    %c0_22 = arith.constant 0 : index
    %43 = vector.load %arg29[%c31, %c0_22] : memref<100x32xbf16, #tpu.memory_space<vmem>>, vector<8x32xbf16>
    tpu.vector_store %arg29[%c31, %c0_22], %42 {strides = array<i32>} : memref<100x32xbf16, #tpu.memory_space<vmem>>, vector<8x32xbf16>,
    %44 = arith.truncf %23 : vector<8x32xf32> to vector<8x32xbf16>
    %c41 = arith.constant 41 : index
    %c0_23 = arith.constant 0 : index
    %45 = vector.load %arg29[%c41, %c0_23] : memref<100x32xbf16, #tpu.memory_space<vmem>>, vector<8x32xbf16>
    tpu.vector_store %arg29[%c41, %c0_23], %44 {strides = array<i32>} : memref<100x32xbf16, #tpu.memory_space<vmem>>, vector<8x32xbf16>,
    %46 = arith.truncf %26 : vector<8x32xf32> to vector<8x32xbf16>
    %c51 = arith.constant 51 : index
    %c0_24 = arith.constant 0 : index
    %47 = vector.load %arg29[%c51, %c0_24] : memref<100x32xbf16, #tpu.memory_space<vmem>>, vector<8x32xbf16>
    tpu.vector_store %arg29[%c51, %c0_24], %46 {strides = array<i32>} : memref<100x32xbf16, #tpu.memory_space<vmem>>, vector<8x32xbf16>,
    %48 = arith.truncf %29 : vector<8x32xf32> to vector<8x32xbf16>
    %c61 = arith.constant 61 : index
    %c0_25 = arith.constant 0 : index
    %49 = vector.load %arg29[%c61, %c0_25] : memref<100x32xbf16, #tpu.memory_space<vmem>>, vector<8x32xbf16>
    tpu.vector_store %arg29[%c61, %c0_25], %48 {strides = array<i32>} : memref<100x32xbf16, #tpu.memory_space<vmem>>, vector<8x32xbf16>,
    %50 = arith.truncf %32 : vector<8x32xf32> to vector<8x32xbf16>
    %c71 = arith.constant 71 : index
    %c0_26 = arith.constant 0 : index
    %51 = vector.load %arg29[%c71, %c0_26] : memref<100x32xbf16, #tpu.memory_space<vmem>>, vector<8x32xbf16>
    tpu.vector_store %arg29[%c71, %c0_26], %50 {strides = array<i32>} : memref<100x32xbf16, #tpu.memory_space<vmem>>, vector<8x32xbf16>,
    %52 = arith.truncf %35 : vector<8x32xf32> to vector<8x32xbf16>
    %c81 = arith.constant 81 : index
    %c0_27 = arith.constant 0 : index
    %53 = vector.load %arg29[%c81, %c0_27] : memref<100x32xbf16, #tpu.memory_space<vmem>>, vector<8x32xbf16>
    tpu.vector_store %arg29[%c81, %c0_27], %52 {strides = array<i32>} : memref<100x32xbf16, #tpu.memory_space<vmem>>, vector<8x32xbf16>,
    %c0_28 = arith.constant 0 : index
    %c0_29 = arith.constant 0 : index
    %54 = vector.load %arg29[%c0_28, %c0_29] : memref<100x32xbf16, #tpu.memory_space<vmem>>, vector<78x32xbf16>
    %c1 = arith.constant 1 : index
    %c0_30 = arith.constant 0 : index
    %55 = vector.load %arg29[%c1, %c0_30] : memref<100x32xbf16, #tpu.memory_space<vmem>>, vector<78x32xbf16>
    %c2 = arith.constant 2 : index
    %c0_31 = arith.constant 0 : index
    %56 = vector.load %arg29[%c2, %c0_31] : memref<100x32xbf16, #tpu.memory_space<vmem>>, vector<78x32xbf16>
    %c10 = arith.constant 10 : index
    %c0_32 = arith.constant 0 : index
    %57 = vector.load %arg29[%c10, %c0_32] : memref<100x32xbf16, #tpu.memory_space<vmem>>, vector<78x32xbf16>
    %c11_33 = arith.constant 11 : index
    %c0_34 = arith.constant 0 : index
    %58 = vector.load %arg29[%c11_33, %c0_34] : memref<100x32xbf16, #tpu.memory_space<vmem>>, vector<78x32xbf16>
    %c12 = arith.constant 12 : index
    %c0_35 = arith.constant 0 : index
    %59 = vector.load %arg29[%c12, %c0_35] : memref<100x32xbf16, #tpu.memory_space<vmem>>, vector<78x32xbf16>
    %c20 = arith.constant 20 : index
    %c0_36 = arith.constant 0 : index
    %60 = vector.load %arg29[%c20, %c0_36] : memref<100x32xbf16, #tpu.memory_space<vmem>>, vector<78x32xbf16>
    %c21_37 = arith.constant 21 : index
    %c0_38 = arith.constant 0 : index
    %61 = vector.load %arg29[%c21_37, %c0_38] : memref<100x32xbf16, #tpu.memory_space<vmem>>, vector<78x32xbf16>
    %c22 = arith.constant 22 : index
    %c0_39 = arith.constant 0 : index
    %62 = vector.load %arg29[%c22, %c0_39] : memref<100x32xbf16, #tpu.memory_space<vmem>>, vector<78x32xbf16>
    %63 = tpu.concatenate %54, %55, %56, %57, %58, %59, %60, %61, %62 in 1 : vector<78x32xbf16>, vector<78x32xbf16>, vector<78x32xbf16>, vector<78x32xbf16>, vector<78x32xbf16>, vector<78x32xbf16>, vector<78x32xbf16>, vector<78x32xbf16>, vector<78x32xbf16> -> vector<78x288xbf16>
    %c0_40 = arith.constant 0 : index
    %c0_41 = arith.constant 0 : index
    %64 = vector.load %arg4[%c0_40, %c0_41] : memref<288x64xbf16, #tpu.memory_space<vmem>>, vector<288x64xbf16>
    %cst_42 = arith.constant dense<0.000000e+00> : vector<78x64xf32>
    %65 = tpu.matmul %63, %64, %cst_42 {dimension_numbers = #tpu.dot_dimension_numbers<[1], [0], [0], [1], [0, 0, 1, 1], [], []>} : vector<78x288xbf16>, vector<288x64xbf16>, vector<78x64xf32> -> vector<78x64xf32>
    %66 = vector.extract_strided_slice %65 {offsets = [0, 0], sizes = [68, 64], strides = [1, 1]} : vector<78x64xf32> to vector<68x64xf32>
    %67 = vector.extract_strided_slice %65 {offsets = [10, 0], sizes = [68, 64], strides = [1, 1]} : vector<78x64xf32> to vector<68x64xf32>
    %68 = arith.maximumf %66, %67 : vector<68x64xf32>
    %69 = vector.extract_strided_slice %68 {offsets = [0, 0], sizes = [67, 64], strides = [1, 1]} : vector<68x64xf32> to vector<67x64xf32>
    %70 = vector.extract_strided_slice %68 {offsets = [1, 0], sizes = [67, 64], strides = [1, 1]} : vector<68x64xf32> to vector<67x64xf32>
    %71 = arith.maximumf %69, %70 : vector<67x64xf32>
    %c0_43 = arith.constant 0 : index
    %c0_44 = arith.constant 0 : index
    %72 = vector.load %arg27[%c0_43, %c0_44] : memref<72x64xf32, #tpu.memory_space<vmem>>, vector<67x64xf32>
    tpu.vector_store %arg27[%c0_43, %c0_44], %71 {strides = array<i32>} : memref<72x64xf32, #tpu.memory_space<vmem>>, vector<67x64xf32>,
    %c0_45 = arith.constant 0 : index
    %c0_46 = arith.constant 0 : index
    %73 = vector.load %arg5[%c0_45, %c0_46] : memref<1x64xf32, #tpu.memory_space<vmem>>, vector<1x64xf32>
    %c0_47 = arith.constant 0 : index
    %c0_48 = arith.constant 0 : index
    %74 = tpu.strided_load %arg27[%c0_47, %c0_48] {strides = array<i32: 2, 1>} : memref<72x64xf32, #tpu.memory_space<vmem>>, vector<4x64xf32>
    %75 = vector.broadcast %73 : vector<1x64xf32> to vector<4x64xf32>
    %76 = arith.addf %74, %75 : vector<4x64xf32>
    %c20_49 = arith.constant 20 : index
    %c0_50 = arith.constant 0 : index
    %77 = tpu.strided_load %arg27[%c20_49, %c0_50] {strides = array<i32: 2, 1>} : memref<72x64xf32, #tpu.memory_space<vmem>>, vector<4x64xf32>
    %78 = vector.broadcast %73 : vector<1x64xf32> to vector<4x64xf32>
    %79 = arith.addf %77, %78 : vector<4x64xf32>
    %c40 = arith.constant 40 : index
    %c0_51 = arith.constant 0 : index
    %80 = tpu.strided_load %arg27[%c40, %c0_51] {strides = array<i32: 2, 1>} : memref<72x64xf32, #tpu.memory_space<vmem>>, vector<4x64xf32>
    %81 = vector.broadcast %73 : vector<1x64xf32> to vector<4x64xf32>
    %82 = arith.addf %80, %81 : vector<4x64xf32>
    %c60 = arith.constant 60 : index
    %c0_52 = arith.constant 0 : index
    %83 = tpu.strided_load %arg27[%c60, %c0_52] {strides = array<i32: 2, 1>} : memref<72x64xf32, #tpu.memory_space<vmem>>, vector<4x64xf32>
    %84 = vector.broadcast %73 : vector<1x64xf32> to vector<4x64xf32>
    %85 = arith.addf %83, %84 : vector<4x64xf32>
    %cst_53 = arith.constant 0.000000e+00 : bf16
    %86 = vector.broadcast %cst_53 : bf16 to vector<36x64xbf16>
    %c0_54 = arith.constant 0 : index
    %c0_55 = arith.constant 0 : index
    %87 = vector.load %arg30[%c0_54, %c0_55] : memref<36x64xbf16, #tpu.memory_space<vmem>>, vector<36x64xbf16>
    tpu.vector_store %arg30[%c0_54, %c0_55], %86 {strides = array<i32>} : memref<36x64xbf16, #tpu.memory_space<vmem>>, vector<36x64xbf16>,
    %88 = arith.truncf %76 : vector<4x64xf32> to vector<4x64xbf16>
    %c7 = arith.constant 7 : index
    %c0_56 = arith.constant 0 : index
    %89 = vector.load %arg30[%c7, %c0_56] : memref<36x64xbf16, #tpu.memory_space<vmem>>, vector<4x64xbf16>
    tpu.vector_store %arg30[%c7, %c0_56], %88 {strides = array<i32>} : memref<36x64xbf16, #tpu.memory_space<vmem>>, vector<4x64xbf16>,
    %90 = arith.truncf %79 : vector<4x64xf32> to vector<4x64xbf16>
    %c13 = arith.constant 13 : index
    %c0_57 = arith.constant 0 : index
    %91 = vector.load %arg30[%c13, %c0_57] : memref<36x64xbf16, #tpu.memory_space<vmem>>, vector<4x64xbf16>
    tpu.vector_store %arg30[%c13, %c0_57], %90 {strides = array<i32>} : memref<36x64xbf16, #tpu.memory_space<vmem>>, vector<4x64xbf16>,
    %92 = arith.truncf %82 : vector<4x64xf32> to vector<4x64xbf16>
    %c19 = arith.constant 19 : index
    %c0_58 = arith.constant 0 : index
    %93 = vector.load %arg30[%c19, %c0_58] : memref<36x64xbf16, #tpu.memory_space<vmem>>, vector<4x64xbf16>
    tpu.vector_store %arg30[%c19, %c0_58], %92 {strides = array<i32>} : memref<36x64xbf16, #tpu.memory_space<vmem>>, vector<4x64xbf16>,
    %94 = arith.truncf %85 : vector<4x64xf32> to vector<4x64xbf16>
    %c25 = arith.constant 25 : index
    %c0_59 = arith.constant 0 : index
    %95 = vector.load %arg30[%c25, %c0_59] : memref<36x64xbf16, #tpu.memory_space<vmem>>, vector<4x64xbf16>
    tpu.vector_store %arg30[%c25, %c0_59], %94 {strides = array<i32>} : memref<36x64xbf16, #tpu.memory_space<vmem>>, vector<4x64xbf16>,
    %c0_60 = arith.constant 0 : index
    %c0_61 = arith.constant 0 : index
    %96 = vector.load %arg30[%c0_60, %c0_61] : memref<36x64xbf16, #tpu.memory_space<vmem>>, vector<22x64xbf16>
    %c1_62 = arith.constant 1 : index
    %c0_63 = arith.constant 0 : index
    %97 = vector.load %arg30[%c1_62, %c0_63] : memref<36x64xbf16, #tpu.memory_space<vmem>>, vector<22x64xbf16>
    %c2_64 = arith.constant 2 : index
    %c0_65 = arith.constant 0 : index
    %98 = vector.load %arg30[%c2_64, %c0_65] : memref<36x64xbf16, #tpu.memory_space<vmem>>, vector<22x64xbf16>
    %c6 = arith.constant 6 : index
    %c0_66 = arith.constant 0 : index
    %99 = vector.load %arg30[%c6, %c0_66] : memref<36x64xbf16, #tpu.memory_space<vmem>>, vector<22x64xbf16>
    %c7_67 = arith.constant 7 : index
    %c0_68 = arith.constant 0 : index
    %100 = vector.load %arg30[%c7_67, %c0_68] : memref<36x64xbf16, #tpu.memory_space<vmem>>, vector<22x64xbf16>
    %c8 = arith.constant 8 : index
    %c0_69 = arith.constant 0 : index
    %101 = vector.load %arg30[%c8, %c0_69] : memref<36x64xbf16, #tpu.memory_space<vmem>>, vector<22x64xbf16>
    %c12_70 = arith.constant 12 : index
    %c0_71 = arith.constant 0 : index
    %102 = vector.load %arg30[%c12_70, %c0_71] : memref<36x64xbf16, #tpu.memory_space<vmem>>, vector<22x64xbf16>
    %c13_72 = arith.constant 13 : index
    %c0_73 = arith.constant 0 : index
    %103 = vector.load %arg30[%c13_72, %c0_73] : memref<36x64xbf16, #tpu.memory_space<vmem>>, vector<22x64xbf16>
    %c14 = arith.constant 14 : index
    %c0_74 = arith.constant 0 : index
    %104 = vector.load %arg30[%c14, %c0_74] : memref<36x64xbf16, #tpu.memory_space<vmem>>, vector<22x64xbf16>
    %105 = tpu.concatenate %96, %97, %98, %99, %100, %101, %102, %103, %104 in 1 : vector<22x64xbf16>, vector<22x64xbf16>, vector<22x64xbf16>, vector<22x64xbf16>, vector<22x64xbf16>, vector<22x64xbf16>, vector<22x64xbf16>, vector<22x64xbf16>, vector<22x64xbf16> -> vector<22x576xbf16>
    %c0_75 = arith.constant 0 : index
    %c0_76 = arith.constant 0 : index
    %106 = vector.load %arg6[%c0_75, %c0_76] : memref<576x128xbf16, #tpu.memory_space<vmem>>, vector<576x128xbf16>
    %cst_77 = arith.constant dense<0.000000e+00> : vector<22x128xf32>
    %107 = tpu.matmul %105, %106, %cst_77 {dimension_numbers = #tpu.dot_dimension_numbers<[1], [0], [0], [1], [0, 0, 1, 1], [], []>} : vector<22x576xbf16>, vector<576x128xbf16>, vector<22x128xf32> -> vector<22x128xf32>
    %108 = vector.extract_strided_slice %107 {offsets = [0, 0], sizes = [16, 128], strides = [1, 1]} : vector<22x128xf32> to vector<16x128xf32>
    %109 = vector.extract_strided_slice %107 {offsets = [6, 0], sizes = [16, 128], strides = [1, 1]} : vector<22x128xf32> to vector<16x128xf32>
    %110 = arith.maximumf %108, %109 : vector<16x128xf32>
    %111 = vector.extract_strided_slice %110 {offsets = [0, 0], sizes = [15, 128], strides = [1, 1]} : vector<16x128xf32> to vector<15x128xf32>
    %112 = vector.extract_strided_slice %110 {offsets = [1, 0], sizes = [15, 128], strides = [1, 1]} : vector<16x128xf32> to vector<15x128xf32>
    %113 = arith.maximumf %111, %112 : vector<15x128xf32>
    %c0_78 = arith.constant 0 : index
    %c0_79 = arith.constant 0 : index
    %114 = vector.load %arg28[%c0_78, %c0_79] : memref<16x128xf32, #tpu.memory_space<vmem>>, vector<15x128xf32>
    tpu.vector_store %arg28[%c0_78, %c0_79], %113 {strides = array<i32>} : memref<16x128xf32, #tpu.memory_space<vmem>>, vector<15x128xf32>,
    %c0_80 = arith.constant 0 : index
    %c0_81 = arith.constant 0 : index
    %115 = vector.load %arg7[%c0_80, %c0_81] : memref<1x128xf32, #tpu.memory_space<vmem>>, vector<1x128xf32>
    %c0_82 = arith.constant 0 : index
    %c0_83 = arith.constant 0 : index
    %116 = tpu.strided_load %arg28[%c0_82, %c0_83] {strides = array<i32: 2, 1>} : memref<16x128xf32, #tpu.memory_space<vmem>>, vector<2x128xf32>
    %117 = vector.broadcast %115 : vector<1x128xf32> to vector<2x128xf32>
    %118 = arith.addf %116, %117 : vector<2x128xf32>
    %c12_84 = arith.constant 12 : index
    %c0_85 = arith.constant 0 : index
    %119 = tpu.strided_load %arg28[%c12_84, %c0_85] {strides = array<i32: 2, 1>} : memref<16x128xf32, #tpu.memory_space<vmem>>, vector<2x128xf32>
    %120 = vector.broadcast %115 : vector<1x128xf32> to vector<2x128xf32>
    %121 = arith.addf %119, %120 : vector<2x128xf32>
    %122 = vector.extract_strided_slice %118 {offsets = [0, 0], sizes = [1, 128], strides = [1, 1]} : vector<2x128xf32> to vector<1x128xf32>
    %123 = vector.extract_strided_slice %118 {offsets = [1, 0], sizes = [1, 128], strides = [1, 1]} : vector<2x128xf32> to vector<1x128xf32>
    %124 = vector.extract_strided_slice %121 {offsets = [0, 0], sizes = [1, 128], strides = [1, 1]} : vector<2x128xf32> to vector<1x128xf32>
    %125 = vector.extract_strided_slice %121 {offsets = [1, 0], sizes = [1, 128], strides = [1, 1]} : vector<2x128xf32> to vector<1x128xf32>
    %126 = tpu.concatenate %122, %123, %124, %125 in 1 : vector<1x128xf32>, vector<1x128xf32>, vector<1x128xf32>, vector<1x128xf32> -> vector<1x512xf32>
    %c0_86 = arith.constant 0 : index
    %c0_87 = arith.constant 0 : index
    %127 = vector.load %arg8[%c0_86, %c0_87] : memref<16x512xf32, #tpu.memory_space<vmem>>, vector<16x512xf32>
    %128 = vector.broadcast %126 : vector<1x512xf32> to vector<16x512xf32>
    %129 = arith.mulf %128, %127 : vector<16x512xf32>
    %c0_88 = arith.constant 0 : index
    %c0_89 = arith.constant 0 : index
    %130 = vector.load %arg9[%c0_88, %c0_89] : memref<16x512xf32, #tpu.memory_space<vmem>>, vector<16x512xf32>
    %131 = arith.addf %129, %130 : vector<16x512xf32>
    %132 = arith.negf %131 : vector<16x512xf32>
    %133 = math.exp %132 : vector<16x512xf32>
    %cst_90 = arith.constant 1.000000e+00 : f32
    %134 = vector.broadcast %cst_90 : f32 to vector<16x512xf32>
    %135 = arith.addf %134, %133 : vector<16x512xf32>
    %136 = arith.divf %134, %135 : vector<16x512xf32>
    %137 = arith.mulf %131, %136 : vector<16x512xf32>
    %c0_91 = arith.constant 0 : index
    %c0_92 = arith.constant 0 : index
    %138 = vector.load %arg10[%c0_91, %c0_92] : memref<16x512xf32, #tpu.memory_space<vmem>>, vector<16x512xf32>
    %139 = arith.mulf %137, %138 : vector<16x512xf32>
    %cst_93 = arith.constant dense<0.000000e+00> : vector<512xf32>
    %140 = vector.multi_reduction <add>, %139, %cst_93 [0] : vector<16x512xf32> to vector<512xf32>
    %141 = vector.shape_cast %140 : vector<512xf32> to vector<1x512xf32>
    %c0_94 = arith.constant 0 : index
    %c0_95 = arith.constant 0 : index
    %142 = vector.load %arg11[%c0_94, %c0_95] : memref<1x512xf32, #tpu.memory_space<vmem>>, vector<1x512xf32>
    %143 = arith.addf %141, %142 : vector<1x512xf32>
    %144 = arith.truncf %143 : vector<1x512xf32> to vector<1x512xbf16>
    %c0_96 = arith.constant 0 : index
    %c0_97 = arith.constant 0 : index
    %145 = vector.load %arg12[%c0_96, %c0_97] : memref<512x256xbf16, #tpu.memory_space<vmem>>, vector<512x256xbf16>
    %cst_98 = arith.constant dense<0.000000e+00> : vector<1x256xf32>
    %146 = tpu.matmul %144, %145, %cst_98 {dimension_numbers = #tpu.dot_dimension_numbers<[1], [0], [0], [1], [0, 0, 1, 1], [], []>} : vector<1x512xbf16>, vector<512x256xbf16>, vector<1x256xf32> -> vector<1x256xf32>
    %147 = arith.negf %146 : vector<1x256xf32>
    %148 = math.exp %147 : vector<1x256xf32>
    %cst_99 = arith.constant 1.000000e+00 : f32
    %149 = vector.broadcast %cst_99 : f32 to vector<1x256xf32>
    %150 = arith.addf %149, %148 : vector<1x256xf32>
    %151 = arith.divf %149, %150 : vector<1x256xf32>
    %152 = arith.mulf %146, %151 : vector<1x256xf32>
    %c0_100 = arith.constant 0 : index
    %c0_101 = arith.constant 0 : index
    %153 = vector.load %arg13[%c0_100, %c0_101] : memref<16x256xf32, #tpu.memory_space<vmem>>, vector<16x256xf32>
    %154 = vector.broadcast %152 : vector<1x256xf32> to vector<16x256xf32>
    %155 = arith.mulf %154, %153 : vector<16x256xf32>
    %c0_102 = arith.constant 0 : index
    %c0_103 = arith.constant 0 : index
    %156 = vector.load %arg14[%c0_102, %c0_103] : memref<16x256xf32, #tpu.memory_space<vmem>>, vector<16x256xf32>
    %157 = arith.addf %155, %156 : vector<16x256xf32>
    %158 = arith.negf %157 : vector<16x256xf32>
    %159 = math.exp %158 : vector<16x256xf32>
    %cst_104 = arith.constant 1.000000e+00 : f32
    %160 = vector.broadcast %cst_104 : f32 to vector<16x256xf32>
    %161 = arith.addf %160, %159 : vector<16x256xf32>
    %162 = arith.divf %160, %161 : vector<16x256xf32>
    %163 = arith.mulf %157, %162 : vector<16x256xf32>
    %c0_105 = arith.constant 0 : index
    %c0_106 = arith.constant 0 : index
    %164 = vector.load %arg15[%c0_105, %c0_106] : memref<16x256xf32, #tpu.memory_space<vmem>>, vector<16x256xf32>
    %165 = arith.mulf %163, %164 : vector<16x256xf32>
    %cst_107 = arith.constant dense<0.000000e+00> : vector<256xf32>
    %166 = vector.multi_reduction <add>, %165, %cst_107 [0] : vector<16x256xf32> to vector<256xf32>
    %167 = vector.shape_cast %166 : vector<256xf32> to vector<1x256xf32>
    %c0_108 = arith.constant 0 : index
    %c0_109 = arith.constant 0 : index
    %168 = vector.load %arg16[%c0_108, %c0_109] : memref<1x256xf32, #tpu.memory_space<vmem>>, vector<1x256xf32>
    %169 = arith.addf %167, %168 : vector<1x256xf32>
    %170 = arith.truncf %169 : vector<1x256xf32> to vector<1x256xbf16>
    %c0_110 = arith.constant 0 : index
    %c0_111 = arith.constant 0 : index
    %171 = vector.load %arg17[%c0_110, %c0_111] : memref<256x64xbf16, #tpu.memory_space<vmem>>, vector<256x64xbf16>
    %cst_112 = arith.constant dense<0.000000e+00> : vector<1x64xf32>
    %172 = tpu.matmul %170, %171, %cst_112 {dimension_numbers = #tpu.dot_dimension_numbers<[1], [0], [0], [1], [0, 0, 1, 1], [], []>} : vector<1x256xbf16>, vector<256x64xbf16>, vector<1x64xf32> -> vector<1x64xf32>
    %173 = arith.negf %172 : vector<1x64xf32>
    %174 = math.exp %173 : vector<1x64xf32>
    %cst_113 = arith.constant 1.000000e+00 : f32
    %175 = vector.broadcast %cst_113 : f32 to vector<1x64xf32>
    %176 = arith.addf %175, %174 : vector<1x64xf32>
    %177 = arith.divf %175, %176 : vector<1x64xf32>
    %178 = arith.mulf %172, %177 : vector<1x64xf32>
    %c0_114 = arith.constant 0 : index
    %c0_115 = arith.constant 0 : index
    %179 = vector.load %arg18[%c0_114, %c0_115] : memref<16x64xf32, #tpu.memory_space<vmem>>, vector<16x64xf32>
    %180 = vector.broadcast %178 : vector<1x64xf32> to vector<16x64xf32>
    %181 = arith.mulf %180, %179 : vector<16x64xf32>
    %c0_116 = arith.constant 0 : index
    %c0_117 = arith.constant 0 : index
    %182 = vector.load %arg19[%c0_116, %c0_117] : memref<16x64xf32, #tpu.memory_space<vmem>>, vector<16x64xf32>
    %183 = arith.addf %181, %182 : vector<16x64xf32>
    %184 = arith.negf %183 : vector<16x64xf32>
    %185 = math.exp %184 : vector<16x64xf32>
    %cst_118 = arith.constant 1.000000e+00 : f32
    %186 = vector.broadcast %cst_118 : f32 to vector<16x64xf32>
    %187 = arith.addf %186, %185 : vector<16x64xf32>
    %188 = arith.divf %186, %187 : vector<16x64xf32>
    %189 = arith.mulf %183, %188 : vector<16x64xf32>
    %c0_119 = arith.constant 0 : index
    %c0_120 = arith.constant 0 : index
    %190 = vector.load %arg20[%c0_119, %c0_120] : memref<16x64xf32, #tpu.memory_space<vmem>>, vector<16x64xf32>
    %191 = arith.mulf %189, %190 : vector<16x64xf32>
    %cst_121 = arith.constant dense<0.000000e+00> : vector<64xf32>
    %192 = vector.multi_reduction <add>, %191, %cst_121 [0] : vector<16x64xf32> to vector<64xf32>
    %193 = vector.shape_cast %192 : vector<64xf32> to vector<1x64xf32>
    %c0_122 = arith.constant 0 : index
    %c0_123 = arith.constant 0 : index
    %194 = vector.load %arg21[%c0_122, %c0_123] : memref<1x64xf32, #tpu.memory_space<vmem>>, vector<1x64xf32>
    %195 = arith.addf %193, %194 : vector<1x64xf32>
    %196 = arith.truncf %195 : vector<1x64xf32> to vector<1x64xbf16>
    %c0_124 = arith.constant 0 : index
    %c0_125 = arith.constant 0 : index
    %197 = vector.load %arg22[%c0_124, %c0_125] : memref<64x16xbf16, #tpu.memory_space<vmem>>, vector<64x16xbf16>
    %cst_126 = arith.constant dense<0.000000e+00> : vector<1x16xf32>
    %198 = tpu.matmul %196, %197, %cst_126 {dimension_numbers = #tpu.dot_dimension_numbers<[1], [0], [0], [1], [0, 0, 1, 1], [], []>} : vector<1x64xbf16>, vector<64x16xbf16>, vector<1x16xf32> -> vector<1x16xf32>
    %199 = arith.truncf %198 : vector<1x16xf32> to vector<1x16xbf16>
    %c0_127 = arith.constant 0 : index
    %c0_128 = arith.constant 0 : index
    %200 = vector.load %arg23[%c0_127, %c0_128] : memref<16x2xbf16, #tpu.memory_space<vmem>>, vector<16x2xbf16>
    %cst_129 = arith.constant dense<0.000000e+00> : vector<1x2xf32>
    %201 = tpu.matmul %199, %200, %cst_129 {dimension_numbers = #tpu.dot_dimension_numbers<[1], [0], [0], [1], [0, 0, 1, 1], [], []>} : vector<1x16xbf16>, vector<16x2xbf16>, vector<1x2xf32> -> vector<1x2xf32>
    %c0_130 = arith.constant 0 : index
    %c0_131 = arith.constant 0 : index
    %202 = vector.load %arg24[%c0_130, %c0_131] : memref<1x2xf32, #tpu.memory_space<vmem>>, vector<1x2xf32>
    %203 = arith.addf %201, %202 : vector<1x2xf32>
    %c0_132 = arith.constant 0 : index
    %c0_133 = arith.constant 0 : index
    %c0_134 = arith.constant 0 : index
    %204 = vector.load %arg25[%c0_132, %c0_133, %c0_134] : memref<1x1x2xf32, #tpu.memory_space<vmem>>, vector<1x1x2xf32>
    %205 = vector.shape_cast %204 : vector<1x1x2xf32> to vector<1x2xf32>
    %206 = vector.shape_cast %203 : vector<1x2xf32> to vector<1x1x2xf32>
    tpu.vector_store %arg25[%c0_132, %c0_133, %c0_134], %206 {strides = array<i32>} : memref<1x1x2xf32, #tpu.memory_space<vmem>>, vector<1x1x2xf32>,
    return
  }
  func.func @transform_0(%arg0: i32) -> (i32, i32, i32) {
    %c0_i32 = arith.constant 0 : i32
    %c0_i32_0 = arith.constant 0 : i32
    %c0_i32_1 = arith.constant 0 : i32
    return %arg0, %c0_i32, %c0_i32_0 : i32, i32, i32
  }
  func.func @transform_1(%arg0: i32) -> (i32, i32) {
    %c0_i32 = arith.constant 0 : i32
    %c0_i32_0 = arith.constant 0 : i32
    %c0_i32_1 = arith.constant 0 : i32
    return %c0_i32, %c0_i32_0 : i32, i32
  }
  func.func @transform_2(%arg0: i32) -> (i32, i32) {
    %c0_i32 = arith.constant 0 : i32
    %c0_i32_0 = arith.constant 0 : i32
    %c0_i32_1 = arith.constant 0 : i32
    return %c0_i32, %c0_i32_0 : i32, i32
  }
  func.func @transform_3(%arg0: i32) -> (i32, i32) {
    %c0_i32 = arith.constant 0 : i32
    %c0_i32_0 = arith.constant 0 : i32
    %c0_i32_1 = arith.constant 0 : i32
    return %c0_i32, %c0_i32_0 : i32, i32
  }
  func.func @transform_4(%arg0: i32) -> (i32, i32) {
    %c0_i32 = arith.constant 0 : i32
    %c0_i32_0 = arith.constant 0 : i32
    %c0_i32_1 = arith.constant 0 : i32
    return %c0_i32, %c0_i32_0 : i32, i32
  }
  func.func @transform_5(%arg0: i32) -> (i32, i32) {
    %c0_i32 = arith.constant 0 : i32
    %c0_i32_0 = arith.constant 0 : i32
    %c0_i32_1 = arith.constant 0 : i32
    return %c0_i32, %c0_i32_0 : i32, i32
  }
  func.func @transform_6(%arg0: i32) -> (i32, i32) {
    %c0_i32 = arith.constant 0 : i32
    %c0_i32_0 = arith.constant 0 : i32
    %c0_i32_1 = arith.constant 0 : i32
    return %c0_i32, %c0_i32_0 : i32, i32
  }
  func.func @transform_7(%arg0: i32) -> (i32, i32) {
    %c0_i32 = arith.constant 0 : i32
    %c0_i32_0 = arith.constant 0 : i32
    %c0_i32_1 = arith.constant 0 : i32
    return %c0_i32, %c0_i32_0 : i32, i32
  }
  func.func @transform_8(%arg0: i32) -> (i32, i32) {
    %c0_i32 = arith.constant 0 : i32
    %c0_i32_0 = arith.constant 0 : i32
    %c0_i32_1 = arith.constant 0 : i32
    return %c0_i32, %c0_i32_0 : i32, i32
  }
  func.func @transform_9(%arg0: i32) -> (i32, i32) {
    %c0_i32 = arith.constant 0 : i32
    %c0_i32_0 = arith.constant 0 : i32
    %c0_i32_1 = arith.constant 0 : i32
    return %c0_i32, %c0_i32_0 : i32, i32
  }
  func.func @transform_10(%arg0: i32) -> (i32, i32) {
    %c0_i32 = arith.constant 0 : i32
    %c0_i32_0 = arith.constant 0 : i32
    %c0_i32_1 = arith.constant 0 : i32
    return %c0_i32, %c0_i32_0 : i32, i32
  }
  func.func @transform_11(%arg0: i32) -> (i32, i32) {
    %c0_i32 = arith.constant 0 : i32
    %c0_i32_0 = arith.constant 0 : i32
    %c0_i32_1 = arith.constant 0 : i32
    return %c0_i32, %c0_i32_0 : i32, i32
  }
  func.func @transform_12(%arg0: i32) -> (i32, i32) {
    %c0_i32 = arith.constant 0 : i32
    %c0_i32_0 = arith.constant 0 : i32
    %c0_i32_1 = arith.constant 0 : i32
    return %c0_i32, %c0_i32_0 : i32, i32
  }
  func.func @transform_13(%arg0: i32) -> (i32, i32) {
    %c0_i32 = arith.constant 0 : i32
    %c0_i32_0 = arith.constant 0 : i32
    %c0_i32_1 = arith.constant 0 : i32
    return %c0_i32, %c0_i32_0 : i32, i32
  }
  func.func @transform_14(%arg0: i32) -> (i32, i32) {
    %c0_i32 = arith.constant 0 : i32
    %c0_i32_0 = arith.constant 0 : i32
    %c0_i32_1 = arith.constant 0 : i32
    return %c0_i32, %c0_i32_0 : i32, i32
  }
  func.func @transform_15(%arg0: i32) -> (i32, i32) {
    %c0_i32 = arith.constant 0 : i32
    %c0_i32_0 = arith.constant 0 : i32
    %c0_i32_1 = arith.constant 0 : i32
    return %c0_i32, %c0_i32_0 : i32, i32
  }
  func.func @transform_16(%arg0: i32) -> (i32, i32) {
    %c0_i32 = arith.constant 0 : i32
    %c0_i32_0 = arith.constant 0 : i32
    %c0_i32_1 = arith.constant 0 : i32
    return %c0_i32, %c0_i32_0 : i32, i32
  }
  func.func @transform_17(%arg0: i32) -> (i32, i32) {
    %c0_i32 = arith.constant 0 : i32
    %c0_i32_0 = arith.constant 0 : i32
    %c0_i32_1 = arith.constant 0 : i32
    return %c0_i32, %c0_i32_0 : i32, i32
  }
  func.func @transform_18(%arg0: i32) -> (i32, i32) {
    %c0_i32 = arith.constant 0 : i32
    %c0_i32_0 = arith.constant 0 : i32
    %c0_i32_1 = arith.constant 0 : i32
    return %c0_i32, %c0_i32_0 : i32, i32
  }
  func.func @transform_19(%arg0: i32) -> (i32, i32) {
    %c0_i32 = arith.constant 0 : i32
    %c0_i32_0 = arith.constant 0 : i32
    %c0_i32_1 = arith.constant 0 : i32
    return %c0_i32, %c0_i32_0 : i32, i32
  }
  func.func @transform_20(%arg0: i32) -> (i32, i32) {
    %c0_i32 = arith.constant 0 : i32
    %c0_i32_0 = arith.constant 0 : i32
    %c0_i32_1 = arith.constant 0 : i32
    return %c0_i32, %c0_i32_0 : i32, i32
  }
  func.func @transform_21(%arg0: i32) -> (i32, i32) {
    %c0_i32 = arith.constant 0 : i32
    %c0_i32_0 = arith.constant 0 : i32
    %c0_i32_1 = arith.constant 0 : i32
    return %c0_i32, %c0_i32_0 : i32, i32
  }
  func.func @transform_22(%arg0: i32) -> (i32, i32) {
    %c0_i32 = arith.constant 0 : i32
    %c0_i32_0 = arith.constant 0 : i32
    %c0_i32_1 = arith.constant 0 : i32
    return %c0_i32, %c0_i32_0 : i32, i32
  }
  func.func @transform_23(%arg0: i32) -> (i32, i32) {
    %c0_i32 = arith.constant 0 : i32
    %c0_i32_0 = arith.constant 0 : i32
    %c0_i32_1 = arith.constant 0 : i32
    return %c0_i32, %c0_i32_0 : i32, i32
  }
  func.func @transform_24(%arg0: i32) -> (i32, i32, i32) {
    %c0_i32 = arith.constant 0 : i32
    %c0_i32_0 = arith.constant 0 : i32
    %c0_i32_1 = arith.constant 0 : i32
    return %arg0, %c0_i32, %c0_i32_0 : i32, i32, i32
  }
}

</mosaic_0001>

<bundles_post_ra>
// kernel: kan_forward.1
= control target key start
LH: loop header
LB: loop body
LE: loop exit
PB: predicated region body
PF: predicated region fallthrough
CT: control target
= control target key end

     0   :  { %s6946_s0 = inlined_call_operand.vmem [shape: bf16[2,286,27], index: 0, kind: input, shape index: {}]   ;;  %s6947_s1 = inlined_call_operand.vmem [shape: bf16[27,32], index: 1, kind: input, shape index: {}]   ;;  %s6948_s2 = inlined_call_operand.vmem [shape: f32[1,32], index: 2, kind: input, shape index: {}]   ;;  %s6949_s3 = inlined_call_operand.vmem [shape: bf16[288,64], index: 3, kind: input, shape index: {}]   ;;  %s6950_s4 = inlined_call_operand.vmem [shape: f32[1,64], index: 4, kind: input, shape index: {}]   ;;  %s6951_s5 = inlined_call_operand.vmem [shape: bf16[576,128], index: 5, kind: input, shape index: {}]   ;;  %s6952_s6 = inlined_call_operand.vmem [shape: f32[1,128], index: 6, kind: input, shape index: {}]   ;;  %s6953_s7 = inlined_call_operand.vmem [shape: f32[16,512], index: 7, kind: input, shape index: {}]   ;;  %s6954_s8 = inlined_call_operand.vmem [shape: f32[16,512], index: 8, kind: input, shape index: {}]   ;;  %s6955_s9 = inlined_call_operand.vmem [shape: f32[16,512], index: 9, kind: input, shape index: {}]   ;;  %s6956_s10 = inlined_call_operand.vmem [shape: f32[1,512], index: 10, kind: input, shape index: {}]   ;;  %s6957_s11 = inlined_call_operand.vmem [shape: bf16[512,256], index: 11, kind: input, shape index: {}]   ;;  %s6958_s12 = inlined_call_operand.vmem [shape: f32[16,256], index: 12, kind: input, shape index: {}]   ;;  %s6959_s13 = inlined_call_operand.vmem [shape: f32[16,256], index: 13, kind: input, shape index: {}]   ;;  %s6960_s14 = inlined_call_operand.vmem [shape: f32[16,256], index: 14, kind: input, shape index: {}]   ;;  %s6961_s15 = inlined_call_operand.vmem [shape: f32[1,256], index: 15, kind: input, shape index: {}]   ;;  %s6962_s16 = inlined_call_operand.vmem [shape: bf16[256,64], index: 16, kind: input, shape index: {}]   ;;  %s6963_s17 = inlined_call_operand.vmem [shape: f32[16,64], index: 17, kind: input, shape index: {}]   ;;  %s6964_s18 = inlined_call_operand.vmem [shape: f32[16,64], index: 18, kind: input, shape index: {}]   ;;  %s6965_s19 = inlined_call_operand.vmem [shape: f32[16,64], index: 19, kind: input, shape index: {}]   ;;  %s6966_s20 = inlined_call_operand.vmem [shape: f32[1,64], index: 20, kind: input, shape index: {}]   ;;  %s6967_s21 = inlined_call_operand.vmem [shape: bf16[64,16], index: 21, kind: input, shape index: {}]   ;;  %s6968_s22 = inlined_call_operand.vmem [shape: bf16[16,2], index: 22, kind: input, shape index: {}]   ;;  %s6969_s23 = inlined_call_operand.vmem [shape: f32[1,2], index: 23, kind: input, shape index: {}]   ;;  %s6970_s24 = inlined_call_operand.hbm [shape: f32[2,1,2], index: 24, kind: output, shape index: {}]  }
   0x1   :  { %6996 = sst [smem:[#allocation17_spill]] %s6946_s0 }
   0x2   :  { %6997 = sst [smem:[#allocation18_spill]] %s6947_s1 }
   0x3   :  { %6998 = sst [smem:[#allocation19_spill]] %s6948_s2 }
   0x4   :  { %6999 = sst [smem:[#allocation20_spill]] %s6949_s3 }
   0x5   :  { %7000 = sst [smem:[#allocation21_spill]] %s6950_s4 }
   0x6   :  { %7001 = sst [smem:[#allocation22_spill]] %s6951_s5 }
   0x7   :  { %7002 = sst [smem:[#allocation23_spill]] %s6952_s6 }
   0x8   :  { %7003 = sst [smem:[#allocation24_spill]] %s6953_s7 }
   0x9   :  { %7004 = sst [smem:[#allocation25_spill]] %s6954_s8 }
   0xa   :  { %7005 = sst [smem:[#allocation26_spill]] %s6970_s24 }
   0xb   :  { %29 = vsyncpa [#allocation8], 0 }
   0xc   :  { %31 = vsyncpa [#allocation8 + $0x1], 0  ;;  %s5516_s5 = smov 0   ;;  %s5518_s26 = smov 0  }
   0xd   :  { %s5520_s27 = smov 0   ;;  %s5522_s28 = smov 0  }
   0xe LB: > { %7006 = sst [smem:[#allocation10_spill]] %s5369_s5  ;;  %s5537_s6 = sadd.s32 4294967295, %s5381_s28   ;;  %s5381_s28 = sphi %s5522_s28, %s7101_s28   ;;  %s5377_s27 = sphi %s5520_s27, %s7103_s27   ;;  %s5373_s26 = sphi %s5518_s26, %s7105_s26   ;;  %s5369_s5 = sphi %s5516_s5, %s7104_s5  }
   0xf   : > { %7007 = sst [smem:[#allocation11_spill]] %s5377_s27  ;;  %s4448_s2 = sadd.s32 4294967294, %s5381_s28  }
  0x10   : > { %7008 = sst [smem:[#allocation12_spill]] %s5381_s28  ;;  %s5541_s29 = sadd.s32 1, %s5381_s28  }
  0x11   : > { %7009 = sst [smem:[#allocation13_spill]] %s5541_s29  ;;  %s553_s0 = sadd.s32 1, %s5377_s27 }
  0x12   : > { %s550_s7 = ssub.s32 %s5381_s28, %s5541_s29  ;;  %p563_p0 = scmp.ne.s32.totalorder %s5377_s27, %s5373_s26 }
  0x13   : > { %p551_p1 = scmp.eq.s32.totalorder %s550_s7, 0  ;;  %p564_p2 = scmp.eq.s32.totalorder %s5537_s6, 1 }
  0x14   : > { %p569_p3 = scmp.ne.s32.totalorder %s5373_s26, %s5369_s5  ;;  %p570_p4 = scmp.eq.s32.totalorder %s4448_s2, 1 }
  0x15   : > { %s5552_s30 = scalar_select %p551_p1, %s5377_s27, %s553_s0  }
  0x16   : > { %p5554_p5 = por %p564_p2, %p563_p0  ;;  %p5558_p6 = por %p570_p4, %p569_p3 }
  0x17   : > { %7010 = sst [smem:[#allocation14_spill]] %s5552_s30  ;;  %p4451_p7 = scmp.ge.s32.totalorder %s5381_s28, 1 }
  0x18   : > { %s7011_s3 = scalar_select %p5554_p5, 1, 0 }
  0x19   : > { %s7013_s25 = scalar_select %p5558_p6, 1, 0 }
  0x1a   : > { %7012 = sst [smem:[#allocation15_spill]] %s7011_s3  ;;  %p665_p8 = scmp.lt.s32.totalorder %s5381_s28, 3 }
  0x1b   : > { %7014 = sst [smem:[#allocation16_spill]] %s7013_s25 }
  0x1c   : > { %p666_p9 = pnand %p4451_p7, %p665_p8 }
  0x1d   : > { %s7015_s1 = sld [smem:[#allocation18_spill]] (!%p666_p9)  ;;  %vm6977_vm0 = vcmask (!%p666_p9), 1044480   ;;  %vm6978_vm1 = vcmask (!%p666_p9), 1045504   ;;  %p730_p10 = scmp.lt.s32.totalorder (!%p666_p9), %s5537_s6, 1  ;;  %vm877_vm2 = vcmask (!%p666_p9), 220160   ;;  %v5383_v2 = vmov (!%p666_p9), 65535  }
  0x1e   : > { %669 = sbr.rel (%p666_p9) target bundleno = 2363 (0x93b), region = 116  ;;  %v934_v3 = vsel (!%p666_p9), %vm6977_vm0, 4294967295, %v5383_v2  ;;  %s7016_s0 = sld [smem:[#allocation17_spill]] (!%p666_p9)  ;;  %vm6979_vm3 = vcmask (!%p666_p9), 257024   ;;  %v5384_v24 = vmov (!%p666_p9), 0   ;;  %vm1534_vm4 = vcmask (!%p666_p9), 254976  }
  0x1f   : > { %v935_v4 = vsel (!%p666_p9), %vm6978_vm1, %v934_v3, 0  ;;  %1524 = vst.msk [vmem:[#allocation5 + $0x8] sm:$0xf] (!%p666_p9), %vm6979_vm3, %v5384_v24  ;;  %1525 = vst.msk [vmem:[#allocation5 + $0xc] sm:$0xf] (!%p666_p9), %vm6979_vm3, %v5384_v24  ;;  %vm6980_vm5 = vcmask (!%p666_p9), 1046528  }
  0x20   : > { %1526 = vst.msk [vmem:[#allocation5 + $0x10] sm:$0xf] (!%p666_p9), %vm6979_vm3, %v5384_v24  ;;  %1529 = vst.msk [vmem:[#allocation5 + $0x1c] sm:$0xf] (!%p666_p9), %vm6979_vm3, %v5384_v24  ;;  %vm6981_vm6 = vcmask (!%p666_p9), 261120   ;;  %vm1489_vm7 = vcmask (!%p666_p9), 256000  }
  0x21   : > { %1530 = vst.msk [vmem:[#allocation5 + $0x20] sm:$0xf] (!%p666_p9), %vm6979_vm3, %v5384_v24  ;;  %1531 = vst.msk [vmem:[#allocation5 + $0x24] sm:$0xf] (!%p666_p9), %vm6979_vm3, %v5384_v24  ;;  %vm1558_vm8 = vsmask.f32 (!%p666_p9), 1280 }
  0x22   : > { %1532 = vst.msk [vmem:[#allocation5 + $0x28] sm:$0xf] (!%p666_p9), %vm6979_vm3, %v5384_v24  ;;  %1522 = vst.msk [vmem:[#allocation5] sm:$0xf] (!%p666_p9), %vm6979_vm3, %v5384_v24  ;;  %vm1578_vm9 = vcmask (!%p666_p9), 257026   ;;  %vm1605_vm11 = vcmask (!%p666_p9), 257027  }
  0x23   : > { %v5031_v0 = vld [vmem:[%s7015_s1] sm:$0xff] (!%p666_p9)   ;;  %v5032_v1 = vld [vmem:[%s7015_s1 + $0x8] sm:$0x3f] (!%p666_p9)   ;;  %1523 = vst.msk [vmem:[#allocation5 + $0x4] sm:$0xf] (!%p666_p9), %vm6979_vm3, %v5384_v24  ;;  %vm1551_vm14 = vcmask (!%p666_p9), 257025  }
  0x24   : > { %4882 = vmatprep.subr.bf16.mxu0 (!%p666_p9), %v5031_v0  ;;  %4976 = vmatprep.subr.bf16.mxu1 (!%p666_p9), %v5031_v0  ;;  %v937_v5 = vand.u32 (!%p666_p9), %v5032_v1, %v935_v4  ;;  %1527 = vst.msk [vmem:[#allocation5 + $0x14] sm:$0xf] (!%p666_p9), %vm6979_vm3, %v5384_v24  ;;  %1528 = vst.msk [vmem:[#allocation5 + $0x18] sm:$0xf] (!%p666_p9), %vm6979_vm3, %v5384_v24  ;;  %vm1579_vm10 = vsmask.f32 (!%p666_p9), 7946 }
  0x25   : > { %4883 = vmatpush3.bf16.msra.mxu0 %v5031_v0  ;;  %4978 = vmatpush3.bf16.msra.mxu1 %v5031_v0  ;;  %s731_s7 = scalar_select %p730_p10, %s5537_s6, 1  ;;  %1533 = vst.msk [vmem:[#allocation5 + $0x2c] sm:$0xf] %vm6979_vm3, %v5384_v24  ;;  %vm1606_vm12 = vsmask.f32 7950 }
  0x26   : > { %4884 = vmatprep.subr.bf16.mxu0 %v937_v5  ;;  %4977 = vmatprep.subr.bf16.mxu1 %v937_v5  ;;  %1535 = vst.msk [vmem:[#allocation5 + $0x30] sm:$0x3] %vm1534_vm4, %v5384_v24  ;;  %vm1585_vm13 = vsmask.f32 2304  ;;  %vm1552_vm15 = vsmask.f32 7942 }
  0x27   : > { %s4984_s8 = smul.u32 144, %s731_s7  ;;  %s7018_s7 = sld [smem:[#allocation19_spill]]  ;;  %vm1631_vm0 = vsmask.f32 7938  ;;  %vm1637_vm3 = vsmask.f32 256 }
  0x28   : > { %s5386_s4 = smov 32   ;;  %s7043_s2 = smov 64  }
  0x29   : > { %4885 = vmatpush3.bf16.msra.mxu0 %v937_v5  ;;  %4979 = vmatpush3.bf16.msra.mxu1 %v937_v5  ;;  %s5577_s1 = scalar_lea.vmem %s7016_s0, %s4984_s8  ;;  %s7017_s8 = sld [smem:[#allocation20_spill]] }
  0x2a   : > { %v5033_v6 = vld [vmem:[%s5577_s1] sm:$0xff]   ;;  %v5035_v8 = vld [vmem:[%s5577_s1 + $0x8] sm:$0xff]   ;;  %v5037_v10 = vld [vmem:[%s5577_s1 + $0x10] sm:$0xff]   ;;  %s7081_s30 = sld [smem:[#allocation21_spill]]  ;;  %s7094_s0 = sld [smem:[#allocation25_spill]] }
  0x2b   : > { %v5034_v7 = vld [vmem:[%s5577_s1 + $0x40] sm:$0xff]   ;;  %4886 = vmatprep.mubr.msk.bf16.mxu0 %vm877_vm2, %v5033_v6  ;;  %v5036_v9 = vld [vmem:[%s5577_s1 + $0x48] sm:$0xff]   ;;  %v5038_v11 = vld [vmem:[%s5577_s1 + $0x50] sm:$0xff]   ;;  %s728_s28 = sand.u32 1, %s5373_s26   ;;  %s4703_s25 = sshll.u32 %s5537_s6, 4 }
  0x2c   : > { %4902 = vmatprep.mubr.msk.bf16.mxu1 %vm877_vm2, %v5034_v7  ;;  %4887 = vmatmul.mubr.msk.bf16.vlgmr.msra.gmra.mrb[0].mxu0 %vm877_vm2, %v5035_v8  ;;  %v5039_v12 = vld [vmem:[%s5577_s1 + $0x18] sm:$0xff]   ;;  %v5041_v14 = vld [vmem:[%s5577_s1 + $0x20] sm:$0xff]   ;;  %v5043_v16 = vld [vmem:[%s5577_s1 + $0x28] sm:$0xff]   ;;  %s7096_s27 = sld [smem:[#allocation26_spill]]  ;;  %s4381_s6 = scalar_lea.sflag [#allocation8], %s728_s28 }
  0x2d   : > { %4903 = vmatmul.mubr.msk.bf16.vlgmr.msra.gmra.mrb[0].mxu1 %vm877_vm2, %v5036_v9  ;;  %4890 = vmatprep.mubr.msk.bf16.mxu0 %vm877_vm2, %v5037_v10  ;;  %v5040_v13 = vld [vmem:[%s5577_s1 + $0x58] sm:$0xff]   ;;  %v5042_v15 = vld [vmem:[%s5577_s1 + $0x60] sm:$0xff]   ;;  %v5044_v17 = vld [vmem:[%s5577_s1 + $0x68] sm:$0xff]   ;;  %s5390_s24 = smov [#allocation7]  }
  0x2e   : > { %4906 = vmatprep.mubr.msk.bf16.mxu1 %vm877_vm2, %v5038_v11  ;;  %v5045_v18 = vld [vmem:[%s5577_s1 + $0x30] sm:$0xff]   ;;  %v5047_v20 = vld [vmem:[%s5577_s1 + $0x38] sm:$0xff]   ;;  %v5049_v22 = vld [vmem:[%s5577_s1 + $0x80] sm:$0xff]  }
  0x2f   : > { %v5046_v19 = vld [vmem:[%s5577_s1 + $0x70] sm:$0xff]   ;;  %v5048_v21 = vld [vmem:[%s5577_s1 + $0x78] sm:$0xff]   ;;  %v5050_v23 = vld [vmem:[%s5577_s1 + $0x88] sm:$0x7f]   ;;  %s6982_s1 = smov 64  }
  0x30   : > { %v5065_v11 = vld [vmem:[%s7017_s8 + $0x40] sm:$0xff]  }
  0x31   : > { %4738 = vmatprep.subr.bf16.mxu1 %v5065_v11 }
  0x32   : > { %s7097_s29 = smov %s7096_s27  ;;  %s6904_s5 = scalar_lea.hbm %s7096_s27, %s4703_s25 }
  0x34   : > { %4891 = vmatmul.mubr.msk.bf16.gmra.mrb[4].mxu0 %vm877_vm2, %v5039_v12  ;;  %v5066_v12 = vld [vmem:[%s7017_s8] sm:$0xff]  }
  0x35   : > { %4907 = vmatmul.mubr.msk.bf16.gmra.mrb[4].mxu1 %vm877_vm2, %v5040_v13  ;;  %4894 = vmatprep.mubr.msk.bf16.mxu0 %vm877_vm2, %v5041_v14  ;;  %v5067_v13 = vld [vmem:[%s7017_s8 + $0x48] sm:$0xff]  }
  0x36   : > { %4910 = vmatprep.mubr.msk.bf16.mxu1 %vm877_vm2, %v5042_v15  ;;  %4739 = vmatpush3.bf16.msra.mxu1 %v5066_v12 }
  0x37   : > { %4740 = vmatprep.subr.bf16.mxu1 %v5067_v13 }
  0x3c   : > { %4895 = vmatmul.mubr.msk.bf16.gmra.mrb[8].mxu0 %vm877_vm2, %v5043_v16 }
  0x3d   : > { %4911 = vmatmul.mubr.msk.bf16.gmra.mrb[8].mxu1 %vm877_vm2, %v5044_v17  ;;  %4898 = vmatprep.mubr.msk.bf16.mxu0 %vm877_vm2, %v5045_v18 }
  0x3e   : > { %4914 = vmatprep.mubr.msk.bf16.mxu1 %vm877_vm2, %v5046_v19 }
  0x44   : > { %4899 = vmatmul.mubr.msk.bf16.gmra.mrb[12].mxu0 %vm877_vm2, %v5047_v20 }
  0x45   : > { %4915 = vmatmul.mubr.msk.bf16.gmra.mrb[12].mxu1 %vm877_vm2, %v5048_v21 }
  0x46   : > { %4918 = vmatprep.mubr.msk.bf16.mxu1 %vm877_vm2, %v5049_v22 }
  0x4d   : > { %4919 = vmatmul.mubr.msk.bf16.gmra.mrb[16].mxu1 %vm877_vm2, %v5050_v23  ;;  %vm1612_vm2 = vsmask.f32 3328 }
  0xff   : > { %v4888_v25 = vpop.f32.mrb[0].mxu0 }
 0x100   : > { %v973_v26 = vpop.f32.mrb[1].mxu0  ;;  %v4904_v27 = vpop.f32.mrb[0].mxu1  ;;  %v1150_v31 = vrot.slane %v4888_v25, 2 }
 0x101   : > { %v4889_v28 = vpop.f32.mrb[2].mxu0  ;;  %v1181_v29 = vrot.slane %v4904_v27, 2  ;;  %v5641_v30 = vpop.f32.mrb[1].mxu1 }
 0x102   : > { %v1151_v32 = vrot.slane %v4889_v28, 2  ;;  %v976_v33 = vpop.f32.mrb[3].mxu0  ;;  %v1177_v34 = vrot.slane %v5641_v30, 2  ;;  %v4905_v35 = vpop.f32.mrb[2].mxu1 }
 0x103   : > { %v1183_v36 = vrot.slane %v4905_v35, 2  ;;  %v1040_v37 = vpop.f32.mrb[3].mxu1 }
 0x104   : > { %v1152_v38 = vsel %vm6978_vm1, %v1150_v31, %v1151_v32  ;;  %v1179_v39 = vrot.slane %v1040_v37, 2 }
 0x105   : > { %v1251_v40 = vmax.f32 %v973_v26, %v1152_v38  ;;  %v1184_v41 = vsel %vm6978_vm1, %v1181_v29, %v1183_v36  ;;  %v5069_v38 = vld [vmem:[%s7017_s8 + $0x50] sm:$0xff]  }
 0x106   : > { %v1267_v42 = vmax.f32 %v5641_v30, %v1184_v41  ;;  %v5650_v43 = vsel %vm6978_vm1, %v1177_v34, %v1179_v39  ;;  %v5653_v44 = vsel %vm6978_vm1, %v1179_v39, %v1181_v29 }
 0x107   : > { %v5655_v45 = vpop.f32.mrb[4].mxu0  ;;  %v1320_v52 = vrot.slane %v1251_v40, 1 }
 0x108   : > { %v5657_v46 = vpop.f32.mrb[4].mxu1  ;;  %v989_v47 = vpop.f32.mrb[5].mxu0  ;;  %v1157_v53 = vrot.slane %v5655_v45, 2  ;;  %v5668_v62 = vrot.slane %v1267_v42, 1 }
 0x109   : > { %v1189_v48 = vrot.slane %v5657_v46, 2  ;;  %v1153_v49 = vrot.slane %v989_v47, 2  ;;  %v1053_v50 = vpop.f32.mrb[5].mxu1  ;;  %v5660_v51 = vpop.f32.mrb[6].mxu0 }
 0x10a   : > { %v1185_v54 = vrot.slane %v1053_v50, 2  ;;  %v1159_v55 = vrot.slane %v5660_v51, 2  ;;  %v5664_v56 = vpop.f32.mrb[6].mxu1  ;;  %v992_v57 = vpop.f32.mrb[7].mxu0 }
 0x10b   : > { %v1154_v58 = vsel %vm6978_vm1, %v1151_v32, %v1153_v49  ;;  %v1191_v59 = vrot.slane %v5664_v56, 2  ;;  %v1155_v60 = vrot.slane %v992_v57, 2  ;;  %v1056_v61 = vpop.f32.mrb[7].mxu1 }
 0x10c   : > { %v1252_v63 = vmax.f32 %v976_v33, %v1154_v58  ;;  %v1160_v0 = vsel %vm6978_vm1, %v1157_v53, %v1159_v55  ;;  %v1187_v1 = vrot.slane %v1056_v61, 2 }
 0x10d   : > { %v5671_v2 = vmax.f32 %v989_v47, %v1160_v0  ;;  %v1192_v3 = vsel %vm6978_vm1, %v1189_v48, %v1191_v59  ;;  %v1156_v4 = vsel %vm6978_vm1, %v1153_v49, %v1155_v60 }
 0x10e   : > { %v1321_v5 = vrot.slane %v1252_v63, 1  ;;  %v1271_v6 = vmax.f32 %v1053_v50, %v1192_v3  ;;  %v1253_v7 = vmax.f32 %v4888_v25, %v1156_v4  ;;  %v1188_v9 = vsel %vm6978_vm1, %v1185_v54, %v1187_v1 }
 0x10f   : > { %v1327_v8 = vrot.slane %v5671_v2, 1  ;;  %v5677_v10 = vpop.f32.mrb[8].mxu0  ;;  %v1190_v17 = vsel %vm6978_vm1, %v1187_v1, %v1189_v48  ;;  %v1269_v21 = vmax.f32 %v4904_v27, %v1188_v9  ;;  %v5068_v27 = vld [vmem:[%s7017_s8 + $0x8] sm:$0xff]  }
 0x110   : > { %v1322_v14 = vsel %vm6980_vm5, %v1320_v52, %v1321_v5  ;;  %v1359_v15 = vrot.slane %v1271_v6, 1  ;;  %v1323_v16 = vrot.slane %v1253_v7, 1  ;;  %v5690_v18 = vpop.f32.mrb[8].mxu1  ;;  %v1005_v19 = vpop.f32.mrb[9].mxu0  ;;  %v1270_v22 = vmax.f32 %v4905_v35, %v1190_v17  ;;  %4741 = vmatpush3.bf16.msra.mxu1 %v5068_v27  ;;  %v5070_v52 = vld [vmem:[%s7017_s8 + $0x10] sm:$0xff]  }
 0x111   : > { %v1421_v20 = vmax.f32 %v1251_v40, %v1322_v14  ;;  %v1069_v23 = vpop.f32.mrb[9].mxu1  ;;  %v5692_v25 = vpop.f32.mrb[10].mxu0  ;;  %v1165_v28 = vrot.slane %v5677_v10, 2  ;;  %v1197_v29 = vrot.slane %v5690_v18, 2  ;;  %v1161_v31 = vrot.slane %v1005_v19, 2  ;;  %4742 = vmatprep.subr.bf16.mxu1 %v5069_v38 }
 0x112   : > { %v1324_v26 = vsel %vm6980_vm5, %v1321_v5, %v1323_v16  ;;  %v5697_v32 = vpop.f32.mrb[10].mxu1  ;;  %v5699_v33 = vpop.f32.mrb[11].mxu0  ;;  %v1355_v36 = vrot.slane %v1269_v21, 1  ;;  %v1357_v39 = vrot.slane %v1270_v22, 1  ;;  %v1193_v42 = vrot.slane %v1069_v23, 2 }
 0x113   : > { %1456 = vst.msk [vmem:[#allocation2] sm:$0xff] %vm6981_vm6, %v1421_v20  ;;  %v1422_v35 = vmax.f32 %v1252_v63, %v1324_v26  ;;  %v5705_v37 = vpop.f32.mrb[11].mxu1  ;;  %v1162_v40 = vsel %vm6978_vm1, %v1159_v55, %v1161_v31  ;;  %v1167_v47 = vrot.slane %v5692_v25, 2  ;;  %v1199_v50 = vrot.slane %v5697_v32, 2 }
 0x114   : > { %v1256_v41 = vmax.f32 %v992_v57, %v1162_v40  ;;  %v1358_v48 = vsel %vm6980_vm5, %v1355_v36, %v1357_v39  ;;  %v1360_v49 = vsel %vm6980_vm5, %v1357_v39, %v1359_v15  ;;  %v1163_v59 = vrot.slane %v5699_v33, 2  ;;  %4743 = vmatpush3.bf16.msra.mxu1 %v5070_v52 }
 0x115   : > { %1457 = vst.msk [vmem:[#allocation2 + $0x8] sm:$0xff] %vm6981_vm6, %v1422_v35  ;;  %v1439_v53 = vmax.f32 %v1269_v21, %v1358_v48  ;;  %v1440_v54 = vmax.f32 %v1270_v22, %v1360_v49  ;;  %v1200_v57 = vsel %vm6978_vm1, %v1197_v29, %v1199_v50  ;;  %v1195_v1 = vrot.slane %v5705_v37, 2 }
 0x116   : > { %v1329_v55 = vrot.slane %v1256_v41, 1  ;;  %v5730_v0 = vmax.f32 %v1069_v23, %v1200_v57  ;;  %v1164_v6 = vsel %vm6978_vm1, %v1161_v31, %v1163_v59  ;;  %v1166_v7 = vsel %vm6978_vm1, %v1163_v59, %v1165_v28 }
 0x117   : > { %v5719_v58 = vpop.f32.mrb[12].mxu0  ;;  %1474 = vst.msk [vmem:[#allocation2 + $0x90] sm:$0xff] %vm6981_vm6, %v1439_v53  ;;  %1475 = vst.msk [vmem:[#allocation2 + $0x98] sm:$0xff] %vm6981_vm6, %v1440_v54  ;;  %v1257_v12 = vmax.f32 %v5655_v45, %v1164_v6  ;;  %v1258_v13 = vmax.f32 %v5660_v51, %v1166_v7  ;;  %v1198_v15 = vsel %vm6978_vm1, %v1195_v1, %v1197_v29 }
 0x118   : > { %v5723_v60 = vpop.f32.mrb[12].mxu1  ;;  %v5725_v61 = vpop.f32.mrb[13].mxu0  ;;  %v1330_v63 = vsel %vm6980_vm5, %v1327_v8, %v1329_v55  ;;  %v1367_v8 = vrot.slane %v5730_v0, 1  ;;  %v1173_v16 = vrot.slane %v5719_v58, 2  ;;  %v1274_v20 = vmax.f32 %v5664_v56, %v1198_v15 }
 0x119   : > { %v5733_v3 = vpop.f32.mrb[13].mxu1  ;;  %v5735_v4 = vpop.f32.mrb[14].mxu0  ;;  %v1425_v5 = vmax.f32 %v5671_v2, %v1330_v63  ;;  %v1196_v2 = vsel %vm6978_vm1, %v1193_v42, %v1195_v1  ;;  %v1331_v17 = vrot.slane %v1257_v12, 1  ;;  %v1333_v18 = vrot.slane %v1258_v13, 1 }
 0x11a   : > { %v5740_v9 = vpop.f32.mrb[14].mxu1  ;;  %v5742_v11 = vpop.f32.mrb[15].mxu0  ;;  %v1273_v19 = vmax.f32 %v5657_v46, %v1196_v2  ;;  %v5757_v45 = vmax.f32 %v5719_v58, %v5650_v43  ;;  %v1205_v51 = vrot.slane %v5723_v60, 2  ;;  %v1169_v21 = vrot.slane %v5725_v61, 2 }
 0x11b   : > { %v5747_v14 = vpop.f32.mrb[15].mxu1  ;;  %1460 = vst.msk [vmem:[#allocation2 + $0x20] sm:$0xff] %vm6981_vm6, %v1425_v5  ;;  %v1332_v22 = vsel %vm6980_vm5, %v1329_v55, %v1331_v17  ;;  %v1334_v23 = vsel %vm6980_vm5, %v1331_v17, %v1333_v18  ;;  %v1365_v31 = vrot.slane %v1274_v20, 1  ;;  %v1201_v43 = vrot.slane %v5733_v3, 2 }
 0x11c   : > { %v1363_v26 = vrot.slane %v1273_v19, 1  ;;  %v1426_v28 = vmax.f32 %v1256_v41, %v1332_v22  ;;  %v1427_v29 = vmax.f32 %v1257_v12, %v1334_v23  ;;  %v1347_v46 = vrot.slane %v5757_v45, 1 }
 0x11d   : > { %v1170_v56 = vsel %vm6978_vm1, %v1167_v47, %v1169_v21  ;;  %v1368_v38 = vsel %vm6980_vm5, %v1365_v31, %v1367_v8  ;;  %v1202_v47 = vsel %vm6978_vm1, %v1199_v50, %v1201_v43  ;;  %v1175_v48 = vrot.slane %v5735_v4, 2 }
 0x11e   : > { %1461 = vst.msk [vmem:[#allocation2 + $0x28] sm:$0xff] %vm6981_vm6, %v1426_v28  ;;  %1462 = vst.msk [vmem:[#allocation2 + $0x30] sm:$0xff] %vm6981_vm6, %v1427_v29  ;;  %v1366_v36 = vsel %vm6980_vm5, %v1363_v26, %v1365_v31  ;;  %v1260_v39 = vmax.f32 %v5699_v33, %v1170_v56  ;;  %v1444_v42 = vmax.f32 %v1274_v20, %v1368_v38  ;;  %v1207_v33 = vrot.slane %v5740_v9, 2 }
 0x11f   : > { %v1443_v41 = vmax.f32 %v1273_v19, %v1366_v36  ;;  %v1276_v53 = vmax.f32 %v5705_v37, %v1202_v47  ;;  %v1266_v54 = vmax.f32 %v5735_v4, %v5653_v44  ;;  %v1171_v55 = vrot.slane %v5742_v11, 2  ;;  %v1510_v19 = vld [vmem:[#allocation2 + $0x90] ss:$2 sm:$0xff] }
 0x120   : > { %v5763_v27 = vpop.f32.mrb[16].mxu1  ;;  %v1337_v52 = vrot.slane %v1260_v39, 1  ;;  %1479 = vst.msk [vmem:[#allocation2 + $0xb8] sm:$0xff] %vm6981_vm6, %v1444_v42  ;;  %v1208_v57 = vsel %vm6978_vm1, %v1205_v51, %v1207_v33  ;;  %v1178_v6 = vsel %vm6978_vm1, %v1175_v48, %v1177_v34  ;;  %v1203_v12 = vrot.slane %v5747_v14, 2 }
 0x121   : > { %v5768_v35 = vpop.f32.mrb[17].mxu1  ;;  %1478 = vst.msk [vmem:[#allocation2 + $0xb0] sm:$0xff] %vm6981_vm6, %v1443_v41  ;;  %v1369_v58 = vrot.slane %v1276_v53, 1  ;;  %v1349_v50 = vrot.slane %v1266_v54, 1  ;;  %v1172_v59 = vsel %vm6978_vm1, %v1169_v21, %v1171_v55  ;;  %v1174_v60 = vsel %vm6978_vm1, %v1171_v55, %v1173_v16  ;;  %v1492_v21 = vld [vmem:[#allocation2] ss:$2 sm:$0xff] }
 0x122   : > { %v5775_v40 = vpop.f32.mrb[18].mxu1  ;;  %v1279_v5 = vmax.f32 %v5733_v3, %v1208_v57  ;;  %v1261_v7 = vmax.f32 %v5677_v10, %v1172_v59  ;;  %v1213_v3 = vrot.slane %v5763_v27, 2  ;;  %v1209_v30 = vrot.slane %v5768_v35, 2 }
 0x123   : > { %v5779_v49 = vpop.f32.mrb[19].mxu1  ;;  %v1370_v37 = vsel %vm6980_vm5, %v1367_v8, %v1369_v58  ;;  %v1350_v44 = vsel %vm6980_vm5, %v1347_v46, %v1349_v50  ;;  %v1352_v61 = vsel %vm6980_vm5, %v1349_v50, %v5668_v62  ;;  %v1262_v8 = vmax.f32 %v5692_v25, %v1174_v60 }
 0x124   : > { %v1445_v63 = vmax.f32 %v5730_v0, %v1370_v37  ;;  %v1435_v1 = vmax.f32 %v5757_v45, %v1350_v44  ;;  %v1436_v4 = vmax.f32 %v1266_v54, %v1352_v61  ;;  %v1375_v62 = vrot.slane %v1279_v5, 1 }
 0x125   : > { %v1264_v0 = vmax.f32 %v5742_v11, %v1178_v6  ;;  %v1339_v34 = vrot.slane %v1261_v7, 1  ;;  %v1341_v13 = vrot.slane %v1262_v8, 1  ;;  %v1206_v10 = vsel %vm6978_vm1, %v1203_v12, %v1205_v51  ;;  %v5819_v11 = vld [vmem:[%s7018_s7] ss:$0 sm:$0xff]  ;;  %s7092_s7 = sld [smem:[#allocation23_spill]] }
 0x126   : > { %1480 = vst.msk [vmem:[#allocation2 + $0xc0] sm:$0xff] %vm6981_vm6, %v1445_v63  ;;  %1470 = vst.msk [vmem:[#allocation2 + $0x70] sm:$0xff] %vm6981_vm6, %v1435_v1  ;;  %v1278_v2 = vmax.f32 %v5697_v32, %v1206_v10  ;;  %v1210_v15 = vsel %vm6978_vm1, %v1207_v33, %v1209_v30  ;;  %v1501_v32 = vld [vmem:[#allocation2 + $0x24] ss:$2 sm:$0xff]  ;;  %v1215_v26 = vrot.slane %v5775_v40, 2  ;;  %v1211_v28 = vrot.slane %v5779_v49, 2 }
 0x127   : > { %1471 = vst.msk [vmem:[#allocation2 + $0x78] sm:$0xff] %vm6981_vm6, %v1436_v4  ;;  %v1345_v25 = vrot.slane %v1264_v0, 1  ;;  %v1340_v16 = vsel %vm6980_vm5, %v1337_v52, %v1339_v34  ;;  %v1342_v17 = vsel %vm6980_vm5, %v1339_v34, %v1341_v13  ;;  %v1280_v18 = vmax.f32 %v5747_v14, %v1210_v15  ;;  %v1560_v10 = vld [vmem:[#allocation5 + $0x8] sm:$0x3]  ;;  %v1702_v13 = vld [vmem:[#allocation5 + $0x24] sm:$0xf] }
 0x128   : > { %v1430_v45 = vmax.f32 %v1260_v39, %v1340_v16  ;;  %v1431_v51 = vmax.f32 %v1261_v7, %v1342_v17  ;;  %v1373_v23 = vrot.slane %v1278_v2, 1  ;;  %v1499_v29 = vadd.f32 %v5819_v11, %v1492_v21  ;;  %v1581_v16 = vld [vmem:[#allocation5 + $0x8] sm:$0xc]  ;;  %v5072_v15 = vld [vmem:[%s7017_s8 + $0x18] sm:$0xff]  }
 0x129   : > { %v1348_v20 = vsel %vm6980_vm5, %v1345_v25, %v1347_v46  ;;  %v1377_v14 = vrot.slane %v1280_v18, 1  ;;  %v1502_v31 = vadd.f32 %v5819_v11, %v1501_v32  ;;  %v1511_v27 = vadd.f32 %v5819_v11, %v1510_v19  ;;  %v1608_v32 = vld [vmem:[#allocation5 + $0xc] sm:$0x8] }
 0x12a   : > { %v1434_v22 = vmax.f32 %v1264_v0, %v1348_v20  ;;  %1465 = vst.msk [vmem:[#allocation2 + $0x48] sm:$0xff] %vm6981_vm6, %v1430_v45  ;;  %1466 = vst.msk [vmem:[#allocation2 + $0x50] sm:$0xff] %vm6981_vm6, %v1431_v51  ;;  %v1376_v46 = vsel %vm6980_vm5, %v1373_v23, %v1375_v62  ;;  %v1216_v39 = vsel %vm6978_vm1, %v1213_v3, %v1215_v26 }
 0x12b   : > { %v1378_v56 = vsel %vm6980_vm5, %v1375_v62, %v1377_v14  ;;  %v1448_v36 = vmax.f32 %v1278_v2, %v1376_v46  ;;  %v1283_v40 = vmax.f32 %v5768_v35, %v1216_v39  ;;  %v1214_v41 = vsel %vm6978_vm1, %v1211_v28, %v1213_v3  ;;  %v1554_v39 = vld [vmem:[#allocation5 + $0x4] sm:$0xe] }
 0x12c   : > { %1469 = vst.msk [vmem:[#allocation2 + $0x68] sm:$0xff] %vm6981_vm6, %v1434_v22  ;;  %v1449_v38 = vmax.f32 %v1279_v5, %v1378_v56  ;;  %v1284_v42 = vmax.f32 %v5779_v49, %v1215_v26  ;;  %v1282_v47 = vmax.f32 %v5740_v9, %v1214_v41  ;;  %v4706_v52 = vpack.c.bf16 %v1499_v29, %v1499_v29  ;;  %v1587_v26 = vld [vmem:[#allocation5 + $0xc] sm:$0x7] }
 0x12d   : > { %v1513_v43 = vld [vmem:[#allocation2 + $0xb4] ss:$2 sm:$0xff]  ;;  %1483 = vst.msk [vmem:[#allocation2 + $0xd8] sm:$0xff] %vm6981_vm6, %v1448_v36  ;;  %v1383_v53 = vrot.slane %v1283_v40, 1  ;;  %v4707_v33 = vpack.c.bf16 %v1502_v31, %v1502_v31  ;;  %v4710_v35 = vpack.c.bf16 %v1511_v27, %v1511_v27  ;;  %vm1636_vm1 = vcmask 253952  }
 0x12e   : > { %1484 = vst.msk [vmem:[#allocation2 + $0xe0] sm:$0xff] %vm6981_vm6, %v1449_v38  ;;  %v1514_v48 = vadd.f32 %v5819_v11, %v1513_v43  ;;  %v1385_v54 = vrot.slane %v1284_v42, 1  ;;  %v1381_v55 = vrot.slane %v1282_v47, 1  ;;  %v1541_v58 = vshrl.u32 %v4706_v52, 16  ;;  %v5073_v38 = vld [vmem:[%s7017_s8 + $0x60] sm:$0xff]  }
 0x12f   : > { %v1544_v50 = vshll.u32 %v4706_v52, 16  ;;  %v1568_v37 = vshrl.u32 %v4707_v33, 16  ;;  %v1571_v7 = vshll.u32 %v4707_v33, 16  ;;  %v1647_v0 = vshrl.u32 %v4710_v35, 16 }
 0x130   : > { %v1386_v59 = vsel %vm6980_vm5, %v1383_v53, %v1385_v54  ;;  %v1454_v60 = vmax.f32 %v1284_v42, %v1385_v54  ;;  %v1384_v44 = vsel %vm6980_vm5, %v1381_v55, %v1383_v53  ;;  %v1543_v4 = vrot.slane %v1541_v58, 6  ;;  %vm5850_vm5 = vmand %vm1534_vm4, %vm1558_vm8  ;;  %v1660_v53 = vld [vmem:[#allocation5 + $0x1c] sm:$0x3] }
 0x131   : > { %v1504_v49 = vld [vmem:[#allocation2 + $0x48] ss:$2 sm:$0xff]  ;;  %v1453_v61 = vmax.f32 %v1283_v40, %v1386_v59  ;;  %v1452_v63 = vmax.f32 %v1282_v47, %v1384_v44  ;;  %v1546_v5 = vrot.slane %v1544_v50, 7  ;;  %v1570_v6 = vrot.slane %v1568_v37, 5  ;;  %vm5862_vm4 = vmand %vm1605_vm11, %vm1606_vm12  ;;  %v1657_v40 = vld [vmem:[#allocation5 + $0x18] sm:$0xe] }
 0x132   : > { %v1505_v9 = vadd.f32 %v5819_v11, %v1504_v49  ;;  %1490 = vst.msk [vmem:[#allocation2 + $0x108] sm:$0x7] %vm1489_vm7, %v1454_v60  ;;  %v1650_v3 = vshll.u32 %v4710_v35, 16  ;;  %v1573_v25 = vrot.slane %v1571_v7, 6  ;;  %v4711_v2 = vpack.c.bf16 %v1514_v48, %v1514_v48  ;;  %vm5878_vm11 = vmand %vm1551_vm14, %vm1552_vm15  ;;  %v1614_v48 = vld [vmem:[#allocation5 + $0x10] sm:$0xf] }
 0x133   : > { %v1507_v57 = vld [vmem:[#allocation2 + $0x6c] ss:$2 sm:$0xff]  ;;  %1488 = vst.msk [vmem:[#allocation2 + $0x100] sm:$0xff] %vm6981_vm6, %v1453_v61  ;;  %1487 = vst.msk [vmem:[#allocation2 + $0xf8] sm:$0xff] %vm6981_vm6, %v1452_v63  ;;  %v1547_v34 = vor.u32 %v1546_v5, %v1543_v4  ;;  %v1649_v22 = vrot.slane %v1647_v0, 6 }
 0x134   : > { %v1508_v1 = vadd.f32 %v5819_v11, %v1507_v57  ;;  %v4708_v12 = vpack.c.bf16 %v1505_v9, %v1505_v9  ;;  %vm5856_vm6 = vmand %vm1578_vm9, %vm1579_vm10  ;;  %v1574_v51 = vor.u32 %v1573_v25, %v1570_v6  ;;  %v1652_v23 = vrot.slane %v1650_v3, 7  ;;  %v1633_v57 = vld [vmem:[#allocation5 + $0x14] sm:$0xf]  ;;  %v1639_v4 = vld [vmem:[#allocation5 + $0x18] sm:$0x1] }
 0x135   : > { %v1516_v8 = vld [vmem:[#allocation2 + $0xd8] ss:$2 sm:$0xff]  ;;  %v1548_v45 = vrot.slane %v1547_v34, 4  ;;  %vm5868_vm9 = vmand %vm1489_vm7, %vm1585_vm13  ;;  %v1668_v27 = vshrl.u32 %v4711_v2, 16  ;;  %vm7029_vm7 = vcmask 257024   ;;  %v1671_v58 = vshll.u32 %v4711_v2, 16 }
 0x136   : > { %v4709_v62 = vpack.c.bf16 %v1508_v1, %v1508_v1  ;;  %v1517_v30 = vadd.f32 %v5819_v11, %v1516_v8  ;;  %v1595_v17 = vshll.u32 %v4708_v12, 16  ;;  %v1598_v18 = vshrl.u32 %v4708_v12, 16  ;;  %vm5886_vm13 = vmand %vm7029_vm7, %vm1612_vm2  ;;  %v1678_v6 = vld [vmem:[#allocation5 + $0x1c] sm:$0xc]  ;;  %v1699_v7 = vld [vmem:[#allocation5 + $0x20] sm:$0x8] }
 0x137   : > { %v1561_v46 = vsel %vm5850_vm5, %v1548_v45, %v1560_v10  ;;  %v1575_v56 = vrot.slane %v1574_v51, 4  ;;  %v1582_v43 = vsel %vm5856_vm6, %v1574_v51, %v1581_v16  ;;  %v1653_v36 = vor.u32 %v1652_v23, %v1649_v22  ;;  %vm7032_vm14 = vmmov %vm7029_vm7  ;;  %v1681_v3 = vld [vmem:[#allocation5 + $0x20] sm:$0x7]  ;;  %v5071_v51 = vld [vmem:[%s7017_s8 + $0x58] sm:$0xff]  }
 0x138   : > { %v1622_v19 = vshrl.u32 %v4709_v62, 16  ;;  %v1625_v20 = vshll.u32 %v4709_v62, 16  ;;  %v1597_v28 = vrot.slane %v1595_v17, 5  ;;  %v1600_v29 = vrot.slane %v1598_v18, 4  ;;  %1562 = vst [vmem:[#allocation5 + $0x8] sm:$0x3] %v1561_v46  ;;  %vm5894_vm15 = vmand %vm7032_vm14, %vm1631_vm0  ;;  %4744 = vmatprep.subr.bf16.mxu1 %v5071_v51 }
 0x139   : > { %1583 = vst [vmem:[#allocation5 + $0x8] sm:$0xc] %v1582_v43  ;;  %v1670_v54 = vrot.slane %v1668_v27, 5  ;;  %v1588_v35 = vsel %vm5868_vm9, %v1575_v56, %v1587_v26  ;;  %v1654_v49 = vrot.slane %v1653_v36, 4  ;;  %v4712_v50 = vpack.c.bf16 %v1517_v30, %v1517_v30  ;;  %vm5907_vm0 = vmand %vm1636_vm1, %vm1637_vm3  ;;  %v1725_v25 = vld [vmem:[#allocation5] sm:$0xf]  ;;  %4745 = vmatpush3.bf16.msra.mxu1 %v5072_v15 }
 0x13a   : > { %v1624_v31 = vrot.slane %v1622_v19, 7  ;;  %v1601_v41 = vor.u32 %v1600_v29, %v1597_v28  ;;  %v1609_v42 = vsel %vm5862_vm4, %v1597_v28, %v1608_v32  ;;  %v1519_v33 = vld [vmem:[#allocation2 + $0xfc] ss:$2 sm:$0xff]  ;;  %1589 = vst [vmem:[#allocation5 + $0xc] sm:$0x7] %v1588_v35  ;;  %v1555_v9 = vsel %vm5878_vm11, %v1547_v34, %v1554_v39  ;;  %4746 = vmatprep.subr.bf16.mxu1 %v5073_v38 }
 0x13b   : > { %1610 = vst [vmem:[#allocation5 + $0xc] sm:$0x8] %v1609_v42  ;;  %v1520_v59 = vadd.f32 %v5819_v11, %v1519_v33  ;;  %v1658_v37 = vsel %vm5878_vm11, %v1653_v36, %v1657_v40  ;;  %v1661_v44 = vsel %vm5850_vm5, %v1654_v49, %v1660_v53  ;;  %v1673_v61 = vrot.slane %v1671_v58, 6  ;;  %1556 = vst [vmem:[#allocation5 + $0x4] sm:$0xe] %v1555_v9  ;;  %v5074_v39 = vld [vmem:[%s7017_s8 + $0x20] sm:$0xff]  }
 0x13c   : > { %v1627_v52 = vor.u32 %v1625_v20, %v1624_v31  ;;  %v1602_v60 = vrot.slane %v1601_v41, 4  ;;  %v1689_v63 = vshll.u32 %v4712_v50, 16  ;;  %v1692_v1 = vshrl.u32 %v4712_v50, 16  ;;  %1659 = vst [vmem:[#allocation5 + $0x18] sm:$0xe] %v1658_v37  ;;  %v5076_v37 = vld [vmem:[%s7017_s8 + $0x28] sm:$0xff]  }
 0x13d   : > { %1662 = vst [vmem:[#allocation5 + $0x1c] sm:$0x3] %v1661_v44  ;;  %v4713_v8 = vpack.c.bf16 %v1520_v59, %v1520_v59  ;;  %v1628_v62 = vrot.slane %v1624_v31, 4  ;;  %v1674_v0 = vor.u32 %v1673_v61, %v1670_v54  ;;  %v1719_v20 = vld [vmem:[#allocation5 + $0x28] sm:$0xf]  ;;  %4747 = vmatpush3.bf16.msra.mxu1 %v5074_v39  ;;  %vm7037_vm5 = vcmask 1046528  }
 0x13e   : > { %v1615_v5 = vsel %vm5886_vm13, %v1602_v60, %v1614_v48  ;;  %v1634_v12 = vsel %vm5894_vm15, %v1627_v52, %v1633_v57  ;;  %v1691_v30 = vrot.slane %v1689_v63, 5  ;;  %v1694_v34 = vrot.slane %v1692_v1, 4  ;;  %v1736_v45 = vld [vmem:[#allocation5] sm:$0xe] }
 0x13f   : > { %1616 = vst [vmem:[#allocation5 + $0x10] sm:$0xf] %v1615_v5  ;;  %1635 = vst [vmem:[#allocation5 + $0x14] sm:$0xf] %v1634_v12  ;;  %v1710_v10 = vshrl.u32 %v4713_v8, 16  ;;  %v1640_v2 = vsel %vm5907_vm0, %v1628_v62, %v1639_v4  ;;  %v1675_v16 = vrot.slane %v1674_v0, 4  ;;  %v1679_v17 = vsel %vm5856_vm6, %v1674_v0, %v1678_v6 }
 0x140   : > { %v1695_v18 = vor.u32 %v1694_v34, %v1691_v30  ;;  %v1700_v19 = vsel %vm5862_vm4, %v1691_v30, %v1699_v7  ;;  %1641 = vst [vmem:[#allocation5 + $0x18] sm:$0x1] %v1640_v2  ;;  %1680 = vst [vmem:[#allocation5 + $0x1c] sm:$0xc] %v1679_v17  ;;  %v1713_v22 = vshll.u32 %v4713_v8, 16  ;;  %v5075_v59 = vld [vmem:[%s7017_s8 + $0x68] sm:$0xff]  }
 0x141   : > { %1701 = vst [vmem:[#allocation5 + $0x20] sm:$0x8] %v1700_v19  ;;  %v5924_v32 = vrot.slane %v1710_v10, 7  ;;  %v1727_v23 = vld [vmem:[#allocation5 + $0x8] sm:$0xf]  ;;  %v1682_v21 = vsel %vm5868_vm9, %v1675_v16, %v1681_v3  ;;  %vm7038_vm6 = vcmask 1045504   ;;  %4748 = vmatprep.subr.bf16.mxu1 %v5075_v59  ;;  %vm7040_vm4 = vmmov %vm7037_vm5 }
 0x142   : > { %v1696_v26 = vrot.slane %v1695_v18, 4  ;;  %v5931_v28 = vld [vmem:[#allocation5 + $0xc] sm:$0xf]  ;;  %v1741_v29 = vld [vmem:[#allocation5 + $0x8] sm:$0xc]  ;;  %4749 = vmatpush3.bf16.msra.mxu1 %v5076_v37  ;;  %vm7039_vm2 = vmmov %vm7038_vm6 }
 0x143   : > { %1683 = vst [vmem:[#allocation5 + $0x20] sm:$0x7] %v1682_v21  ;;  %v1715_v31 = vor.u32 %v1713_v22, %v5924_v32  ;;  %v1726_v27 = vld [vmem:[#allocation5 + $0x4] sm:$0xf]  ;;  %v5935_v46 = vcombine.low %v1727_v23, %v5931_v28  ;;  %v5938_v56 = vcombine.low %v1741_v29, %v5931_v28  ;;  %vm1774_vm1 = vsmask.f32 7424  ;;  %vm7041_vm9 = vmmov %vm7040_vm4 }
 0x144   : > { %v1703_v14 = vsel %vm5886_vm13, %v1696_v26, %v1702_v13  ;;  %v5942_v43 = vcombine.low %v1725_v25, %v1726_v27  ;;  %v4506_v36 = vcombine.low %v1736_v45, %v1726_v27  ;;  %v1740_v60 = vld [vmem:[#allocation5 + $0x4] sm:$0xc]  ;;  %v5077_v8 = vld [vmem:[%s7017_s8 + $0x70] sm:$0xff]   ;;  %v5079_v16 = vld [vmem:[%s7017_s8 + $0x78] sm:$0xff]   ;;  %v1716_v18 = vrot.slane %v5924_v32, 4 }
 0x145   : > { %1704 = vst [vmem:[#allocation5 + $0x24] sm:$0xf] %v1703_v14  ;;  %v1720_v40 = vsel %vm5894_vm15, %v1715_v31, %v1719_v20  ;;  %v1829_v41 = vrot.slane %v5935_v46, 1  ;;  %v1783_v42 = vshll.u32 %v5935_v46, 16  ;;  %v1962_v55 = vrot.slane %v5938_v56, 2  ;;  %v5078_v12 = vld [vmem:[%s7017_s8 + $0x30] sm:$0xff]   ;;  %4750 = vmatprep.subr.bf16.mxu1 %v5077_v8  ;;  %vm7042_vm11 = vmmov %vm7039_vm2 }
 0x146   : > { %v1729_v47 = vld [vmem:[#allocation5 + $0x10] sm:$0xf]  ;;  %v1730_v48 = vld [vmem:[#allocation5 + $0x14] sm:$0xf]  ;;  %1721 = vst [vmem:[#allocation5 + $0x28] sm:$0xf] %v1720_v40  ;;  %v4513_v63 = vcombine.low %v1740_v60, %v1727_v23  ;;  %4751 = vmatpush3.bf16.msra.mxu1 %v5078_v12  ;;  %vm7044_vm14 = vmmov %vm7039_vm2 }
 0x147   : > { %v1828_v52 = vrot.slane %v4506_v36, 1  ;;  %v1778_v53 = vshll.u32 %v5942_v43, 16  ;;  %v5955_v54 = vcombine.low %v1729_v47, %v1730_v48  ;;  %v1776_v33 = vshrl.u32 %v5942_v43, 16  ;;  %v1737_v9 = vld [vmem:[#allocation5 + $0x4] sm:$0xe]  ;;  %v5080_v17 = vld [vmem:[%s7017_s8 + $0x38] sm:$0xff]   ;;  %4752 = vmatprep.subr.bf16.mxu1 %v5079_v16  ;;  %vm7045_vm15 = vmmov %vm7040_vm4 }
 0x148   : > { %v5958_v35 = vrot.slane %v1783_v42, 1  ;;  %v5966_v57 = vcombine.low %v5931_v28, %v1729_v47  ;;  %v5978_v1 = vcombine.low %v1737_v9, %v1727_v23  ;;  %v1731_v4 = vld [vmem:[#allocation5 + $0x18] sm:$0xf]  ;;  %v1932_v0 = vrot.slane %v4513_v63, 2  ;;  %v1732_v30 = vld [vmem:[#allocation5 + $0x1c] sm:$0xf] }
 0x149   : > { %v1830_v49 = vsel %vm7037_vm5, %v1828_v52, %v1829_v41  ;;  %v1780_v58 = vrot.slane %v1778_v53, 1  ;;  %v1963_v50 = vrot.slane %v5955_v54, 2  ;;  %v5995_v34 = vcombine.low %v1730_v48, %v1731_v4  ;;  %v1722_v22 = vld [vmem:[#allocation5 + $0x2c] sm:$0x1]  ;;  %vm7047_vm5 = vmmov %vm7039_vm2 }
 0x14a   : > { %1837 = vrot.lane.b32.xlu1 %v1830_v49, %s6982_s1  ;;  %v1933_v6 = vrot.slane %v5966_v57, 2  ;;  %v1857_v7 = vrot.slane %v5966_v57, 1  ;;  %v5992_v62 = vld [vmem:[#allocation5 + $0x20] sm:$0xf]  ;;  %v1856_v3 = vrot.slane %v5978_v1, 1  ;;  %v1831_v13 = vrot.slane %v5955_v54, 1  ;;  %4753 = vmatpush3.bf16.msra.mxu1 %v5080_v17 }
 0x14b   : > { %v1781_v44 = vor.u32 %v1780_v58, %v1776_v33  ;;  %v1964_v61 = vsel %vm7038_vm6, %v1962_v55, %v1963_v50  ;;  %v6001_v2 = vcombine.low %v1732_v30, %v5992_v62  ;;  %v6012_v19 = vcombine.low %v1731_v4, %v1732_v30 }
 0x14c   : > { %v1934_v10 = vsel %vm7039_vm2, %v1932_v0, %v1933_v6  ;;  %v1858_v25 = vsel %vm7040_vm4, %v1856_v3, %v1857_v7  ;;  %v1935_v20 = vrot.slane %v5995_v34, 2  ;;  %v1791_v45 = vshll.u32 %v5955_v54, 16 }
 0x14d   : > { %v1786_v5 = vsel %vm1774_vm1, %v1781_v44, %v5958_v35  ;;  %v1795_v51 = vshrl.u32 %v5955_v54, 16  ;;  %v1832_v23 = vsel %vm7041_vm9, %v1829_v41, %v1831_v13  ;;  %v1937_v15 = vrot.slane %v6001_v2, 2  ;;  %v1735_v41 = vld [vmem:[#allocation5 + $0x24] sm:$0xf]  ;;  %v1738_v53 = vld [vmem:[#allocation5 + $0x28] sm:$0xf] }
 0x14e   : > { %1814 = vrot.lane.b32.xlu0 %v1786_v5, %s5386_s4  ;;  %1973 = vrot.lane.b32.xlu1 %v1964_v61, %s6982_s1  ;;  %s5387_s1 = smov 96   ;;  %v1936_v32 = vsel %vm7042_vm11, %v1933_v6, %v1935_v20  ;;  %v1988_v21 = vshrl.u32 %v5938_v56, 16  ;;  %v1991_v26 = vshll.u32 %v5938_v56, 16  ;;  %v1965_v29 = vrot.slane %v6012_v19, 2 }
 0x14f   : > { %v1859_v31 = vrot.slane %v5995_v34, 1  ;;  %v1833_v27 = vrot.slane %v6012_v19, 1  ;;  %v1723_v14 = vsel %vm5907_vm0, %v1716_v18, %v1722_v22  ;;  %vm1986_vm7 = vsmask.f32 5376  ;;  %vm7046_vm0 = vmmov %vm7040_vm4 }
 0x150   : > { %v1995_v36 = vrot.slane %v1795_v51, 2  ;;  %v1996_v38 = vrot.slane %v1791_v45, 3  ;;  %1724 = vst [vmem:[#allocation5 + $0x2c] sm:$0x1] %v1723_v14  ;;  %vm1878_vm13 = vsmask.f32 6400  ;;  %v1966_v56 = vsel %vm7044_vm14, %v1963_v50, %v1965_v29  ;;  %vm7048_vm6 = vmmov %vm7046_vm0 }
 0x151   : > { %v1860_v39 = vsel %vm7045_vm15, %v1857_v7, %v1859_v31  ;;  %v1834_v11 = vsel %vm7046_vm0, %v1831_v13, %v1833_v27  ;;  %v1787_v40 = vshrl.u32 %v5935_v46, 16  ;;  %v1938_v42 = vsel %vm7047_vm5, %v1935_v20, %v1937_v15  ;;  %vm7051_vm11 = vmmov %vm7046_vm0 }
 0x152   : > { %1943 = vrot.lane.b32.xlu0 %v1934_v10, %s5386_s4  ;;  %1865 = vrot.lane.b32.xlu1 %v1858_v25, %s5387_s1  ;;  %v1990_v47 = vrot.slane %v1988_v21, 2  ;;  %v1993_v48 = vrot.slane %v1991_v26, 3  ;;  %v1799_v52 = vshll.u32 %v6012_v19, 16  ;;  %v1803_v33 = vshrl.u32 %v6012_v19, 16  ;;  %vm7052_vm14 = vmmov %vm7039_vm2 }
 0x153   : > { %v1880_v55 = vshrl.u32 %v5978_v1, 16  ;;  %v1883_v49 = vshll.u32 %v5978_v1, 16  ;;  %v1888_v58 = vshrl.u32 %v5966_v57, 16  ;;  %v1997_v50 = vor.u32 %v1996_v38, %v1995_v36  ;;  %vm7054_vm15 = vmmov %vm7039_vm2 }
 0x154   : > { %v1789_v59 = vor.u32 %v1787_v40, %v5958_v35  ;;  %v1793_v60 = vrot.slane %v1791_v45, 1  ;;  %v1891_v9 = vshll.u32 %v5966_v57, 16  ;;  %v6057_v37 = vcombine.low %v1735_v41, %v1738_v53 }
 0x155   : > { %v1882_v44 = vrot.slane %v1880_v55, 1  ;;  %v1885_v61 = vrot.slane %v1883_v49, 2  ;;  %v1890_v63 = vrot.slane %v1888_v58, 1  ;;  %v1994_v4 = vor.u32 %v1993_v48, %v1990_v47 }
 0x156   : > { %1945 = vrot.lane.b32.xlu0 %v1936_v32, %s5386_s4  ;;  %1839 = vrot.lane.b32.xlu1 %v1832_v23, %s7043_s2  ;;  %v1893_v5 = vrot.slane %v1891_v9, 2  ;;  %v1897_v6 = vshrl.u32 %v5995_v34, 16  ;;  %v1900_v7 = vshll.u32 %v5995_v34, 16  ;;  %v1999_v35 = vrot.slane %v1803_v33, 2 }
 0x157   : > { %v2000_v1 = vrot.slane %v1799_v52, 3  ;;  %v1906_v57 = vshrl.u32 %v6001_v2, 16  ;;  %v1909_v8 = vshll.u32 %v6001_v2, 16  ;;  %v1886_v12 = vor.u32 %v1885_v61, %v1882_v44  ;;  %v1742_v13 = vld [vmem:[#allocation5 + $0x2c] sm:$0xf] }
 0x158   : > { %v1894_v0 = vor.u32 %v1893_v5, %v1890_v63  ;;  %v1899_v3 = vrot.slane %v1897_v6, 1  ;;  %v1902_v30 = vrot.slane %v1900_v7, 2  ;;  %v1915_v16 = vshrl.u32 %v6057_v37, 16  ;;  %v6074_v22 = vld [vmem:[#allocation5 + $0x2c] ss:$0 sps:$4 sm:$0x11]  }
 0x159   : > { %v1908_v10 = vrot.slane %v1906_v57, 1  ;;  %v1911_v25 = vrot.slane %v1909_v8, 2  ;;  %v1998_v17 = vsel %vm1986_vm7, %v1994_v4, %v1997_v50  ;;  %v1794_v18 = vsel %vm1774_vm1, %v1789_v59, %v1793_v60 }
 0x15a   : > { %1975 = vrot.lane.b32.xlu0 %v1966_v56, %s7043_s2  ;;  %1867 = vrot.lane.b32.xlu1 %v1860_v39, %s5387_s1  ;;  %v1861_v20 = vrot.slane %v6001_v2, 1  ;;  %v6072_v45 = vcombine.low %v5992_v62, %v1735_v41  ;;  %v5388_v23 = vmov 0.0   ;;  %v6080_v32 = vsel %vm1878_vm13, %v1886_v12, %v1894_v0  ;;  %v6086_v39 = vld [vmem:[#allocation5 + $0x30] ss:$0 sps:$4 sm:$0x33]  }
 0x15b   : > { %4922 = vmatprep.subr.bf16.mxu1 %v5388_v23  ;;  %v1903_v21 = vor.u32 %v1902_v30, %v1899_v3  ;;  %v1912_v26 = vor.u32 %v1911_v25, %v1908_v10  ;;  %v2001_v14 = vor.u32 %v2000_v1, %v1999_v35  ;;  %v1797_v36 = vor.u32 %v1795_v51, %v1793_v60 }
 0x15c   : > { %v1801_v38 = vrot.slane %v1799_v52, 1  ;;  %v6084_v56 = vcombine.low %v1738_v53, %v1742_v13  ;;  %v1917_v41 = vrot.slane %v1915_v16, 1  ;;  %v1862_v51 = vsel %vm7048_vm6, %v1859_v31, %v1861_v20 }
 0x15d   : > { %v6092_v40 = vsel %vm1878_vm13, %v1903_v21, %v1912_v26  ;;  %v2002_v47 = vsel %vm1986_vm7, %v1997_v50, %v2001_v14  ;;  %v1967_v48 = vrot.slane %v6072_v45, 2  ;;  %v1924_v52 = vshll.u32 %v6074_v22, 16 }
 0x15e   : > { %1947 = vrot.lane.b32.xlu0 %v1938_v42, %s5386_s4  ;;  %1841 = vrot.lane.b32.xlu1 %v1834_v11, %s7043_s2  ;;  %v6089_v11 = vsel %vm1878_vm13, %v1894_v0, %v1903_v21  ;;  %v1918_v42 = vshll.u32 %v6057_v37, 16  ;;  %v2044_v55 = vrot.slane %v6072_v45, 3  ;;  %v1802_v49 = vsel %vm1774_vm1, %v1797_v36, %v1801_v38  ;;  %v5063_v21 = vld [vmem:[#allocation5 + $0x30] ss:$0 sps:$4 sm:$0x11]  }
 0x15f   : > { %v2048_v58 = vrot.slane %v6086_v39, 3  ;;  %v1835_v50 = vrot.slane %v6072_v45, 1  ;;  %v1926_v59 = vrot.slane %v1924_v52, 2  ;;  %v2046_v31 = vrot.slane %v6084_v56, 3 }
 0x160   : > { %v1920_v53 = vrot.slane %v1918_v42, 2  ;;  %v1968_v60 = vsel %vm7039_vm2, %v1965_v29, %v1967_v48  ;;  %v1939_v9 = vrot.slane %v6057_v37, 2  ;;  %v1807_v44 = vshll.u32 %v6072_v45, 16 }
 0x161   : > { %v1811_v61 = vshrl.u32 %v6072_v45, 16  ;;  %vm7049_vm4 = vcmask 1044480   ;;  %v1836_v6 = vsel %vm7051_vm11, %v1833_v27, %v1835_v50  ;;  %v1863_v7 = vrot.slane %v6057_v37, 1 }
 0x162   : > { %2025 = vrot.lane.b32.xlu0 %v1998_v17, %s5387_s1  ;;  %1816 = vrot.lane.b32.xlu1 %v1794_v18, %s5386_s4  ;;  %v1921_v34 = vor.u32 %v1920_v53, %v1917_v41  ;;  %v6125_v29 = vsel %vm7049_vm4, %v2044_v55, %v2046_v31  ;;  %vm7050_vm9 = vmmov %vm7049_vm4  ;;  %v1940_v35 = vsel %vm7052_vm14, %v1937_v15, %v1939_v9  ;;  %v1969_v1 = vrot.slane %v6084_v56, 2 }
 0x163   : > { %v6128_v5 = vsel %vm7050_vm9, %v2046_v31, %v2048_v58  ;;  %v2003_v57 = vrot.slane %v1811_v61, 2  ;;  %v2004_v8 = vrot.slane %v1807_v44, 3  ;;  %v1809_v0 = vrot.slane %v1807_v44, 1 }
 0x164   : > { %v6117_v63 = vsel %vm1878_vm13, %v1912_v26, %v1921_v34  ;;  %v6120_v4 = vsel %vm1878_vm13, %v1921_v34, %v1926_v59  ;;  %vm7053_vm13 = vmmov %vm7046_vm0  ;;  %v1970_v3 = vsel %vm7054_vm15, %v1967_v48, %v1969_v1  ;;  %v2008_v37 = vshrl.u32 %v6084_v56, 16 }
 0x165   : > { %v1864_v12 = vsel %vm7053_vm13, %v1861_v20, %v1863_v7  ;;  %v2005_v27 = vor.u32 %v2004_v8, %v2003_v57  ;;  %v2011_v2 = vshll.u32 %v6084_v56, 16  ;;  %v1805_v15 = vor.u32 %v1803_v33, %v1801_v38  ;;  %vm7055_vm0 = vmmov %vm7039_vm2 }
 0x166   : > { %2027 = vrot.lane.b32.xlu0 %v2002_v47, %s5387_s1  ;;  %1869 = vrot.lane.b32.xlu1 %v1862_v51, %s5387_s1  ;;  %v1941_v10 = vrot.slane %v6074_v22, 2  ;;  %v2010_v25 = vrot.slane %v2008_v37, 2  ;;  %v1813_v17 = vor.u32 %v1811_v61, %v1809_v0  ;;  %v2017_v26 = vshrl.u32 %v6086_v39, 16  ;;  %vm7056_vm5 = vmmov %vm7055_vm0 }
 0x167   : > { %v1810_v30 = vsel %vm1774_vm1, %v1805_v15, %v1809_v0  ;;  %v2006_v13 = vsel %vm1986_vm7, %v2001_v14, %v2005_v27  ;;  %v2013_v16 = vrot.slane %v2011_v2, 3  ;;  %v2020_v33 = vshll.u32 %v6086_v39, 16  ;;  %v5083_v0 = vld [vmem:[%s7017_s8 + $0x88] sm:$0xff]  }
 0x168   : > { %v1942_v18 = vsel %vm7055_vm0, %v1939_v9, %v1941_v10  ;;  %v1971_v14 = vrot.slane %v5063_v21, 2  ;;  %v2019_v36 = vrot.slane %v2017_v26, 2  ;;  %vm7057_vm6 = vcmask 261120  }
 0x169   : > { %v2014_v20 = vor.u32 %v2013_v16, %v2010_v25  ;;  %v2022_v38 = vrot.slane %v2020_v33, 3  ;;  %vm7058_vm2 = vmmov %vm7057_vm6  ;;  %vm2061_vm4 = vcmask 523264   ;;  %vm2072_vm9 = vcmask 785408  }
 0x16a   : > { %1977 = vrot.lane.b32.xlu0 %v1968_v60, %s7043_s2  ;;  %1818 = vrot.lane.b32.xlu1 %v1802_v49, %s5386_s4  ;;  %v1972_v56 = vsel %vm7056_vm5, %v1969_v1, %v1971_v14  ;;  %vm7059_vm11 = vmmov %vm7058_vm2 }
 0x16b   : > { %v2015_v22 = vsel %vm1986_vm7, %v2005_v27, %v2014_v20  ;;  %v2023_v41 = vor.u32 %v2022_v38, %v2019_v36  ;;  %vm7060_vm14 = vmmov %vm7058_vm2 }
 0x16c   : > { %vm7061_vm13 = vmmov %vm7058_vm2 }
 0x16d   : > { %v2024_v39 = vsel %vm1986_vm7, %v2014_v20, %v2023_v41  ;;  %vm7062_vm15 = vmmov %vm7058_vm2 }
 0x16e   : > { %1949 = vrot.lane.b32.xlu0 %v1940_v35, %s5386_s4  ;;  %1843 = vrot.lane.b32.xlu1 %v1836_v6, %s7043_s2  ;;  %v5081_v6 = vld [vmem:[%s7017_s8 + $0x80] sm:$0xff]   ;;  %vm7063_vm0 = vmmov %vm7058_vm2  ;;  %s7093_s8 = sld [smem:[#allocation24_spill]] }
 0x16f   : > { %vm7064_vm5 = vmmov %vm7063_vm0 }
 0x172   : > { %1979 = vrot.lane.b32.xlu0 %v1970_v3, %s7043_s2  ;;  %1871 = vrot.lane.b32.xlu1 %v1864_v12, %s5387_s1 }
 0x176   : > { %2029 = vrot.lane.b32.xlu0 %v2006_v13, %s5387_s1  ;;  %1820 = vrot.lane.b32.xlu1 %v1810_v30, %s5386_s4 }
 0x17a   : > { %1951 = vrot.lane.b32.xlu0 %v1942_v18, %s5386_s4  ;;  %1822 = vrot.lane.b32.xlu1 %v1813_v17, %s5386_s4  ;;  %s7074_s4 = sld [smem:[#allocation22_spill]] }
 0x17e   : > { %2031 = vrot.lane.b32.xlu0 %v2015_v22, %s5387_s1  ;;  %1845 = vrot.lane.b32.xlu1 %v1835_v50, %s7043_s2 }
 0x180   : > { %v5087_v45 = vld [vmem:[%s7074_s4 + $0x110] sm:$0xff]  }
 0x182   : > { %1981 = vrot.lane.b32.xlu0 %v1972_v56, %s7043_s2  ;;  %1873 = vrot.lane.b32.xlu1 %v1863_v7, %s5387_s1 }
 0x186   : > { %2033 = vrot.lane.b32.xlu0 %v2024_v39, %s5387_s1 }
 0x1bc   : > { %v1838_v42 = vpop.permute.xlu1 %1837 }
 0x1c0   : > { %v1815_v47 = vpop.permute.xlu0 %1814  ;;  %v1974_v51 = vpop.permute.xlu1 %1973 }
 0x1c1   : > { %v2051_v60 = vsel %vm7058_vm2, %v5942_v43, %v1815_v47  ;;  %v1734_v47 = vld [vmem:[#allocation5 + $0x24] sm:$0x7]  ;;  %vm7066_vm2 = vmmov %vm7063_vm0 }
 0x1c2   : > { %v2063_v7 = vsel %vm2061_vm4, %v2051_v60, %v1838_v42 }
 0x1c4   : > { %v1944_v48 = vpop.permute.xlu0 %1943  ;;  %v1866_v52 = vpop.permute.xlu1 %1865 }
 0x1c5   : > { %v2090_v31 = vsel %vm7057_vm6, %v6080_v32, %v1944_v48  ;;  %v2074_v1 = vsel %vm2072_vm9, %v2063_v7, %v1866_v52  ;;  %v4504_v48 = vcombine.low %v5992_v62, %v1734_v47  ;;  %vm7065_vm6 = vmmov %vm7063_vm0 }
 0x1c6   : > { %v2104_v44 = vsel %vm2061_vm4, %v2090_v31, %v1974_v51  ;;  %v1745_v31 = vld [vmem:[#allocation5 + $0x8] sm:$0x8] }
 0x1c7   : > { %v4518_v62 = vcombine.low %v1745_v31, %v5931_v28 }
 0x1c8   : > { %v1946_v53 = vpop.permute.xlu0 %1945  ;;  %v1840_v49 = vpop.permute.xlu1 %1839 }
 0x1c9   : > { %v2093_v43 = vsel %vm7059_vm11, %v6089_v11, %v1946_v53  ;;  %vm5389_vm11 = vmmov 0   ;;  %v2039_v60 = vrot.slane %v4518_v62, 3 }
 0x1cc   : > { %v1976_v58 = vpop.permute.xlu0 %1975  ;;  %v1868_v50 = vpop.permute.xlu1 %1867 }
 0x1cd   : > { %v2106_v32 = vsel %vm2061_vm4, %v2093_v43, %v1976_v58  ;;  %v5099_v43 = vld [vmem:[%s7074_s4 + $0x40] sm:$0xff]  }
 0x1ce   : > { %4791 = vmatprep.subr.bf16.mxu0 %v5099_v43 }
 0x1d0   : > { %v1948_v34 = vpop.permute.xlu0 %1947  ;;  %v1842_v59 = vpop.permute.xlu1 %1841 }
 0x1d1   : > { %v2096_v25 = vsel %vm7062_vm15, %v6092_v40, %v1948_v34  ;;  %vm7070_vm15 = vmmov %vm7063_vm0 }
 0x1d4   : > { %v2026_v9 = vpop.permute.xlu0 %2025  ;;  %v1817_v61 = vpop.permute.xlu1 %1816 }
 0x1d5   : > { %v2114_v35 = vsel %vm2072_vm9, %v2104_v44, %v2026_v9  ;;  %v2053_v57 = vsel %vm7060_vm14, %v5935_v46, %v1817_v61  ;;  %vm7067_vm14 = vcmask 1044480   ;;  %v2042_v44 = vrot.slane %v6012_v19, 3 }
 0x1d6   : > { %2319 = vmatprep.mubr.bf16.mxu1 %v2114_v35  ;;  %v2065_v11 = vsel %vm2061_vm4, %v2053_v57, %v1840_v49  ;;  %v5101_v57 = vld [vmem:[%s7074_s4 + $0x48] sm:$0xff]  }
 0x1d7   : > { %2320 = vmatmul.mubr.bf16.vlgmr.msra.gmra.mrb[20].mxu1 %v2074_v1  ;;  %v2077_v2 = vsel %vm2072_vm9, %v2065_v11, %v1868_v50  ;;  %v5102_v11 = vld [vmem:[%s7074_s4 + $0x8] sm:$0xff]  }
 0x1d8   : > { %v2028_v8 = vpop.permute.xlu0 %2027  ;;  %v1870_v12 = vpop.permute.xlu1 %1869  ;;  %4923 = vmatpush3.bf16.msra.mxu1 %v5081_v6 }
 0x1d9   : > { %v2117_v3 = vsel %vm2072_vm9, %v2106_v32, %v2028_v8  ;;  %4924 = vmatprep.subr.bf16.mxu1 %v5388_v23  ;;  %v5100_v32 = vld [vmem:[%s7074_s4] sm:$0xff]  }
 0x1da   : > { %2327 = vmatprep.mubr.bf16.mxu1 %v2117_v3  ;;  %4792 = vmatpush3.bf16.msra.mxu0 %v5100_v32 }
 0x1db   : > { %4793 = vmatprep.subr.bf16.mxu0 %v5101_v57 }
 0x1dc   : > { %v1978_v27 = vpop.permute.xlu0 %1977  ;;  %v1819_v37 = vpop.permute.xlu1 %1818  ;;  %4925 = vmatpush3.bf16.msra.mxu1 %v5083_v0 }
 0x1dd   : > { %v2055_v30 = vsel %vm7061_vm13, %v5955_v54, %v1819_v37  ;;  %v2108_v17 = vsel %vm2061_vm4, %v2096_v25, %v1978_v27  ;;  %vm7068_vm13 = vmmov %vm7063_vm0  ;;  %v5103_v37 = vld [vmem:[%s7074_s4 + $0x50] sm:$0xff]  }
 0x1de   : > { %v2067_v16 = vsel %vm2061_vm4, %v2055_v30, %v1842_v59  ;;  %4794 = vmatpush3.bf16.msra.mxu0 %v5102_v11 }
 0x1df   : > { %2328 = vmatmul.mubr.bf16.gmra.mrb[24].mxu1 %v2077_v2  ;;  %v2080_v26 = vsel %vm2072_vm9, %v2067_v16, %v1870_v12  ;;  %v5104_v2 = vld [vmem:[%s7074_s4 + $0x10] sm:$0xff]   ;;  %4795 = vmatprep.subr.bf16.mxu0 %v5103_v37 }
 0x1e0   : > { %v1950_v46 = vpop.permute.xlu0 %1949  ;;  %v1844_v15 = vpop.permute.xlu1 %1843 }
 0x1e1   : > { %v2099_v40 = vsel %vm7064_vm5, %v6117_v63, %v1950_v46  ;;  %vm7072_vm5 = vmmov %vm7066_vm2  ;;  %v5105_v46 = vld [vmem:[%s7074_s4 + $0x58] sm:$0xff]  }
 0x1e2   : > { %4796 = vmatpush3.bf16.msra.mxu0 %v5104_v2 }
 0x1e3   : > { %4797 = vmatprep.subr.bf16.mxu0 %v5105_v46 }
 0x1e4   : > { %v1980_v13 = vpop.permute.xlu0 %1979  ;;  %v1872_v10 = vpop.permute.xlu1 %1871 }
 0x1e5   : > { %v2110_v38 = vsel %vm2061_vm4, %v2099_v40, %v1980_v13  ;;  %v5107_v13 = vld [vmem:[%s7074_s4 + $0x60] sm:$0xff]  }
 0x1e8   : > { %v2030_v18 = vpop.permute.xlu0 %2029  ;;  %v1821_v20 = vpop.permute.xlu1 %1820 }
 0x1e9   : > { %v2120_v21 = vsel %vm2072_vm9, %v2108_v17, %v2030_v18  ;;  %v2057_v33 = vsel %vm7063_vm0, %v6012_v19, %v1821_v20  ;;  %v5086_v19 = vld [vmem:[%s7074_s4 + $0x108] sm:$0xff]   ;;  %v5108_v18 = vld [vmem:[%s7074_s4 + $0x20] sm:$0xff]  }
 0x1ea   : > { %2335 = vmatprep.mubr.bf16.mxu1 %v2120_v21  ;;  %v2069_v36 = vsel %vm2061_vm4, %v2057_v33, %v1844_v15  ;;  %v5106_v15 = vld [vmem:[%s7074_s4 + $0x18] sm:$0xff]   ;;  %v5109_v21 = vld [vmem:[%s7074_s4 + $0x68] sm:$0xff]  }
 0x1eb   : > { %2336 = vmatmul.mubr.bf16.gmra.mrb[28].mxu1 %v2080_v26  ;;  %v2083_v42 = vsel %vm2072_vm9, %v2069_v36, %v1872_v10  ;;  %4798 = vmatpush3.bf16.msra.mxu0 %v5106_v15  ;;  %v5110_v26 = vld [vmem:[%s7074_s4 + $0x28] sm:$0xff]  }
 0x1ec   : > { %v1952_v22 = vpop.permute.xlu0 %1951  ;;  %v1823_v14 = vpop.permute.xlu1 %1822  ;;  %4799 = vmatprep.subr.bf16.mxu0 %v5107_v13 }
 0x1ed   : > { %v2102_v52 = vsel %vm7065_vm6, %v6120_v4, %v1952_v22  ;;  %v2060_v53 = vsel %vm7066_vm2, %v4504_v48, %v1823_v14  ;;  %v2040_v4 = vrot.slane %v5955_v54, 3  ;;  %vm7073_vm6 = vmmov %vm7066_vm2  ;;  %v5085_v54 = vld [vmem:[%s7074_s4 + $0x100] sm:$0xff]   ;;  %v5111_v22 = vld [vmem:[%s7074_s4 + $0x70] sm:$0xff]  }
 0x1ee   : > { %4946 = vmatprep.subr.bf16.mxu1 %v5085_v54 }
 0x1ef   : > { %v2041_v9 = vsel %vm7067_vm14, %v2039_v60, %v2040_v4  ;;  %4800 = vmatpush3.bf16.msra.mxu0 %v5108_v18 }
 0x1f0   : > { %v2032_v56 = vpop.permute.xlu0 %2031  ;;  %v1846_v39 = vpop.permute.xlu1 %1845  ;;  %4801 = vmatprep.subr.bf16.mxu0 %v5109_v21  ;;  %v6318_v21 = vld [vmem:[%s7081_s30] ss:$0 sm:$0xff] }
 0x1f1   : > { %v2123_v41 = vsel %vm2072_vm9, %v2110_v38, %v2032_v56  ;;  %v2071_v50 = vsel %vm2061_vm4, %v2060_v53, %v1846_v39  ;;  %v5112_v56 = vld [vmem:[%s7074_s4 + $0x30] sm:$0xff]   ;;  %v5113_v39 = vld [vmem:[%s7074_s4 + $0x78] sm:$0xff]  }
 0x1f2   : > { %2343 = vmatprep.mubr.bf16.mxu1 %v2123_v41 }
 0x1f3   : > { %2344 = vmatmul.mubr.bf16.gmra.mrb[32].mxu1 %v2083_v42  ;;  %4802 = vmatpush3.bf16.msra.mxu0 %v5110_v26  ;;  %v5114_v42 = vld [vmem:[%s7074_s4 + $0x38] sm:$0xff]  }
 0x1f4   : > { %v1982_v51 = vpop.permute.xlu0 %1981  ;;  %v1874_v63 = vpop.permute.xlu1 %1873  ;;  %4803 = vmatprep.subr.bf16.mxu0 %v5111_v22 }
 0x1f5   : > { %v2112_v49 = vsel %vm2061_vm4, %v2102_v52, %v1982_v51  ;;  %v2086_v59 = vsel %vm2072_vm9, %v2071_v50, %v1874_v63 }
 0x1f7   : > { %4804 = vmatpush3.bf16.msra.mxu0 %v5112_v56 }
 0x1f8   : > { %v2034_v58 = vpop.permute.xlu0 %2033  ;;  %4805 = vmatprep.subr.bf16.mxu0 %v5113_v39 }
 0x1f9   : > { %v2126_v34 = vsel %vm2072_vm9, %v2112_v49, %v2034_v58  ;;  %vm7069_vm9 = vmmov %vm7067_vm14  ;;  %vm2549_vm14 = vcmask 519168  }
 0x1fa   : > { %2351 = vmatprep.mubr.bf16.mxu1 %v2126_v34  ;;  %v2043_v61 = vsel %vm7069_vm9, %v2040_v4, %v2042_v44  ;;  %vm7071_vm0 = vmmov %vm7069_vm9  ;;  %2550 = vst.msk [vmem:[#allocation6] sm:$0xf] %vm2549_vm14, %v5384_v24  ;;  %vm7075_vm9 = vcmask 1045504  }
 0x1fb   : > { %2352 = vmatmul.mubr.bf16.gmra.mrb[36].mxu1 %v2086_v59  ;;  %v2045_v28 = vsel %vm7071_vm0, %v2042_v44, %v2044_v55  ;;  %2551 = vst.msk [vmem:[#allocation6 + $0x4] sm:$0xf] %vm2549_vm14, %v5384_v24  ;;  %2552 = vst.msk [vmem:[#allocation6 + $0x8] sm:$0xf] %vm2549_vm14, %v5384_v24  ;;  %4806 = vmatpush3.bf16.msra.mxu0 %v5114_v42  ;;  %vm7077_vm0 = vcmask 1046528  }
 0x1fc   : > { %4926 = vmatprep.mubr.msk.bf16.mxu1 %vm5389_vm11, %v5388_v23  ;;  %2553 = vst.msk [vmem:[#allocation6 + $0xc] sm:$0xf] %vm2549_vm14, %v5384_v24 }
 0x203   : > { %4927 = vmatmul.mubr.msk.bf16.vlgmr.msra.gmra.mrb[40].mxu1 %vm7068_vm13, %v2041_v9  ;;  %vm2554_vm13 = vcmask 517120  }
 0x204   : > { %4930 = vmatprep.mubr.msk.bf16.mxu1 %vm5389_vm11, %v5388_v23  ;;  %2555 = vst.msk [vmem:[#allocation6 + $0x10] sm:$0x3] %vm2554_vm13, %v5384_v24  ;;  %4947 = vmatpush3.bf16.msra.mxu1 %v5085_v54  ;;  %v5088_v24 = vld [vmem:[%s7074_s4 + $0x118] sm:$0xff]  }
 0x205   : > { %4948 = vmatprep.subr.bf16.mxu1 %v5086_v19 }
 0x208   : > { %4949 = vmatpush3.bf16.msra.mxu1 %v5086_v19 }
 0x209   : > { %4950 = vmatprep.subr.bf16.mxu1 %v5087_v45 }
 0x20b   : > { %4931 = vmatmul.mubr.msk.bf16.gmra.mrb[44].mxu1 %vm7070_vm15, %v2043_v61  ;;  %vm7076_vm15 = vmmov %vm7075_vm9 }
 0x20c   : > { %4934 = vmatprep.mubr.msk.bf16.mxu1 %vm5389_vm11, %v5388_v23  ;;  %4951 = vmatpush3.bf16.msra.mxu1 %v5087_v45 }
 0x20d   : > { %4952 = vmatprep.subr.bf16.mxu1 %v5088_v24 }
 0x210   : > { %4953 = vmatpush3.bf16.msra.mxu1 %v5088_v24 }
 0x213   : > { %4935 = vmatmul.mubr.msk.bf16.gmra.mrb[48].mxu1 %vm7072_vm5, %v2045_v28  ;;  %vm7078_vm5 = vmmov %vm7075_vm9 }
 0x214   : > { %4938 = vmatprep.mubr.msk.bf16.mxu1 %vm5389_vm11, %v5388_v23  ;;  %vm7082_vm14 = vmmov %vm7078_vm5 }
 0x21b   : > { %4939 = vmatmul.mubr.msk.bf16.gmra.mrb[52].mxu1 %vm7073_vm6, %v6125_v29  ;;  %vm7079_vm6 = vmmov %vm7078_vm5 }
 0x21c   : > { %4942 = vmatprep.mubr.msk.bf16.mxu1 %vm5389_vm11, %v5388_v23 }
 0x223   : > { %4943 = vmatmul.mubr.msk.bf16.gmra.mrb[56].mxu1 %vm7066_vm2, %v6128_v5  ;;  %vm7080_vm2 = vmmov %vm7077_vm0 }
 0x2aa   : > { %v4754_v55 = vpop.f32.mrb[20].mxu1 }
 0x2ab   : > { %v4755_v29 = vpop.f32.mrb[21].mxu1 }
 0x2ac   : > { %v4756_v5 = vadd.f32 %v4755_v29, %v4754_v55  ;;  %v4757_v6 = vpop.f32.mrb[22].mxu1 }
 0x2ad   : > { %v4758_v7 = vpop.f32.mrb[23].mxu1 }
 0x2ae   : > { %v4759_v35 = vadd.f32 %v4758_v7, %v4757_v6 }
 0x2b2   : > { %v4760_v1 = vpop.f32.mrb[24].mxu1 }
 0x2b3   : > { %v4761_v8 = vpop.f32.mrb[25].mxu1 }
 0x2b4   : > { %v4762_v12 = vadd.f32 %v4761_v8, %v4760_v1  ;;  %v4763_v0 = vpop.f32.mrb[26].mxu1 }
 0x2b5   : > { %v4764_v3 = vpop.f32.mrb[27].mxu1 }
 0x2b6   : > { %v4765_v27 = vadd.f32 %v4764_v3, %v4763_v0 }
 0x2be   : > { %v4766_v30 = vpop.f32.mrb[28].mxu1 }
 0x2bf   : > { %v4767_v10 = vpop.f32.mrb[29].mxu1 }
 0x2c0   : > { %v4768_v25 = vadd.f32 %v4767_v10, %v4766_v30  ;;  %v4769_v16 = vpop.f32.mrb[30].mxu1 }
 0x2c1   : > { %v4770_v17 = vpop.f32.mrb[31].mxu1 }
 0x2c2   : > { %v4771_v20 = vadd.f32 %v4770_v17, %v4769_v16 }
 0x2c6   : > { %v4772_v33 = vpop.f32.mrb[32].mxu1 }
 0x2c7   : > { %v4773_v14 = vpop.f32.mrb[33].mxu1 }
 0x2c8   : > { %v4774_v40 = vadd.f32 %v4773_v14, %v4772_v33  ;;  %v4775_v36 = vpop.f32.mrb[34].mxu1 }
 0x2c9   : > { %v4776_v38 = vpop.f32.mrb[35].mxu1 }
 0x2ca   : > { %v4777_v41 = vadd.f32 %v4776_v38, %v4775_v36 }
 0x2ce   : > { %v4778_v47 = vpop.f32.mrb[36].mxu1 }
 0x2cf   : > { %v4779_v51 = vpop.f32.mrb[37].mxu1 }
 0x2d0   : > { %v6304_v48 = vadd.f32 %v4779_v51, %v4778_v47  ;;  %v4781_v52 = vpop.f32.mrb[38].mxu1 }
 0x2d1   : > { %v4782_v63 = vpop.f32.mrb[39].mxu1 }
 0x2d2   : > { %v6306_v53 = vadd.f32 %v4782_v63, %v4781_v52 }
 0x2d6   : > { %v2394_v49 = vpop.f32.mrb[40].mxu1 }
 0x2d7   : > { %v2395_v58 = vadd.f32 %v4756_v5, %v2394_v49  ;;  %v4928_v50 = vpop.f32.mrb[41].mxu1 }
 0x2d8   : > { %v2397_v34 = vpop.f32.mrb[42].mxu1 }
 0x2d9   : > { %v2398_v59 = vadd.f32 %v4759_v35, %v2397_v34  ;;  %v4929_v31 = vpop.f32.mrb[43].mxu1 }
 0x2db   : > { %v2442_v44 = vrot.slane %v2398_v59, 2 }
 0x2de   : > { %v2402_v62 = vpop.f32.mrb[44].mxu1 }
 0x2df   : > { %v2403_v4 = vadd.f32 %v4762_v12, %v2402_v62  ;;  %v4932_v60 = vpop.f32.mrb[45].mxu1 }
 0x2e0   : > { %v2405_v9 = vpop.f32.mrb[46].mxu1 }
 0x2e1   : > { %v2443_v61 = vrot.slane %v2403_v4, 2  ;;  %v2406_v28 = vadd.f32 %v4765_v27, %v2405_v9  ;;  %v4933_v54 = vpop.f32.mrb[47].mxu1 }
 0x2e3   : > { %v2444_v19 = vsel %vm7075_vm9, %v2442_v44, %v2443_v61  ;;  %v2445_v45 = vrot.slane %v2406_v28, 2  ;;  %vm7083_vm9 = vmmov %vm7078_vm5 }
 0x2e4   : > { %v2468_v24 = vmax.f32 %v2395_v58, %v2444_v19 }
 0x2e5   : > { %v2446_v55 = vsel %vm7076_vm15, %v2443_v61, %v2445_v45  ;;  %vm2571_vm15 = vcmask 519171  }
 0x2e6   : > { %v2469_v29 = vmax.f32 %v2398_v59, %v2446_v55  ;;  %v2410_v5 = vpop.f32.mrb[48].mxu1  ;;  %v2486_v35 = vrot.slane %v2468_v24, 1 }
 0x2e7   : > { %v2411_v6 = vadd.f32 %v4768_v25, %v2410_v5  ;;  %v4936_v7 = vpop.f32.mrb[49].mxu1 }
 0x2e8   : > { %v2487_v1 = vrot.slane %v2469_v29, 1  ;;  %v2413_v43 = vpop.f32.mrb[50].mxu1  ;;  %v2578_v29 = vld [vmem:[#allocation6 + $0x4] sm:$0x3] }
 0x2e9   : > { %v2447_v32 = vrot.slane %v2411_v6, 2  ;;  %v2414_v57 = vadd.f32 %v4771_v20, %v2413_v43  ;;  %v4937_v8 = vpop.f32.mrb[51].mxu1 }
 0x2ea   : > { %v2488_v12 = vsel %vm7077_vm0, %v2486_v35, %v2487_v1 }
 0x2eb   : > { %v2512_v0 = vmax.f32 %v2468_v24, %v2488_v12  ;;  %v2448_v3 = vsel %vm7078_vm5, %v2445_v45, %v2447_v32  ;;  %v2449_v11 = vrot.slane %v2414_v57, 2  ;;  %vm2572_vm5 = vmand %vm2571_vm15, %vm1606_vm12 }
 0x2ec   : > { %v2470_v27 = vmax.f32 %v2403_v4, %v2448_v3  ;;  %v2573_v4 = vld [vmem:[#allocation6] sm:$0x8]  ;;  %vm2577_vm12 = vmand %vm2554_vm13, %vm1558_vm8  ;;  %vm2596_vm8 = vcmask 519170   ;;  %vm2601_vm13 = vcmask 516096  }
 0x2ed   : > { %2521 = vst.msk [vmem:[#allocation3] sm:$0xff] %vm2061_vm4, %v2512_v0  ;;  %v2450_v37 = vsel %vm7079_vm6, %v2447_v32, %v2449_v11  ;;  %vm7086_vm15 = vmmov %vm7077_vm0 }
 0x2ee   : > { %v2489_v2 = vrot.slane %v2470_v27, 1  ;;  %v2471_v46 = vmax.f32 %v2406_v28, %v2450_v37  ;;  %v2418_v15 = vpop.f32.mrb[52].mxu1 }
 0x2ef   : > { %v2419_v30 = vadd.f32 %v4774_v40, %v2418_v15  ;;  %v4940_v13 = vpop.f32.mrb[53].mxu1  ;;  %v2603_v15 = vld [vmem:[#allocation6 + $0x8] sm:$0x1] }
 0x2f0   : > { %v2491_v10 = vrot.slane %v2471_v46, 1  ;;  %v2421_v25 = vpop.f32.mrb[54].mxu1 }
 0x2f1   : > { %v2451_v16 = vrot.slane %v2419_v30, 2  ;;  %v2422_v17 = vadd.f32 %v4777_v41, %v2421_v25  ;;  %v4941_v18 = vpop.f32.mrb[55].mxu1 }
 0x2f2   : > { %v2492_v20 = vsel %vm7080_vm2, %v2489_v2, %v2491_v10  ;;  %vm7084_vm2 = vmmov %vm7079_vm6  ;;  %v2598_v2 = vld [vmem:[#allocation6 + $0x4] sm:$0xc] }
 0x2f3   : > { %v2514_v26 = vmax.f32 %v2470_v27, %v2492_v20  ;;  %v2452_v33 = vsel %vm7082_vm14, %v2449_v11, %v2451_v16  ;;  %v2453_v22 = vrot.slane %v2422_v17, 2  ;;  %vm7085_vm14 = vmmov %vm7077_vm0 }
 0x2f4   : > { %v2472_v14 = vmax.f32 %v2411_v6, %v2452_v33  ;;  %v2532_v36 = vld [vmem:[#allocation3] ss:$2 sm:$0xf] }
 0x2f5   : > { %2523 = vst.msk [vmem:[#allocation3 + $0x10] sm:$0xff] %vm2061_vm4, %v2514_v26  ;;  %v2454_v40 = vsel %vm7083_vm9, %v2451_v16, %v2453_v22  ;;  %v2539_v38 = vadd.f32 %v6318_v21, %v2532_v36  ;;  %vm2529_vm9 = vcmask 518144  }
 0x2f6   : > { %v2493_v56 = vrot.slane %v2472_v14, 1  ;;  %v2473_v41 = vmax.f32 %v2414_v57, %v2454_v40  ;;  %v2426_v39 = vpop.f32.mrb[56].mxu1 }
 0x2f7   : > { %v2427_v42 = vadd.f32 %v6304_v48, %v2426_v39  ;;  %v4944_v47 = vpop.f32.mrb[57].mxu1  ;;  %v4714_v51 = vpack.c.bf16 %v2539_v38, %v2539_v38  ;;  %v2622_v38 = vld [vmem:[#allocation6 + $0x8] sm:$0xe] }
 0x2f8   : > { %v2494_v52 = vsel %vm7077_vm0, %v2491_v10, %v2493_v56  ;;  %v2495_v63 = vrot.slane %v2473_v41, 1  ;;  %v2429_v49 = vpop.f32.mrb[58].mxu1  ;;  %vm2597_vm0 = vmand %vm2596_vm8, %vm1579_vm10  ;;  %vm2619_vm10 = vcmask 519169   ;;  %vm7090_vm8 = vcmask 1045504  }
 0x2f9   : > { %v2515_v58 = vmax.f32 %v2471_v46, %v2494_v52  ;;  %v2455_v50 = vrot.slane %v2427_v42, 2  ;;  %v2430_v34 = vadd.f32 %v6306_v53, %v2429_v49  ;;  %v2561_v59 = vshll.u32 %v4714_v51, 16  ;;  %v4945_v31 = vpop.f32.mrb[59].mxu1 }
 0x2fa   : > { %v2564_v62 = vshrl.u32 %v4714_v51, 16 }
 0x2fb   : > { %2524 = vst.msk [vmem:[#allocation3 + $0x18] sm:$0xff] %vm2061_vm4, %v2515_v58  ;;  %v2456_v48 = vsel %vm7079_vm6, %v2453_v22, %v2455_v50  ;;  %v2457_v60 = vrot.slane %v2430_v34, 2  ;;  %v2563_v9 = vrot.slane %v2561_v59, 5  ;;  %vm2620_vm6 = vsmask.f32 3334 }
 0x2fc   : > { %v2474_v44 = vmax.f32 %v2419_v30, %v2456_v48  ;;  %v2566_v61 = vrot.slane %v2564_v62, 4  ;;  %v5116_v62 = vld [vmem:[%s7074_s4 + $0xc0] sm:$0xff]  }
 0x2fd   : > { %v2458_v28 = vsel %vm7084_vm2, %v2455_v50, %v2457_v60  ;;  %v2476_v54 = vmax.f32 %v2427_v42, %v2457_v60  ;;  %v2574_v19 = vsel %vm2572_vm5, %v2563_v9, %v2573_v4  ;;  %vm2602_vm5 = vmand %vm2601_vm13, %vm1637_vm3  ;;  %vm2638_vm3 = vsmask.f32 2306  ;;  %v2654_v4 = vld [vmem:[#allocation6 + $0x10] sm:$0x3]  ;;  %4819 = vmatprep.subr.bf16.mxu0 %v5116_v62  ;;  %v5117_v62 = vld [vmem:[%s7074_s4 + $0x80] sm:$0xff]  }
 0x2fe   : > { %v2497_v45 = vrot.slane %v2474_v44, 1  ;;  %v2475_v53 = vmax.f32 %v2422_v17, %v2458_v28  ;;  %v2567_v24 = vor.u32 %v2566_v61, %v2563_v9  ;;  %2575 = vst [vmem:[#allocation6] sm:$0x8] %v2574_v19  ;;  %vm2621_vm2 = vmand %vm2619_vm10, %vm2620_vm6 }
 0x2ff   : > { %v2501_v55 = vrot.slane %v2476_v54, 1 }
 0x300   : > { %v2498_v5 = vsel %vm7085_vm14, %v2495_v63, %v2497_v45  ;;  %v2499_v6 = vrot.slane %v2475_v53, 1  ;;  %v2568_v7 = vrot.slane %v2567_v24, 4  ;;  %vm7087_vm14 = vcmask 1044480  }
 0x301   : > { %v2517_v35 = vmax.f32 %v2473_v41, %v2498_v5  ;;  %v2520_v1 = vmax.f32 %v2476_v54, %v2501_v55 }
 0x302   : > { %v2502_v43 = vsel %vm7086_vm15, %v2499_v6, %v2501_v55  ;;  %v2541_v32 = vld [vmem:[#allocation3 + $0x14] ss:$2 sm:$0xf]  ;;  %v2579_v57 = vsel %vm2577_vm12, %v2568_v7, %v2578_v29  ;;  %vm2639_vm12 = vmand %vm2529_vm9, %vm2638_vm3 }
 0x303   : > { %2526 = vst.msk [vmem:[#allocation3 + $0x28] sm:$0xff] %vm2061_vm4, %v2517_v35  ;;  %v2519_v8 = vmax.f32 %v2475_v53, %v2502_v43  ;;  %v2542_v12 = vadd.f32 %v6318_v21, %v2541_v32  ;;  %2580 = vst [vmem:[#allocation6 + $0x4] sm:$0x3] %v2579_v57 }
 0x304   : > { %2530 = vst.msk [vmem:[#allocation3 + $0x40] sm:$0x7] %vm2529_vm9, %v2520_v1  ;;  %vm7088_vm9 = vmmov %vm7087_vm14 }
 0x305   : > { %2528 = vst.msk [vmem:[#allocation3 + $0x38] sm:$0xff] %vm2061_vm4, %v2519_v8  ;;  %v4715_v0 = vpack.c.bf16 %v2542_v12, %v2542_v12  ;;  %v2643_v52 = vld [vmem:[#allocation6] sm:$0xf] }
 0x306   : > { %v2648_v58 = vld [vmem:[#allocation6] sm:$0x8] }
 0x307   : > { %v2586_v3 = vshrl.u32 %v4715_v0, 16  ;;  %v2589_v11 = vshll.u32 %v4715_v0, 16  ;;  %v2647_v34 = vld [vmem:[#allocation6] sm:$0xe] }
 0x309   : > { %v2588_v27 = vrot.slane %v2586_v3, 5  ;;  %v2591_v37 = vrot.slane %v2589_v11, 6 }
 0x30a   : > { %v2544_v46 = vld [vmem:[#allocation3 + $0x28] ss:$2 sm:$0xf] }
 0x30b   : > { %v2545_v30 = vadd.f32 %v6318_v21, %v2544_v46  ;;  %v2592_v13 = vor.u32 %v2591_v37, %v2588_v27  ;;  %v2593_v10 = vrot.slane %v2588_v27, 4 }
 0x30c   : > { %v2547_v25 = vld [vmem:[#allocation3 + $0x3c] ss:$2 sm:$0xf] }
 0x30d   : > { %v2548_v16 = vadd.f32 %v6318_v21, %v2547_v25  ;;  %v2599_v17 = vsel %vm2597_vm0, %v2592_v13, %v2598_v2  ;;  %v2604_v18 = vsel %vm2602_vm5, %v2593_v10, %v2603_v15  ;;  %v4716_v20 = vpack.c.bf16 %v2545_v30, %v2545_v30  ;;  %v2640_v21 = vld [vmem:[#allocation6 + $0xc] sm:$0x7]  ;;  %v2653_v30 = vld [vmem:[#allocation6 + $0x10] sm:$0x1] }
 0x30e   : > { %2600 = vst [vmem:[#allocation6 + $0x4] sm:$0xc] %v2599_v17  ;;  %2605 = vst [vmem:[#allocation6 + $0x8] sm:$0x1] %v2604_v18  ;;  %vm4334_vm0 = vcmask 130048  }
 0x30f   : > { %v2611_v26 = vshrl.u32 %v4716_v20, 16  ;;  %v2614_v33 = vshll.u32 %v4716_v20, 16  ;;  %v4717_v22 = vpack.c.bf16 %v2548_v16, %v2548_v16 }
 0x311   : > { %v2613_v14 = vrot.slane %v2611_v26, 6  ;;  %v2616_v36 = vrot.slane %v2614_v33, 7  ;;  %v2630_v40 = vshrl.u32 %v4717_v22, 16  ;;  %v2633_v39 = vshll.u32 %v4717_v22, 16 }
 0x313   : > { %v2617_v56 = vor.u32 %v2616_v36, %v2613_v14  ;;  %v2632_v41 = vrot.slane %v2630_v40, 7 }
 0x315   : > { %v2623_v42 = vsel %vm2621_vm2, %v2617_v56, %v2622_v38  ;;  %v2635_v47 = vor.u32 %v2633_v39, %v2632_v41  ;;  %v6344_v51 = vld [vmem:[#allocation6 + $0x4] sm:$0xf] }
 0x316   : > { %2624 = vst [vmem:[#allocation6 + $0x8] sm:$0xe] %v2623_v42  ;;  %v6347_v63 = vcombine.low %v2643_v52, %v6344_v51  ;;  %v4551_v59 = vcombine.low %v2648_v58, %v6344_v51  ;;  %v4550_v31 = vcombine.low %v2647_v34, %v6344_v51  ;;  %v2655_v48 = vld [vmem:[#allocation6 + $0x4] sm:$0x8] }
 0x317   : > { %v2641_v49 = vsel %vm2639_vm12, %v2635_v47, %v2640_v21  ;;  %v2651_v9 = vld [vmem:[#allocation6 + $0x4] sm:$0xc] }
 0x318   : > { %2642 = vst [vmem:[#allocation6 + $0xc] sm:$0x7] %v2641_v49  ;;  %v2670_v50 = vshll.u32 %v6347_v63, 16  ;;  %v2698_v61 = vrot.slane %v4551_v59, 3  ;;  %v2668_v28 = vshrl.u32 %v6347_v63, 16  ;;  %v2689_v54 = vrot.slane %v4550_v31, 1 }
 0x319   : > { %v2710_v19 = vshrl.u32 %v4551_v59, 16  ;;  %v2713_v55 = vshll.u32 %v4551_v59, 16 }
 0x31a   : > { %v2672_v60 = vrot.slane %v2670_v50, 1 }
 0x31b   : > { %v2712_v46 = vrot.slane %v2710_v19, 3  ;;  %v2715_v15 = vrot.slane %v2713_v55, 4 }
 0x31c   : > { %v2673_v1 = vor.u32 %v2672_v60, %v2668_v28  ;;  %v5120_v28 = vld [vmem:[%s7074_s4 + $0xd0] sm:$0xff]  }
 0x31d   : > { %v2646_v44 = vld [vmem:[#allocation6 + $0x8] sm:$0xf]  ;;  %v2716_v47 = vor.u32 %v2715_v15, %v2712_v46 }
 0x31e   : > { %v4559_v45 = vcombine.low %v2655_v48, %v2646_v44  ;;  %v6356_v53 = vcombine.low %v2646_v44, %v2646_v44  ;;  %v4556_v24 = vcombine.low %v2651_v9, %v2646_v44  ;;  %v4554_v50 = vcombine.low %v6344_v51, %v2646_v44  ;;  %v5118_v51 = vld [vmem:[%s7074_s4 + $0xc8] sm:$0xff]  }
 0x31f   : > { %v2652_v29 = vld [vmem:[#allocation6 + $0xc] sm:$0xf] }
 0x320   : > { %v2649_v5 = vld [vmem:[#allocation6 + $0xc] sm:$0x3]  ;;  %v4558_v7 = vcombine.low %v2652_v29, %v2654_v4  ;;  %v2675_v43 = vshll.u32 %v6356_v53, 16  ;;  %v2770_v32 = vrot.slane %v4559_v45, 3  ;;  %v2747_v57 = vshrl.u32 %v4556_v24, 16  ;;  %v5122_v45 = vld [vmem:[%s7074_s4 + $0x90] sm:$0xff]  }
 0x321   : > { %v2650_v6 = vld [vmem:[#allocation6 + $0xc] sm:$0x7]  ;;  %v4552_v35 = vcombine.low %v2646_v44, %v2649_v5  ;;  %v2750_v8 = vshll.u32 %v4556_v24, 16  ;;  %v2679_v16 = vshrl.u32 %v6356_v53, 16  ;;  %v2690_v14 = vrot.slane %v6356_v53, 1  ;;  %v5124_v53 = vld [vmem:[%s7074_s4 + $0xd8] sm:$0xff]  }
 0x322   : > { %v4553_v12 = vcombine.low %v2646_v44, %v2650_v6  ;;  %v2771_v0 = vrot.slane %v4558_v7, 3  ;;  %v2677_v11 = vrot.slane %v2675_v43, 1  ;;  %v2755_v27 = vshrl.u32 %v4558_v7, 16  ;;  %v5119_v44 = vld [vmem:[%s7074_s4 + $0x88] sm:$0xff]   ;;  %v5126_v5 = vld [vmem:[%s7074_s4 + $0xe0] sm:$0xff]   ;;  %v5131_v43 = vld [vmem:[%s7074_s4 + $0xb0] sm:$0xff]  }
 0x323   : > { %v2699_v3 = vrot.slane %v4552_v35, 3  ;;  %v2758_v37 = vshll.u32 %v4558_v7, 16  ;;  %v2749_v17 = vrot.slane %v2747_v57, 2  ;;  %v2752_v18 = vrot.slane %v2750_v8, 3  ;;  %v5128_v7 = vld [vmem:[%s7074_s4 + $0xe8] sm:$0xff]   ;;  %v5133_v57 = vld [vmem:[%s7074_s4 + $0xb8] sm:$0xff]  }
 0x324   : > { %v2718_v2 = vshrl.u32 %v4553_v12, 16  ;;  %v2772_v13 = vsel %vm7087_vm14, %v2770_v32, %v2771_v0  ;;  %v2678_v25 = vsel %vm1774_vm1, %v2673_v1, %v2677_v11  ;;  %v2757_v20 = vrot.slane %v2755_v27, 2  ;;  %vm7089_vm1 = vmmov %vm7086_vm15  ;;  %v5129_v35 = vld [vmem:[%s7074_s4 + $0xa8] sm:$0xff]   ;;  %v5130_v1 = vld [vmem:[%s7074_s4 + $0xf0] sm:$0xff]  }
 0x325   : > { %v2700_v10 = vsel %vm7088_vm9, %v2698_v61, %v2699_v3  ;;  %4954 = vmatprep.mubr.msk.bf16.mxu1 %vm2061_vm4, %v2772_v13  ;;  %v2760_v26 = vrot.slane %v2758_v37, 3  ;;  %2682 = vrot.lane.b32.xlu1 %v2678_v25, %s7043_s2  ;;  %v2721_v22 = vshll.u32 %v4553_v12, 16  ;;  %v4557_v36 = vcombine.low %v2652_v29, %v2653_v30  ;;  %v5125_v29 = vld [vmem:[%s7074_s4 + $0x98] sm:$0xff]   ;;  %v5134_v30 = vld [vmem:[%s6957_s11] ss:$8 sps:$4 sm:$0xff]   ;;  %vm7091_vm13 = vmmov %vm7089_vm1 }
 0x326   : > { %2701 = vrot.lane.b32.xlu0 %v2700_v10, %s7043_s2  ;;  %4955 = vmatmul.mubr.msk.bf16.vlgmr.msra.gmra.mrb[60].mxu1 %vm2061_vm4, %v2771_v0  ;;  %v2720_v33 = vrot.slane %v2718_v2, 3  ;;  %v2681_v40 = vor.u32 %v2679_v16, %v2677_v11  ;;  %v2691_v41 = vsel %vm7089_vm1, %v2689_v54, %v2690_v14  ;;  %v2740_v39 = vrot.slane %v4556_v24, 2  ;;  %v5132_v32 = vld [vmem:[%s7074_s4 + $0xf8] sm:$0xff]   ;;  %v5136_v13 = vld [vmem:[%s6957_s11 + $0x4] ss:$8 sps:$4 sm:$0xff]  }
 0x327   : > { %v2761_v38 = vor.u32 %v2760_v26, %v2757_v20  ;;  %v2723_v56 = vrot.slane %v2721_v22, 4  ;;  %v6369_v21 = vrot.slane %v4557_v36, 2  ;;  %vm2708_vm15 = vsmask.f32 4352  ;;  %v5139_v10 = vld [vmem:[%s6957_s11 + $0x14] ss:$8 sps:$4 sm:$0xff]  }
 0x328   : > { %v2753_v42 = vor.u32 %v2752_v18, %v2749_v17  ;;  %v4555_v59 = vcombine.low %v2650_v6, %v2650_v6  ;;  %v5127_v6 = vld [vmem:[%s7074_s4 + $0xa0] sm:$0xff]   ;;  %v5137_v25 = vld [vmem:[%s6957_s11 + $0x10] ss:$8 sps:$4 sm:$0xff]   ;;  %v5145_v18 = vld [vmem:[%s6957_s11 + $0x34] ss:$8 sps:$4 sm:$0xff]   ;;  %s729_s4 = scalar_lea.vmem [#allocation7], %s728_s28 }
 0x329   : > { %2684 = vrot.lane.b32.xlu1 %v2681_v40, %s7043_s2  ;;  %v6373_v52 = vor.u32 %v2723_v56, %v2720_v33  ;;  %v2742_v49 = vsel %vm7090_vm8, %v2740_v39, %v6369_v21  ;;  %v5142_v16 = vld [vmem:[%s6957_s11 + $0x24] ss:$8 sps:$4 sm:$0xff]   ;;  %v5140_v17 = vld [vmem:[%s6957_s11 + $0x20] ss:$8 sps:$4 sm:$0xff]   ;;  %v5143_v20 = vld [vmem:[%s6957_s11 + $0x30] ss:$8 sps:$4 sm:$0xff]  }
 0x32a   : > { %2703 = vrot.lane.b32.xlu0 %v2699_v3, %s7043_s2  ;;  %v2762_v58 = vsel %vm1986_vm7, %v2753_v42, %v2761_v38  ;;  %v5148_v26 = vld [vmem:[%s6957_s11 + $0x44] ss:$8 sps:$4 sm:$0xff]   ;;  %v5146_v33 = vld [vmem:[%s6957_s11 + $0x40] ss:$8 sps:$4 sm:$0xff]   ;;  %v5151_v22 = vld [vmem:[%s6957_s11 + $0x54] ss:$8 sps:$4 sm:$0xff]  }
 0x32b   : > { %v2725_v34 = vsel %vm2708_vm15, %v2716_v47, %v6373_v52  ;;  %v5154_v36 = vld [vmem:[%s6957_s11 + $0x64] ss:$8 sps:$4 sm:$0xff]   ;;  %v5152_v40 = vld [vmem:[%s6957_s11 + $0x60] ss:$8 sps:$4 sm:$0xff]   ;;  %v5155_v56 = vld [vmem:[%s6957_s11 + $0x70] ss:$8 sps:$4 sm:$0xff]  }
 0x32c   : > { %v5158_v39 = vld [vmem:[%s6957_s11 + $0x80] ss:$8 sps:$4 sm:$0xff]   ;;  %v5161_v42 = vld [vmem:[%s6957_s11 + $0x90] ss:$8 sps:$4 sm:$0xff]   ;;  %v5166_v47 = vld [vmem:[%s6957_s11 + $0xa4] ss:$8 sps:$4 sm:$0xff]  }
 0x32d   : > { %2728 = vrot.lane.b32.xlu1 %v4554_v50, %s7043_s2  ;;  %v5172_v50 = vld [vmem:[%s6957_s11 + $0xc4] ss:$8 sps:$4 sm:$0xff]   ;;  %vm3245_vm7 = vcmask 1041408   ;;  %s4393_s30 = sshll.u32 %s729_s4, 4  ;;  %s6906_s30 = int_to_ptr.vmem [resolvable:$true] %s4393_s30 }
 0x32e   : > { %2763 = vrot.lane.b32.xlu0 %v2762_v58, %s7043_s2  ;;  %v5167_v58 = vld [vmem:[%s6957_s11 + $0xb0] ss:$8 sps:$4 sm:$0xff]  }
 0x331   : > { %2730 = vrot.lane.b32.xlu1 %v4555_v59, %s7043_s2  ;;  %v5175_v59 = vld [vmem:[%s6957_s11 + $0xd4] ss:$8 sps:$4 sm:$0xff]  }
 0x332   : > { %2765 = vrot.lane.b32.xlu0 %v2761_v38, %s7043_s2  ;;  %v5157_v38 = vld [vmem:[%s6957_s11 + $0x74] ss:$8 sps:$4 sm:$0xff]   ;;  %s5319_s2 = scalar_lea.vmem %s6906_s30, 16 }
 0x333   : > { %p5320_p11 = scmp.ne.s32.totalorder %s6906_s30, %s5319_s2 }
 0x335   : > { %p5321_p12 = pnand %p5320_p11, %p5554_p5 }
 0x337   : > { %p5322_p13 = pneg %p5321_p12 }
 0x397   : > { %v2683_v4 = vpop.permute.xlu1 %2682 }
 0x398   : > { %v2702_v31 = vpop.permute.xlu0 %2701  ;;  %v2774_v60 = vsel %vm2061_vm4, %v6347_v63, %v2683_v4  ;;  %v5121_v63 = vld [vmem:[#allocation6 + $0x8] ss:$0 sps:$4 sm:$0x77]   ;;  %v5176_v4 = vld [vmem:[%s6957_s11 + $0xe0] ss:$8 sps:$4 sm:$0xff]  }
 0x399   : > { %v2782_v48 = vsel %vm2061_vm4, %v2691_v41, %v2702_v31  ;;  %v5160_v41 = vld [vmem:[%s6957_s11 + $0x84] ss:$8 sps:$4 sm:$0xff]   ;;  %v5173_v31 = vld [vmem:[%s6957_s11 + $0xd0] ss:$8 sps:$4 sm:$0xff]  }
 0x39a   : > { %3130 = vmatprep.mubr.bf16.mxu0 %v2782_v48  ;;  %v5181_v48 = vld [vmem:[%s6957_s11 + $0xf4] ss:$8 sps:$4 sm:$0xff]  }
 0x39b   : > { %3131 = vmatmul.mubr.bf16.vlgmr.msra.gmra.mrb[16].mxu0 %v2774_v60  ;;  %v2685_v54 = vpop.permute.xlu1 %2684  ;;  %v5184_v60 = vld [vmem:[%s6957_s11 + $0x104] ss:$8 sps:$4 sm:$0xff]  }
 0x39c   : > { %4820 = vmatpush3.bf16.msra.mxu0 %v5117_v62  ;;  %v2704_v9 = vpop.permute.xlu0 %2703  ;;  %v2778_v24 = vsel %vm2061_vm4, %v5121_v63, %v2685_v54  ;;  %v5178_v62 = vld [vmem:[%s6957_s11 + $0xe4] ss:$8 sps:$4 sm:$0xff]  }
 0x39d   : > { %v2786_v61 = vsel %vm2061_vm4, %v2690_v14, %v2704_v9  ;;  %4821 = vmatprep.subr.bf16.mxu0 %v5118_v51  ;;  %v5149_v14 = vld [vmem:[%s6957_s11 + $0x50] ss:$8 sps:$4 sm:$0xff]  }
 0x39e   : > { %3138 = vmatprep.mubr.bf16.mxu0 %v2786_v61  ;;  %v5179_v51 = vld [vmem:[%s6957_s11 + $0xf0] ss:$8 sps:$4 sm:$0xff]  }
 0x39f   : > { %v2729_v8 = vpop.permute.xlu1 %2728 }
 0x3a0   : > { %4822 = vmatpush3.bf16.msra.mxu0 %v5119_v44  ;;  %v2764_v19 = vpop.permute.xlu0 %2763  ;;  %v2790_v0 = vsel %vm2061_vm4, %v2725_v34, %v2729_v8  ;;  %v5170_v34 = vld [vmem:[%s6957_s11 + $0xc0] ss:$8 sps:$4 sm:$0xff]  }
 0x3a1   : > { %4823 = vmatprep.subr.bf16.mxu0 %v5120_v28  ;;  %v2798_v55 = vsel %vm2061_vm4, %v2742_v49, %v2764_v19  ;;  %v5169_v49 = vld [vmem:[%s6957_s11 + $0xb4] ss:$8 sps:$4 sm:$0xff]  }
 0x3a3   : > { %3139 = vmatmul.mubr.bf16.gmra.mrb[20].mxu0 %v2778_v24  ;;  %v2731_v11 = vpop.permute.xlu1 %2730 }
 0x3a4   : > { %4824 = vmatpush3.bf16.msra.mxu0 %v5122_v45  ;;  %3178 = vmatprep.mubr.bf16.mxu0 %v2798_v55  ;;  %v2766_v12 = vpop.permute.xlu0 %2765  ;;  %v2794_v27 = vsel %vm2061_vm4, %v6373_v52, %v2731_v11  ;;  %v5164_v52 = vld [vmem:[%s6957_s11 + $0xa0] ss:$8 sps:$4 sm:$0xff]  }
 0x3a5   : > { %4825 = vmatprep.subr.bf16.mxu0 %v5124_v53  ;;  %v2802_v3 = vsel %vm2061_vm4, %v6369_v21, %v2766_v12  ;;  %v5163_v21 = vld [vmem:[%s6957_s11 + $0x94] ss:$8 sps:$4 sm:$0xff]  }
 0x3a8   : > { %4826 = vmatpush3.bf16.msra.mxu0 %v5125_v29 }
 0x3a9   : > { %4827 = vmatprep.subr.bf16.mxu0 %v5126_v5 }
 0x3ac   : > { %4828 = vmatpush3.bf16.msra.mxu0 %v5127_v6 }
 0x3ad   : > { %4829 = vmatprep.subr.bf16.mxu0 %v5128_v7 }
 0x3b0   : > { %4830 = vmatpush3.bf16.msra.mxu0 %v5129_v35 }
 0x3b1   : > { %4831 = vmatprep.subr.bf16.mxu0 %v5130_v1 }
 0x3b4   : > { %4832 = vmatpush3.bf16.msra.mxu0 %v5131_v43 }
 0x3b5   : > { %4833 = vmatprep.subr.bf16.mxu0 %v5132_v32 }
 0x3b8   : > { %4834 = vmatpush3.bf16.msra.mxu0 %v5133_v57 }
 0x3b9   : > { %3846 = vmatprep.subr.bf16.mxu0 %v5136_v13 }
 0x3bb   : > { %3179 = vmatmul.mubr.bf16.vlgmr.msra.gmra.mrb[24].mxu0 %v2790_v0 }
 0x3bc   : > { %3186 = vmatprep.mubr.bf16.mxu0 %v2802_v3  ;;  %3847 = vmatpush1.bf16.msra.mxu0 %v5134_v30 }
 0x3bd   : > { %3848 = vmatprep.subr.bf16.mxu0 %v5139_v10 }
 0x3c0   : > { %3849 = vmatpush1.bf16.msra.mxu0 %v5137_v25 }
 0x3c1   : > { %3850 = vmatprep.subr.bf16.mxu0 %v5142_v16 }
 0x3c3   : > { %3187 = vmatmul.mubr.bf16.gmra.mrb[28].mxu0 %v2794_v27 }
 0x3c4   : > { %3851 = vmatpush1.bf16.msra.mxu0 %v5140_v17 }
 0x3c5   : > { %3852 = vmatprep.subr.bf16.mxu0 %v5145_v18 }
 0x3c8   : > { %3853 = vmatpush1.bf16.msra.mxu0 %v5143_v20 }
 0x3c9   : > { %3854 = vmatprep.subr.bf16.mxu0 %v5148_v26 }
 0x3cc   : > { %3855 = vmatpush1.bf16.msra.mxu0 %v5146_v33 }
 0x3cd   : > { %3856 = vmatprep.subr.bf16.mxu0 %v5151_v22  ;;  %v3292_v22 = vlaneseq }
 0x3d0   : > { %3857 = vmatpush1.bf16.msra.mxu0 %v5149_v14 }
 0x3d1   : > { %3858 = vmatprep.subr.bf16.mxu0 %v5154_v36  ;;  %v6549_v36 = vshrl.u32 %v3292_v22, 7 }
 0x3d4   : > { %3859 = vmatpush1.bf16.msra.mxu0 %v5152_v40  ;;  %v4598_v40 = vld [vmem:[%s7092_s7] ss:$0 sm:$0xff] }
 0x3d5   : > { %3860 = vmatprep.subr.bf16.mxu0 %v5157_v38 }
 0x3d8   : > { %3861 = vmatpush1.bf16.msra.mxu0 %v5155_v56 }
 0x3d9   : > { %3862 = vmatprep.subr.bf16.mxu0 %v5160_v41 }
 0x3dc   : > { %3863 = vmatpush1.bf16.msra.mxu0 %v5158_v39 }
 0x3dd   : > { %3864 = vmatprep.subr.bf16.mxu0 %v5163_v21  ;;  %v3286_v21 = vld [vmem:[%s7093_s8 + $0x10] sm:$0xff] }
 0x3e0   : > { %3865 = vmatpush1.bf16.msra.mxu0 %v5161_v42  ;;  %v3290_v42 = vld [vmem:[%s7093_s8 + $0x30] sm:$0xff] }
 0x3e1   : > { %3866 = vmatprep.subr.bf16.mxu0 %v5166_v47  ;;  %v3285_v47 = vld [vmem:[%s7093_s8 + $0x8] sm:$0xff] }
 0x3e4   : > { %3867 = vmatpush1.bf16.msra.mxu0 %v5164_v52  ;;  %v3284_v52 = vld [vmem:[%s7093_s8] sm:$0xff] }
 0x3e5   : > { %3868 = vmatprep.subr.bf16.mxu0 %v5169_v49  ;;  %v3288_v49 = vld [vmem:[%s7093_s8 + $0x20] sm:$0xff] }
 0x3e8   : > { %3869 = vmatpush1.bf16.msra.mxu0 %v5167_v58 }
 0x3e9   : > { %3870 = vmatprep.subr.bf16.mxu0 %v5172_v50 }
 0x3ec   : > { %3871 = vmatpush1.bf16.msra.mxu0 %v5170_v34 }
 0x3ed   : > { %3872 = vmatprep.subr.bf16.mxu0 %v5175_v59 }
 0x3f0   : > { %3873 = vmatpush1.bf16.msra.mxu0 %v5173_v31  ;;  %v3287_v31 = vld [vmem:[%s7093_s8 + $0x18] sm:$0xff] }
 0x3f1   : > { %3874 = vmatprep.subr.bf16.mxu0 %v5178_v62  ;;  %v3291_v62 = vld [vmem:[%s7093_s8 + $0x38] sm:$0xff] }
 0x3f4   : > { %3875 = vmatpush1.bf16.msra.mxu0 %v5176_v4  ;;  %v3318_v4 = vld [vmem:[%s7094_s0 + $0x10] sm:$0xff] }
 0x3f5   : > { %3876 = vmatprep.subr.bf16.mxu0 %v5181_v48  ;;  %v3289_v48 = vld [vmem:[%s7093_s8 + $0x28] sm:$0xff] }
 0x3f8   : > { %3877 = vmatpush1.bf16.msra.mxu0 %v5179_v51  ;;  %v3316_v51 = vld [vmem:[%s7094_s0] sm:$0xff] }
 0x3f9   : > { %v6440_v37 = vpop.f32.mrb[60].mxu1  ;;  %3887 = vmatprep.subr.bf16.mxu0 %v5184_v60  ;;  %v3320_v60 = vld [vmem:[%s7094_s0 + $0x20] sm:$0xff] }
 0x3fa   : > { %v6442_v2 = vpop.f32.mrb[61].mxu1 }
 0x3fb   : > { %v4957_v46 = vpop.f32.mrb[62].mxu1 }
 0x3fc   : > { %v6444_v15 = vpop.f32.mrb[63].mxu1 }
 0x46e   : > { %v4807_v9 = vpop.f32.mrb[16].mxu0 }
 0x46f   : > { %v4808_v44 = vpop.f32.mrb[17].mxu0 }
 0x470   : > { %v4809_v61 = vadd.f32 %v4808_v44, %v4807_v9  ;;  %v4810_v28 = vpop.f32.mrb[18].mxu0 }
 0x471   : > { %v4811_v54 = vpop.f32.mrb[19].mxu0 }
 0x472   : > { %v4812_v19 = vadd.f32 %v4811_v54, %v4810_v28 }
 0x476   : > { %v4813_v63 = vpop.f32.mrb[20].mxu0 }
 0x477   : > { %v4814_v45 = vpop.f32.mrb[21].mxu0 }
 0x478   : > { %v4815_v53 = vadd.f32 %v4814_v45, %v4813_v63  ;;  %v4816_v24 = vpop.f32.mrb[22].mxu0  ;;  %v3319_v63 = vld [vmem:[%s7094_s0 + $0x18] sm:$0xff] }
 0x479   : > { %v4817_v55 = vpop.f32.mrb[23].mxu0  ;;  %v3323_v45 = vld [vmem:[%s7094_s0 + $0x38] sm:$0xff]  ;;  %v3317_v24 = vld [vmem:[%s7094_s0 + $0x8] sm:$0xff] }
 0x47a   : > { %v3321_v55 = vld [vmem:[%s7094_s0 + $0x28] sm:$0xff] }
 0x48e   : > { %v4835_v29 = vpop.f32.mrb[24].mxu0 }
 0x48f   : > { %v4836_v5 = vpop.f32.mrb[25].mxu0 }
 0x490   : > { %v4837_v6 = vadd.f32 %v4836_v5, %v4835_v29  ;;  %v4838_v7 = vpop.f32.mrb[26].mxu0 }
 0x491   : > { %v4839_v35 = vpop.f32.mrb[27].mxu0 }
 0x492   : > { %v3181_v1 = vadd.f32 %v4837_v6, %v4809_v61  ;;  %v4840_v43 = vadd.f32 %v4839_v35, %v4838_v7 }
 0x494   : > { %v3229_v32 = vadd.f32 %v6442_v2, %v3181_v1  ;;  %v3184_v57 = vadd.f32 %v4840_v43, %v4812_v19 }
 0x496   : > { %v3232_v8 = vadd.f32 %v6444_v15, %v3184_v57  ;;  %v4841_v12 = vpop.f32.mrb[28].mxu0  ;;  %v3246_v3 = vrot.slane %v3229_v32, 6 }
 0x497   : > { %v4842_v0 = vpop.f32.mrb[29].mxu0 }
 0x498   : > { %v3247_v11 = vrot.slane %v3232_v8, 6  ;;  %v4843_v27 = vadd.f32 %v4842_v0, %v4841_v12  ;;  %v4844_v46 = vpop.f32.mrb[30].mxu0 }
 0x499   : > { %v4845_v30 = vpop.f32.mrb[31].mxu0 }
 0x49a   : > { %v3248_v13 = vsel %vm3245_vm7, %v3246_v3, %v3247_v11  ;;  %v3189_v10 = vadd.f32 %v4843_v27, %v4815_v53  ;;  %v3322_v53 = vld [vmem:[%s7094_s0 + $0x30] sm:$0xff]  ;;  %s5323_s0 = sshll.u32 %s5390_s24, 4  ;;  %s5324_s0 = int_to_ptr.vmem [resolvable:$false] %s5323_s0 }
 0x49b   : > { %v3253_v25 = vmax.f32 %v3229_v32, %v3248_v13  ;;  %s5325_s7 = scalar_lea.vmem %s5324_s0, 32  ;;  %p5326_p0 = scmp.lt.s32.totalorder %s6906_s30, %s5324_s0 }
 0x49c   : > { %v3237_v16 = vadd.f32 %v6440_v37, %v3189_v10  ;;  %v6555_v37 = vsub.s32 0, %v6549_v36  ;;  %p5327_p1 = scmp.lt.s32.totalorder %s5325_s7, %s5319_s2 }
 0x49d   : > { %v3257_v2 = vrot.slane %v3253_v25, 1 }
 0x49e   : > { %v3249_v17 = vrot.slane %v3237_v16, 6  ;;  %p5328_p2 = por %p5327_p1, %p5326_p0 }
 0x4a0   : > { %v3250_v18 = vsel %vm3245_vm7, %v3247_v11, %v3249_v17  ;;  %p5329_p3 = pnand %p5328_p2, %p5322_p13 }
 0x4a1   : > { %v3254_v20 = vmax.f32 %v3232_v8, %v3250_v18 }
 0x4a3   : > { %v3258_v26 = vrot.slane %v3254_v20, 1 }
 0x4a5   : > { %v3259_v15 = vsel %vm7091_vm13, %v3257_v2, %v3258_v26  ;;  %v3263_v33 = vmax.f32 %v3254_v20, %v3258_v26 }
 0x4a6   : > { %v3262_v14 = vmax.f32 %v3253_v25, %v3259_v15 }
 0x4a7   : > { %3265 = vst [vmem:[#allocation4 + $0x8] sm:$0x7f] %v3263_v33 }
 0x4a8   : > { %3264 = vst [vmem:[#allocation4] sm:$0xff] %v3262_v14 }
 0x4ae   : > { %v3276_v38 = vld [vmem:[#allocation4 + $0xc] ss:$2 sm:$0x3] }
 0x4af   : > { %v3267_v56 = vld [vmem:[#allocation4] ss:$2 sm:$0x3]  ;;  %v3277_v41 = vadd.f32 %v4598_v40, %v3276_v38 }
 0x4b0   : > { %v3274_v39 = vadd.f32 %v4598_v40, %v3267_v56 }
 0x4b1   : > { %v3282_v58 = vrot.slane %v3277_v41, 1  ;;  %v3303_v50 = vrot.slane %v3277_v41, %v6555_v37 }
 0x4b2   : > { %v3279_v34 = vrot.slane %v3274_v39, 1  ;;  %v3295_v59 = vrot.slane %v3274_v39, %v6555_v37 }
 0x4b3   : > { %v3307_v9 = vrot.slane %v3282_v58, %v6555_v37  ;;  %v3310_v44 = vmul.f32 %v3303_v50, %v3286_v21  ;;  %v3314_v61 = vmul.f32 %v3303_v50, %v3290_v42  ;;  %v3392_v50 = vld [vmem:[%s6955_s9 + $0x20] sm:$0xff] }
 0x4b4   : > { %v3299_v28 = vrot.slane %v3279_v34, %v6555_v37  ;;  %v3308_v54 = vmul.f32 %v3295_v59, %v3284_v52  ;;  %v3312_v19 = vmul.f32 %v3295_v59, %v3288_v49  ;;  %v3388_v52 = vld [vmem:[%s6955_s9] sm:$0xff]  ;;  %v3389_v59 = vld [vmem:[%s6955_s9 + $0x8] sm:$0xff] }
 0x4b5   : > { %v3311_v29 = vmul.f32 %v3307_v9, %v3287_v31  ;;  %v3315_v5 = vmul.f32 %v3307_v9, %v3291_v62  ;;  %v6609_v6 = vadd.f32 %v3318_v4, %v3310_v44  ;;  %v6615_v8 = vadd.f32 %v3322_v53, %v3314_v61  ;;  %v3395_v53 = vld [vmem:[%s6955_s9 + $0x38] sm:$0xff] }
 0x4b6   : > { %v3309_v7 = vmul.f32 %v3299_v28, %v3285_v47  ;;  %v3313_v35 = vmul.f32 %v3299_v28, %v3289_v48  ;;  %v3324_v1 = vadd.f32 %v3316_v51, %v3308_v54  ;;  %v3328_v43 = vadd.f32 %v3320_v60, %v3312_v19  ;;  %v3393_v48 = vld [vmem:[%s6955_s9 + $0x28] sm:$0xff]  ;;  %v3391_v28 = vld [vmem:[%s6955_s9 + $0x18] sm:$0xff]  ;;  %v3390_v54 = vld [vmem:[%s6955_s9 + $0x10] sm:$0xff] }
 0x4b7   : > { %v6611_v32 = vadd.f32 %v3319_v63, %v3311_v29  ;;  %v6613_v57 = vadd.f32 %v3323_v45, %v3315_v5  ;;  %v4601_v12 = vmul.f32 -1.442695, %v6609_v6  ;;  %v4605_v25 = vmul.f32 -1.442695, %v6615_v8 }
 0x4b8   : > { %v3325_v0 = vadd.f32 %v3317_v24, %v3309_v7  ;;  %v3329_v3 = vadd.f32 %v3321_v55, %v3313_v35  ;;  %v4599_v11 = vmul.f32 -1.442695, %v3324_v1  ;;  %v4603_v27 = vmul.f32 -1.442695, %v3328_v43 }
 0x4b9   : > { %5251 = vpow2.f32 %v4601_v12  ;;  %v4602_v13 = vmul.f32 -1.442695, %v6611_v32  ;;  %v4606_v10 = vmul.f32 -1.442695, %v6613_v57 }
 0x4ba   : > { %v4600_v46 = vmul.f32 -1.442695, %v3325_v0  ;;  %v4604_v30 = vmul.f32 -1.442695, %v3329_v3  ;;  %5253 = vpow2.f32 %v4599_v11 }
 0x4bb   : > { %5255 = vpow2.f32 %v4603_v27 }
 0x4bc   : > { %5257 = vpow2.f32 %v4600_v46 }
 0x4bd   : > { %5259 = vpow2.f32 %v4604_v30 }
 0x4be   : > { %5261 = vpow2.f32 %v4602_v13 }
 0x4bf   : > { %5263 = vpow2.f32 %v4606_v10 }
 0x4c0   : > { %5265 = vpow2.f32 %v4605_v25 }
 0x4c3   : > { %v5252_v16 = vpop.eup %5251 }
 0x4c4   : > { %v5254_v17 = vpop.eup %5253  ;;  %v3358_v18 = vadd.f32 1.0, %v5252_v16  ;;  %v3432_v16 = vld [vmem:[%s6956_s10] sm:$0xf] }
 0x4c5   : > { %v5256_v20 = vpop.eup %5255  ;;  %v3356_v2 = vadd.f32 1.0, %v5254_v17 }
 0x4c6   : > { %v5258_v26 = vpop.eup %5257  ;;  %v3360_v15 = vadd.f32 1.0, %v5256_v20  ;;  %5267 = vrcp.f32 %v3358_v18 }
 0x4c7   : > { %v5260_v33 = vpop.eup %5259  ;;  %v3357_v22 = vadd.f32 1.0, %v5258_v26  ;;  %5269 = vrcp.f32 %v3356_v2 }
 0x4c8   : > { %v5262_v14 = vpop.eup %5261  ;;  %v3361_v40 = vadd.f32 1.0, %v5260_v33  ;;  %5271 = vrcp.f32 %v3360_v15  ;;  %v3448_v33 = vsub.s32 3, %v6549_v36 }
 0x4c9   : > { %v5264_v38 = vpop.eup %5263  ;;  %5273 = vrcp.f32 %v3357_v22  ;;  %v3359_v56 = vadd.f32 1.0, %v5262_v14  ;;  %v3437_v22 = vrot.slane %v3432_v16, %v6555_v37 }
 0x4ca   : > { %v5266_v41 = vpop.eup %5265  ;;  %5275 = vrcp.f32 %v3361_v40  ;;  %v3363_v39 = vadd.f32 1.0, %v5264_v38  ;;  %v3444_v40 = vsub.s32 2, %v6549_v36 }
 0x4cb   : > { %5277 = vrcp.f32 %v3359_v56  ;;  %v3362_v21 = vadd.f32 1.0, %v5266_v41 }
 0x4cc   : > { %5279 = vrcp.f32 %v3363_v39 }
 0x4cd   : > { %5281 = vrcp.f32 %v3362_v21 }
 0x4d0   : > { %v5268_v42 = vpop.eup %5267 }
 0x4d1   : > { %v5270_v47 = vpop.eup %5269  ;;  %v3382_v60 = vmul.f32 %v5268_v42, %v6609_v6  ;;  %v3394_v6 = vld [vmem:[%s6955_s9 + $0x30] sm:$0xff] }
 0x4d2   : > { %v5272_v49 = vpop.eup %5271  ;;  %v3380_v58 = vmul.f32 %v5270_v47, %v3324_v1 }
 0x4d3   : > { %v5274_v34 = vpop.eup %5273  ;;  %v3384_v31 = vmul.f32 %v5272_v49, %v3328_v43  ;;  %v3398_v1 = vmul.f32 %v3390_v54, %v3382_v60  ;;  %v5187_v60 = vld [vmem:[%s6957_s11 + $0x114] ss:$8 sps:$4 sm:$0xff]   ;;  %v5188_v54 = vld [vmem:[%s6957_s11 + $0x120] ss:$8 sps:$4 sm:$0xff]  }
 0x4d4   : > { %v5276_v62 = vpop.eup %5275  ;;  %v3381_v4 = vmul.f32 %v5274_v34, %v3325_v0  ;;  %v3396_v51 = vmul.f32 %v3388_v52, %v3380_v58  ;;  %v3449_v52 = vrot.slane %v3432_v16, %v3448_v33  ;;  %v5235_v33 = vld [vmem:[%s6962_s16 + $0x10] sm:$0xff]  }
 0x4d5   : > { %v5278_v9 = vpop.eup %5277  ;;  %v3385_v44 = vmul.f32 %v5276_v62, %v3329_v3  ;;  %v3400_v61 = vmul.f32 %v3392_v50, %v3384_v31  ;;  %v3445_v50 = vrot.slane %v3432_v16, %v3444_v40  ;;  %v5238_v40 = vld [vmem:[%s6962_s16 + $0x60] sm:$0xff]  }
 0x4d6   : > { %v5280_v19 = vpop.eup %5279  ;;  %v3397_v63 = vmul.f32 %v3389_v59, %v3381_v4  ;;  %v3383_v45 = vmul.f32 %v5278_v9, %v6611_v32  ;;  %v5182_v4 = vld [vmem:[%s6957_s11 + $0x100] ss:$8 sps:$4 sm:$0xff]  }
 0x4d7   : > { %v5282_v24 = vpop.eup %5281  ;;  %v3401_v55 = vmul.f32 %v3393_v48, %v3385_v44  ;;  %v3404_v29 = vadd.f32 %v3400_v61, %v3396_v51  ;;  %v3387_v5 = vmul.f32 %v5280_v19, %v6613_v57  ;;  %v5185_v61 = vld [vmem:[%s6957_s11 + $0x110] ss:$8 sps:$4 sm:$0xff]   ;;  %v5193_v19 = vld [vmem:[%s6957_s11 + $0x134] ss:$8 sps:$4 sm:$0xff]  }
 0x4d8   : > { %v3399_v7 = vmul.f32 %v3391_v28, %v3383_v45  ;;  %v3386_v35 = vmul.f32 %v5282_v24, %v6615_v8  ;;  %v3440_v8 = vsub.s32 1, %v6549_v36  ;;  %v5190_v28 = vld [vmem:[%s6957_s11 + $0x124] ss:$8 sps:$4 sm:$0xff]   ;;  %v5199_v24 = vld [vmem:[%s6957_s11 + $0x154] ss:$8 sps:$4 sm:$0xff]  }
 0x4d9   : > { %v3411_v43 = vadd.f32 %v3401_v55, %v3397_v63  ;;  %v3405_v12 = vrot.slane %v3404_v29, 4  ;;  %v3403_v32 = vmul.f32 %v3395_v53, %v3387_v5  ;;  %v5191_v63 = vld [vmem:[%s6957_s11 + $0x130] ss:$8 sps:$4 sm:$0xff]   ;;  %v5196_v45 = vld [vmem:[%s6957_s11 + $0x144] ss:$8 sps:$4 sm:$0xff]  }
 0x4da   : > { %v3402_v0 = vmul.f32 %v3394_v6, %v3386_v35  ;;  %v3441_v56 = vrot.slane %v3432_v16, %v3440_v8  ;;  %v5194_v53 = vld [vmem:[%s6957_s11 + $0x140] ss:$8 sps:$4 sm:$0xff]   ;;  %v5197_v55 = vld [vmem:[%s6957_s11 + $0x150] ss:$8 sps:$4 sm:$0xff]   ;;  %v5205_v6 = vld [vmem:[%s6957_s11 + $0x174] ss:$8 sps:$4 sm:$0xff]  }
 0x4db   : > { %v3412_v3 = vrot.slane %v3411_v43, 4  ;;  %v3406_v11 = vadd.f32 %v3405_v12, %v3404_v29  ;;  %v3425_v27 = vadd.f32 %v3403_v32, %v3399_v7  ;;  %v5202_v29 = vld [vmem:[%s6957_s11 + $0x164] ss:$8 sps:$4 sm:$0xff]   ;;  %v5200_v5 = vld [vmem:[%s6957_s11 + $0x160] ss:$8 sps:$4 sm:$0xff]  }
 0x4dc   : > { %v3418_v46 = vadd.f32 %v3402_v0, %v3398_v1  ;;  %v5203_v7 = vld [vmem:[%s6957_s11 + $0x170] ss:$8 sps:$4 sm:$0xff]   ;;  %v5208_v35 = vld [vmem:[%s6957_s11 + $0x184] ss:$8 sps:$4 sm:$0xff]   ;;  %v5206_v1 = vld [vmem:[%s6957_s11 + $0x180] ss:$8 sps:$4 sm:$0xff]  }
 0x4dd   : > { %v3413_v30 = vadd.f32 %v3412_v3, %v3411_v43  ;;  %v3407_v13 = vrot.slane %v3406_v11, 2  ;;  %v3426_v10 = vrot.slane %v3425_v27, 4  ;;  %v5211_v43 = vld [vmem:[%s6957_s11 + $0x194] ss:$8 sps:$4 sm:$0xff]   ;;  %v5209_v12 = vld [vmem:[%s6957_s11 + $0x190] ss:$8 sps:$4 sm:$0xff]  }
 0x4de   : > { %v3419_v57 = vrot.slane %v3418_v46, 4  ;;  %v5214_v32 = vld [vmem:[%s6957_s11 + $0x1a4] ss:$8 sps:$4 sm:$0xff]   ;;  %v5212_v0 = vld [vmem:[%s6957_s11 + $0x1a0] ss:$8 sps:$4 sm:$0xff]  }
 0x4df   : > { %v3414_v25 = vrot.slane %v3413_v30, 2  ;;  %v3408_v17 = vadd.f32 %v3407_v13, %v3406_v11  ;;  %v3427_v18 = vadd.f32 %v3426_v10, %v3425_v27  ;;  %v5217_v3 = vld [vmem:[%s6957_s11 + $0x1b4] ss:$8 sps:$4 sm:$0xff]   ;;  %v5215_v11 = vld [vmem:[%s6957_s11 + $0x1b0] ss:$8 sps:$4 sm:$0xff]   ;;  %v5247_v36 = vld [vmem:[%s6967_s21 + $0x8] sm:$0xff]  }
 0x4e0   : > { %v3420_v20 = vadd.f32 %v3419_v57, %v3418_v46  ;;  %v5220_v27 = vld [vmem:[%s6957_s11 + $0x1c4] ss:$8 sps:$4 sm:$0xff]   ;;  %v5218_v46 = vld [vmem:[%s6957_s11 + $0x1c0] ss:$8 sps:$4 sm:$0xff]   ;;  %v5221_v13 = vld [vmem:[%s6957_s11 + $0x1d0] ss:$8 sps:$4 sm:$0xff]  }
 0x4e1   : > { %v3415_v2 = vadd.f32 %v3414_v25, %v3413_v30  ;;  %v3409_v26 = vrot.slane %v3408_v17, 1  ;;  %v3428_v15 = vrot.slane %v3427_v18, 2  ;;  %v5223_v30 = vld [vmem:[%s6957_s11 + $0x1d4] ss:$8 sps:$4 sm:$0xff]   ;;  %v5226_v10 = vld [vmem:[%s6957_s11 + $0x1e4] ss:$8 sps:$4 sm:$0xff]  }
 0x4e2   : > { %v3421_v14 = vrot.slane %v3420_v20, 2  ;;  %v5224_v57 = vld [vmem:[%s6957_s11 + $0x1e0] ss:$8 sps:$4 sm:$0xff]   ;;  %v5229_v25 = vld [vmem:[%s6957_s11 + $0x1f4] ss:$8 sps:$4 sm:$0xff]  }
 0x4e3   : > { %v3416_v38 = vrot.slane %v3415_v2, 1  ;;  %v3410_v41 = vadd.f32 %v3409_v26, %v3408_v17  ;;  %v3429_v39 = vadd.f32 %v3428_v15, %v3427_v18  ;;  %v5227_v16 = vld [vmem:[%s6957_s11 + $0x1f0] ss:$8 sps:$4 sm:$0xff]   ;;  %v5230_v18 = vld [vmem:[%s6962_s16 + $0x40] sm:$0xff]   ;;  %v5233_v26 = vld [vmem:[%s6962_s16 + $0x8] sm:$0xff]  }
 0x4e4   : > { %v3422_v21 = vadd.f32 %v3421_v14, %v3420_v20  ;;  %v5231_v20 = vld [vmem:[%s6962_s16] sm:$0xff]   ;;  %4853 = vmatprep.subr.bf16.mxu1 %v5230_v18  ;;  %v5234_v15 = vld [vmem:[%s6962_s16 + $0x50] sm:$0xff]   ;;  %v5237_v14 = vld [vmem:[%s6962_s16 + $0x18] sm:$0xff]  }
 0x4e5   : > { %v3417_v42 = vadd.f32 %v3416_v38, %v3415_v2  ;;  %v3430_v47 = vrot.slane %v3429_v39, 1  ;;  %v3454_v49 = vadd.f32 %v3437_v22, %v3410_v41  ;;  %v5232_v2 = vld [vmem:[%s6962_s16 + $0x48] sm:$0xff]   ;;  %4854 = vmatpush3.bf16.msra.mxu1 %v5231_v20  ;;  %v5236_v22 = vld [vmem:[%s6962_s16 + $0x58] sm:$0xff]   ;;  %v5239_v38 = vld [vmem:[%s6962_s16 + $0x20] sm:$0xff]  }
 0x4e6   : > { %v3423_v58 = vrot.slane %v3422_v21, 1  ;;  %4855 = vmatprep.subr.bf16.mxu1 %v5232_v2  ;;  %v5241_v41 = vld [vmem:[%s6962_s16 + $0x28] sm:$0xff]   ;;  %v3994_v20 = vld [vmem:[%s6960_s14] sm:$0xff] }
 0x4e7   : > { %v3455_v34 = vadd.f32 %v3441_v56, %v3417_v42  ;;  %v3431_v59 = vadd.f32 %v3430_v47, %v3429_v39  ;;  %v3458_v51 = vpack.c.bf16 %v3454_v49, %v3454_v49  ;;  %v5240_v56 = vld [vmem:[%s6962_s16 + $0x68] sm:$0xff]   ;;  %v5242_v39 = vld [vmem:[%s6962_s16 + $0x70] sm:$0xff]   ;;  %v5244_v42 = vld [vmem:[%s6962_s16 + $0x78] sm:$0xff]  }
 0x4e8   : > { %v3424_v31 = vadd.f32 %v3423_v58, %v3422_v21  ;;  %v5243_v21 = vld [vmem:[%s6962_s16 + $0x30] sm:$0xff]   ;;  %v5245_v47 = vld [vmem:[%s6962_s16 + $0x38] sm:$0xff]  }
 0x4e9   : > { %v3459_v62 = vpack.c.bf16 %v3455_v34, %v3455_v34  ;;  %v3457_v48 = vadd.f32 %v3449_v52, %v3431_v59  ;;  %4856 = vmatpush3.bf16.msra.mxu1 %v5233_v26 }
 0x4ea   : > { %v6664_v9 = vadd.f32 %v3445_v50, %v3424_v31  ;;  %4857 = vmatprep.subr.bf16.mxu1 %v5234_v15  ;;  %v3996_v15 = vld [vmem:[%s6960_s14 + $0x10] sm:$0xff] }
 0x4eb   : > { %3878 = vmatprep.mubr.bf16.mxu0 %v3459_v62  ;;  %v3461_v44 = vpack.c.bf16 %v3457_v48, %v3457_v48 }
 0x4ec   : > { %3879 = vmatmul.mubr.bf16.vlgmr.msra.gmra.mrb[32].mxu0 %v3458_v51  ;;  %v3460_v17 = vpack.c.bf16 %v6664_v9, %v6664_v9 }
 0x4ed   : > { %3888 = vmatpush1.bf16.msra.mxu0 %v5182_v4  ;;  %3919 = vmatprep.mubr.bf16.mxu0 %v3461_v44  ;;  %v3942_v44 = vld [vmem:[%s6958_s12] sm:$0xff] }
 0x4ee   : > { %3889 = vmatprep.subr.bf16.mxu0 %v5187_v60  ;;  %4858 = vmatpush3.bf16.msra.mxu1 %v5235_v33 }
 0x4ef   : > { %4859 = vmatprep.subr.bf16.mxu1 %v5236_v22 }
 0x4f1   : > { %3890 = vmatpush1.bf16.msra.mxu0 %v5185_v61  ;;  %v3944_v61 = vld [vmem:[%s6958_s12 + $0x10] sm:$0xff] }
 0x4f2   : > { %3891 = vmatprep.subr.bf16.mxu0 %v5190_v28  ;;  %4860 = vmatpush3.bf16.msra.mxu1 %v5237_v14  ;;  %v3995_v14 = vld [vmem:[%s6960_s14 + $0x8] sm:$0xff] }
 0x4f3   : > { %4861 = vmatprep.subr.bf16.mxu1 %v5238_v40 }
 0x4f5   : > { %3892 = vmatpush1.bf16.msra.mxu0 %v5188_v54 }
 0x4f6   : > { %3893 = vmatprep.subr.bf16.mxu0 %v5193_v19  ;;  %4862 = vmatpush3.bf16.msra.mxu1 %v5239_v38  ;;  %v3943_v19 = vld [vmem:[%s6958_s12 + $0x8] sm:$0xff] }
 0x4f7   : > { %4863 = vmatprep.subr.bf16.mxu1 %v5240_v56 }
 0x4f9   : > { %3894 = vmatpush1.bf16.msra.mxu0 %v5191_v63  ;;  %v3945_v63 = vld [vmem:[%s6958_s12 + $0x18] sm:$0xff] }
 0x4fa   : > { %3895 = vmatprep.subr.bf16.mxu0 %v5196_v45  ;;  %4864 = vmatpush3.bf16.msra.mxu1 %v5241_v41  ;;  %v3958_v45 = vld [vmem:[%s6959_s13] sm:$0xff]  ;;  %v3997_v41 = vld [vmem:[%s6960_s14 + $0x18] sm:$0xff] }
 0x4fb   : > { %4865 = vmatprep.subr.bf16.mxu1 %v5242_v39 }
 0x4fd   : > { %3896 = vmatpush1.bf16.msra.mxu0 %v5194_v53  ;;  %v3960_v53 = vld [vmem:[%s6959_s13 + $0x10] sm:$0xff] }
 0x4fe   : > { %3897 = vmatprep.subr.bf16.mxu0 %v5199_v24  ;;  %4866 = vmatpush3.bf16.msra.mxu1 %v5243_v21 }
 0x4ff   : > { %4867 = vmatprep.subr.bf16.mxu1 %v5244_v42 }
 0x501   : > { %3898 = vmatpush1.bf16.msra.mxu0 %v5197_v55 }
 0x502   : > { %3899 = vmatprep.subr.bf16.mxu0 %v5202_v29  ;;  %4868 = vmatpush3.bf16.msra.mxu1 %v5245_v47 }
 0x503   : > { %4958 = vmatprep.subr.bf16.mxu1 %v5388_v23 }
 0x505   : > { %3900 = vmatpush1.bf16.msra.mxu0 %v5200_v5  ;;  %v3959_v5 = vld [vmem:[%s6959_s13 + $0x8] sm:$0xff] }
 0x506   : > { %3901 = vmatprep.subr.bf16.mxu0 %v5205_v6  ;;  %v3961_v6 = vld [vmem:[%s6959_s13 + $0x18] sm:$0xff] }
 0x509   : > { %3902 = vmatpush1.bf16.msra.mxu0 %v5203_v7 }
 0x50a   : > { %3903 = vmatprep.subr.bf16.mxu0 %v5208_v35 }
 0x50d   : > { %3904 = vmatpush1.bf16.msra.mxu0 %v5206_v1 }
 0x50e   : > { %3905 = vmatprep.subr.bf16.mxu0 %v5211_v43 }
 0x511   : > { %3906 = vmatpush1.bf16.msra.mxu0 %v5209_v12 }
 0x512   : > { %3907 = vmatprep.subr.bf16.mxu0 %v5214_v32 }
 0x515   : > { %3908 = vmatpush1.bf16.msra.mxu0 %v5212_v0 }
 0x516   : > { %3909 = vmatprep.subr.bf16.mxu0 %v5217_v3 }
 0x519   : > { %3910 = vmatpush1.bf16.msra.mxu0 %v5215_v11 }
 0x51a   : > { %3911 = vmatprep.subr.bf16.mxu0 %v5220_v27 }
 0x51d   : > { %3912 = vmatpush1.bf16.msra.mxu0 %v5218_v46 }
 0x51e   : > { %3913 = vmatprep.subr.bf16.mxu0 %v5223_v30 }
 0x521   : > { %3914 = vmatpush1.bf16.msra.mxu0 %v5221_v13 }
 0x522   : > { %3915 = vmatprep.subr.bf16.mxu0 %v5226_v10 }
 0x525   : > { %3916 = vmatpush1.bf16.msra.mxu0 %v5224_v57 }
 0x526   : > { %3917 = vmatprep.subr.bf16.mxu0 %v5229_v25 }
 0x529   : > { %3918 = vmatpush1.bf16.msra.mxu0 %v5227_v16 }
 0x52c   : > { %3920 = vmatmul.mubr.bf16.vlgmr.msra.gmra.mrb[32].mxu0 %v3460_v17 }
 0x5ff   : > { %v3921_v52 = vpop.f32.mrb[32].mxu0 }
 0x600   : > { %v4671_v49 = vmul.f32 -1.442695, %v3921_v52  ;;  %v3923_v58 = vpop.f32.mrb[33].mxu0 }
 0x601   : > { %v4672_v50 = vmul.f32 -1.442695, %v3923_v58  ;;  %v3925_v34 = vpop.f32.mrb[34].mxu0 }
 0x602   : > { %5283 = vpow2.f32 %v4671_v49  ;;  %v3926_v59 = vpop.f32.mrb[35].mxu0 }
 0x603   : > { %5285 = vpow2.f32 %v4672_v50 }
 0x60c   : > { %v5284_v31 = vpop.eup %5283 }
 0x60d   : > { %v5286_v62 = vpop.eup %5285  ;;  %v3934_v4 = vadd.f32 1.0, %v5284_v31 }
 0x60e   : > { %v3935_v48 = vadd.f32 1.0, %v5286_v62 }
 0x60f   : > { %5287 = vrcp.f32 %v3934_v4  ;;  %v4016_v4 = vld [vmem:[%s6961_s15] sm:$0x3] }
 0x610   : > { %5289 = vrcp.f32 %v3935_v48 }
 0x619   : > { %v5288_v51 = vpop.eup %5287 }
 0x61a   : > { %v5290_v60 = vpop.eup %5289  ;;  %v3940_v9 = vmul.f32 %v5288_v51, %v3921_v52 }
 0x61b   : > { %v3941_v28 = vmul.f32 %v5290_v60, %v3923_v58 }
 0x61c   : > { %v3949_v54 = vrot.slane %v3940_v9, %v6555_v37  ;;  %v4021_v9 = vrot.slane %v4016_v4, %v6555_v37 }
 0x61d   : > { %v3953_v24 = vrot.slane %v3941_v28, %v6555_v37 }
 0x61e   : > { %v3954_v55 = vmul.f32 %v3949_v54, %v3942_v44  ;;  %v3956_v29 = vmul.f32 %v3949_v54, %v3944_v61  ;;  %v4025_v61 = vrot.slane %v4016_v4, %v3440_v8  ;;  %v5248_v8 = vld [vmem:[%s6967_s21 + $0x10] sm:$0xff]  }
 0x61f   : > { %v3955_v7 = vmul.f32 %v3953_v24, %v3943_v19  ;;  %v3957_v35 = vmul.f32 %v3953_v24, %v3945_v63  ;;  %v5246_v24 = vld [vmem:[%s6967_s21] sm:$0xff]  }
 0x620   : > { %v3962_v1 = vadd.f32 %v3958_v45, %v3954_v55  ;;  %v3964_v43 = vadd.f32 %v3960_v53, %v3956_v29  ;;  %v5249_v55 = vld [vmem:[%s6967_s21 + $0x18] sm:$0xff]  }
 0x621   : > { %v3963_v12 = vadd.f32 %v3959_v5, %v3955_v7  ;;  %v3965_v32 = vadd.f32 %v3961_v6, %v3957_v35 }
 0x622   : > { %v4673_v0 = vmul.f32 -1.442695, %v3962_v1  ;;  %v4675_v3 = vmul.f32 -1.442695, %v3964_v43 }
 0x623   : > { %v4674_v11 = vmul.f32 -1.442695, %v3963_v12  ;;  %v4676_v27 = vmul.f32 -1.442695, %v3965_v32 }
 0x624   : > { %5291 = vpow2.f32 %v4673_v0 }
 0x625   : > { %5293 = vpow2.f32 %v4675_v3  ;;  %v4207_v3 = vld [vmem:[%s6963_s17] sm:$0xff] }
 0x626   : > { %5295 = vpow2.f32 %v4674_v11  ;;  %v4208_v11 = vld [vmem:[%s6963_s17 + $0x8] sm:$0xff] }
 0x627   : > { %5297 = vpow2.f32 %v4676_v27 }
 0x62e   : > { %v5292_v46 = vpop.eup %5291 }
 0x62f   : > { %v5294_v30 = vpop.eup %5293  ;;  %v3978_v13 = vadd.f32 1.0, %v5292_v46  ;;  %v4215_v46 = vld [vmem:[%s6964_s18] sm:$0xff] }
 0x630   : > { %v5296_v10 = vpop.eup %5295  ;;  %v3980_v57 = vadd.f32 1.0, %v5294_v30  ;;  %v4216_v30 = vld [vmem:[%s6964_s18 + $0x8] sm:$0xff] }
 0x631   : > { %v5298_v25 = vpop.eup %5297  ;;  %5299 = vrcp.f32 %v3978_v13  ;;  %v3979_v16 = vadd.f32 1.0, %v5296_v10 }
 0x632   : > { %5301 = vrcp.f32 %v3980_v57  ;;  %v3981_v17 = vadd.f32 1.0, %v5298_v25 }
 0x633   : > { %5303 = vrcp.f32 %v3979_v16 }
 0x634   : > { %5305 = vrcp.f32 %v3981_v17 }
 0x63b   : > { %v5300_v18 = vpop.eup %5299 }
 0x63c   : > { %v5302_v2 = vpop.eup %5301  ;;  %v3990_v26 = vmul.f32 %v5300_v18, %v3962_v1 }
 0x63d   : > { %v5304_v33 = vpop.eup %5303  ;;  %v3992_v22 = vmul.f32 %v5302_v2, %v3964_v43 }
 0x63e   : > { %v5306_v40 = vpop.eup %5305  ;;  %v3998_v38 = vmul.f32 %v3994_v20, %v3990_v26  ;;  %v3991_v56 = vmul.f32 %v5304_v33, %v3963_v12 }
 0x63f   : > { %v4000_v39 = vmul.f32 %v3996_v15, %v3992_v22  ;;  %v3993_v21 = vmul.f32 %v5306_v40, %v3965_v32  ;;  %v4233_v15 = vld [vmem:[%s6965_s19] sm:$0xff] }
 0x640   : > { %v3999_v42 = vmul.f32 %v3995_v14, %v3991_v56  ;;  %v4234_v14 = vld [vmem:[%s6965_s19 + $0x8] sm:$0xff] }
 0x641   : > { %v4002_v47 = vadd.f32 %v4000_v39, %v3998_v38  ;;  %v4001_v52 = vmul.f32 %v3997_v41, %v3993_v21 }
 0x643   : > { %v4003_v49 = vrot.slane %v4002_v47, 4  ;;  %v4009_v58 = vadd.f32 %v4001_v52, %v3999_v42 }
 0x645   : > { %v4010_v50 = vrot.slane %v4009_v58, 4  ;;  %v4004_v34 = vadd.f32 %v4003_v49, %v4002_v47 }
 0x647   : > { %v4011_v59 = vadd.f32 %v4010_v50, %v4009_v58  ;;  %v4005_v31 = vrot.slane %v4004_v34, 2  ;;  %v4246_v50 = vld [vmem:[%s6966_s20] sm:$0x1] }
 0x649   : > { %v4012_v62 = vrot.slane %v4011_v59, 2  ;;  %v4006_v48 = vadd.f32 %v4005_v31, %v4004_v34  ;;  %v5250_v31 = vld [vmem:[%s6968_s22] sm:$0xff]  }
 0x64b   : > { %v4013_v51 = vadd.f32 %v4012_v62, %v4011_v59  ;;  %v4007_v60 = vrot.slane %v4006_v48, 1 }
 0x64d   : > { %v4014_v44 = vrot.slane %v4013_v51, 1  ;;  %v4008_v28 = vadd.f32 %v4007_v60, %v4006_v48 }
 0x64f   : > { %v4015_v54 = vadd.f32 %v4014_v44, %v4013_v51  ;;  %v4028_v19 = vadd.f32 %v4021_v9, %v4008_v28  ;;  %v4327_v44 = vld [vmem:[%s6969_s23] sm:$0x1] }
 0x651   : > { %v4029_v63 = vadd.f32 %v4025_v61, %v4015_v54  ;;  %v4030_v53 = vpack.c.bf16 %v4028_v19, %v4028_v19 }
 0x653   : > { %v4031_v45 = vpack.c.bf16 %v4029_v63, %v4029_v63 }
 0x655   : > { %4192 = vmatprep.mubr.bf16.mxu1 %v4031_v45 }
 0x656   : > { %4193 = vmatmul.mubr.bf16.vlgmr.msra.gmra.mrb[64].mxu1 %v4030_v53 }
 0x657   : > { %4966 = vmatprep.mubr.msk.bf16.mxu1 %vm5389_vm11, %v5388_v23  ;;  %4959 = vmatpush3.bf16.msra.mxu1 %v5246_v24 }
 0x658   : > { %4960 = vmatprep.subr.bf16.mxu1 %v5388_v23 }
 0x65b   : > { %4961 = vmatpush3.bf16.msra.mxu1 %v5247_v36 }
 0x65c   : > { %4962 = vmatprep.subr.bf16.mxu1 %v5388_v23 }
 0x65f   : > { %4963 = vmatpush3.bf16.msra.mxu1 %v5248_v8 }
 0x660   : > { %4964 = vmatprep.subr.bf16.mxu1 %v5388_v23 }
 0x663   : > { %4965 = vmatpush3.bf16.msra.mxu1 %v5249_v55 }
 0x664   : > { %4970 = vmatprep.subr.bf16.mxu1 %v5388_v23 }
 0x729   : > { %v4869_v29 = vpop.f32.mrb[64].mxu1 }
 0x72a   : > { %v4870_v5 = vpop.f32.mrb[65].mxu1 }
 0x72b   : > { %v4871_v6 = vadd.f32 %v4870_v5, %v4869_v29  ;;  %v4872_v7 = vpop.f32.mrb[66].mxu1 }
 0x72c   : > { %v4873_v35 = vpop.f32.mrb[67].mxu1 }
 0x72d   : > { %v4693_v1 = vmul.f32 -1.442695, %v4871_v6 }
 0x72f   : > { %5307 = vpow2.f32 %v4693_v1 }
 0x739   : > { %v5308_v43 = vpop.eup %5307 }
 0x73a   : > { %v4203_v12 = vadd.f32 1.0, %v5308_v43 }
 0x73c   : > { %5309 = vrcp.f32 %v4203_v12 }
 0x746   : > { %v5310_v32 = vpop.eup %5309 }
 0x747   : > { %v4206_v0 = vmul.f32 %v5310_v32, %v4871_v6 }
 0x749   : > { %v4212_v27 = vrot.slane %v4206_v0, %v6555_v37 }
 0x74b   : > { %v4213_v13 = vmul.f32 %v4212_v27, %v4207_v3  ;;  %v4214_v10 = vmul.f32 %v4212_v27, %v4208_v11 }
 0x74d   : > { %v4217_v57 = vadd.f32 %v4215_v46, %v4213_v13  ;;  %v4218_v25 = vadd.f32 %v4216_v30, %v4214_v10 }
 0x74f   : > { %v4694_v16 = vmul.f32 -1.442695, %v4217_v57  ;;  %v4695_v17 = vmul.f32 -1.442695, %v4218_v25 }
 0x751   : > { %5311 = vpow2.f32 %v4694_v16 }
 0x752   : > { %5313 = vpow2.f32 %v4695_v17 }
 0x75b   : > { %v5312_v18 = vpop.eup %5311 }
 0x75c   : > { %v5314_v20 = vpop.eup %5313  ;;  %v4225_v2 = vadd.f32 1.0, %v5312_v18 }
 0x75d   : > { %v4226_v37 = vadd.f32 1.0, %v5314_v20 }
 0x75e   : > { %5315 = vrcp.f32 %v4225_v2 }
 0x75f   : > { %5317 = vrcp.f32 %v4226_v37 }
 0x768   : > { %v5316_v26 = vpop.eup %5315 }
 0x769   : > { %v5318_v33 = vpop.eup %5317  ;;  %v4231_v22 = vmul.f32 %v5316_v26, %v4217_v57 }
 0x76a   : > { %v4232_v40 = vmul.f32 %v5318_v33, %v4218_v25 }
 0x76b   : > { %v4235_v38 = vmul.f32 %v4233_v15, %v4231_v22 }
 0x76c   : > { %v4236_v56 = vmul.f32 %v4234_v14, %v4232_v40 }
 0x76d   : > { %v4237_v41 = vsel %vm2061_vm4, %v4235_v38, 0.0 }
 0x76e   : > { %v4238_v39 = vsel %vm2061_vm4, %v4236_v56, 0.0 }
 0x76f   : > { %v4239_v21 = vadd.f32 %v4238_v39, %v4237_v41 }
 0x771   : > { %v4240_v42 = vrot.slane %v4239_v21, 4 }
 0x773   : > { %v4241_v47 = vadd.f32 %v4240_v42, %v4239_v21 }
 0x775   : > { %v4242_v52 = vrot.slane %v4241_v47, 2 }
 0x777   : > { %v4243_v49 = vadd.f32 %v4242_v52, %v4241_v47 }
 0x779   : > { %v4244_v58 = vrot.slane %v4243_v49, 1 }
 0x77b   : > { %v4245_v34 = vadd.f32 %v4244_v58, %v4243_v49 }
 0x77d   : > { %v4247_v59 = vadd.f32 %v4246_v50, %v4245_v34 }
 0x77f   : > { %v4248_v62 = vpack.c.bf16 %v4247_v59, %v4247_v59 }
 0x781   : > { %4967 = vmatmul.mubr.msk.bf16.vlgmr.msra.gmra.mrb[68].mxu1 %vm2061_vm4, %v4248_v62  ;;  %vm4378_vm4 = vcmask 8192  }
 0x782   : > { %4971 = vmatpush3.bf16.msra.mxu1 %v5250_v31  ;;  %4972 = vmatprep.mubr.msk.bf16.mxu1 %vm5389_vm11, %v5388_v23 }
 0x854   : > { %v4318_v4 = vpop.f32.mrb[68].mxu1 }
 0x855   : > { %v4324_v48 = vpack.c.bf16 %v4318_v4, %v4318_v4  ;;  %v4968_v51 = vpop.f32.mrb[69].mxu1 }
 0x856   : > { %v4321_v60 = vpop.f32.mrb[70].mxu1 }
 0x857   : > { %v4969_v9 = vpop.f32.mrb[71].mxu1  ;;  %4973 = vmatmul.mubr.msk.bf16.vlgmr.msra.gmra.mrb[72].mxu1 %vm4334_vm0, %v4324_v48 }
 0x92a   : > { %v4372_v61 = vpop.f32.mrb[72].mxu1 }
 0x92b   : > { %v4373_v28 = vadd.f32 %v4372_v61, %v4327_v44  ;;  %v4974_v23 = vpop.f32.mrb[73].mxu1 }
 0x92c   : > { %v4375_v54 = vpop.f32.mrb[74].mxu1 }
 0x92d   : > { %v4975_v19 = vpop.f32.mrb[75].mxu1  ;;  %4379 = vst.msk [vmem:[%s729_s4] sm:$0x1] %vm4378_vm4, %v4373_v28 }
 0x92e   : > { %5332 = shalt.err (!%p5329_p3)
}
 0x92f   : > { %s5333_s28 = scalar_lea.hbm %s6904_s5, 16  ;;  %s5337_s1 = scalar_lea.hbm %s7097_s29, 32 }
 0x930   : > { %p5334_p4 = scmp.ne.s32.totalorder %s6904_s5, %s5333_s28  ;;  %p5338_p9 = scmp.lt.u32.totalorder %s6904_s5, %s7097_s29 }
 0x931   : > { %p5339_p10 = scmp.lt.u32.totalorder %s5337_s1, %s5333_s28  ;;  %p5341_p12 = scmp.lt.u32.totalorder %s5333_s28, %s6904_s5 }
 0x932   : > { %p5335_p7 = pnand %p5334_p4, %p5554_p5 }
 0x933   : > { %p5340_p11 = por %p5339_p10, %p5338_p9 }
 0x934   : > { %p5336_p8 = pneg %p5335_p7 }
 0x935   : > { %p5342_p13 = por %p5341_p12, %p5340_p11 }
 0x937   : > { %p5343_p0 = pnand %p5342_p13, %p5336_p8 }
 0x939   : > { %5346 = shalt.err (!%p5343_p0)
}
 0x93a   : > { %4985 = dma.vmem_to_hbm [thread:$0]  (%p5554_p5), %s6906_s30, 16, %s6904_s5, %s4381_s6  }
 0x93b PF: > { %s7098_s2 = sld [smem:[#allocation12_spill]]  ;;  %s7099_s24 = sld [smem:[#allocation10_spill]] }
 0x941   : > { %p4991_p1 = scmp.ge.s32.totalorder %s7098_s2, 2  ;;  %s4405_s25 = sand.u32 1, %s7099_s24  }
 0x942   : > { %s4406_s4 = scalar_lea.sflag [#allocation8], %s4405_s25 }
 0x943   : > { %p4988_p2 = pnand %p4991_p1, %p5558_p6 }
 0x945   : > { %5364 = dma.done.wait (!%p4988_p2), %s4406_s4, 16  }
 0x946   : > { %5366 = vsyncadd (!%p4988_p2), %s4406_s4, 4294967280  ;;  %s7101_s28 = sld [smem:[#allocation13_spill]]  ;;  %s7102_s1 = sld [smem:[#allocation11_spill]] }
 0x947   : > { %s7103_s27 = sld [smem:[#allocation14_spill]]  ;;  %s7104_s5 = smov %s5373_s26 }
 0x94c   : > { %p34_p3 = scmp.ge.s32.totalorder %s7101_s28, 4   ;;  %s7105_s26 = smov %s7102_s1 }
 0x94e   :  { %36 = sbr.rel (!%p34_p3) target bundleno = 14 (0xe), region = 162 }
 0x955   :  { %4410 = vsyncpa [#allocation8], 1 }
 0x956   :  { %4412 = vsyncpa [#allocation8 + $0x1], 1 }

</bundles_post_ra>
